<compile_context>
chip_gen: v6e
topology: v6e:2x2x1
jax: 0.10.0
libtpu: 0.0.40
codegen_flags: <defaults>
</compile_context>

<pallas_src>
import math

import jax
import jax.numpy as jnp
from jax.experimental import pallas as pl
from jax.experimental.pallas import tpu as pltpu

IN_X = 1000      # input_features dim
IN_P = 512       # per-pair weight dim ('concat' mode)
OUT_DIM = 1000   # Linear(1512, 1000) output dim
OUT_PAD = 1024   # lane-dense padded output dim (multiple of 128)


def _pick_tn():
    """Generation-aware output-tile width.

    v7x has two TensorCores -> keep a 2-way 'parallel' N split so each core
    fetches half of the (bandwidth-dominating) weights.  v5e/v6e have a single
    TC, where extra grid steps are pure overhead -> one full-width step.
    """
    try:
        kind = jax.devices()[0].device_kind.lower()
    except Exception:
        kind = ""
    if "v7" in kind or "7x" in kind:
        return 512
    return OUT_PAD


# ------------------------------ 'mult' branch --------------------------------
def part_object_pair_mult(x, w_pair, suppressed):
    """'mult' forward.  Kept in plain JAX per perf review: the op touches
    ~16 KB, so a pallas_call launch would dwarf the work, and a plain XLA
    multiply fuses with surrounding ops for free."""
    if suppressed:                      # host-side early exit
        return jnp.zeros_like(x)
    return x * jax.nn.sigmoid(w_pair.reshape(1, 1))


# ----------------------------- 'concat' branch --------------------------------
def _concat_dense_relu_kernel(x_ref, wp_ref, wx_ref, wwp_ref, b_ref, o_ref):
    # x_ref:  [Mx, 1000]  (Mx == 1 for shared-x batching, or Mx == M)
    # wp_ref: [M, 512], wx_ref: [1000, tn], wwp_ref: [512, tn]
    # b_ref:  [1, tn],  o_ref: [M, tn]
    # cat([x, w_pair], 1) @ W.T  ==  x @ Wx + w_pair @ Wp   (concat fused on MXU)
    yx = jnp.dot(x_ref[...], wx_ref[...], preferred_element_type=jnp.float32)
    yp = jnp.dot(wp_ref[...], wwp_ref[...], preferred_element_type=jnp.float32)
    y = yp + yx + b_ref[...]            # yx broadcasts [1, tn] -> [M, tn] if shared x
    o_ref[...] = jnp.maximum(y, 0.0).astype(o_ref.dtype)


def init_concat_params(dense_w, dense_b, dtype=jnp.bfloat16):
    """ONE-TIME parameter prep (do NOT call per forward).

    dense_w: [1000, 1512] (torch Linear layout), dense_b: [1000].
    Returns (wx_t [1000, 1024], wp_t [512, 1024], b_pad [1, 1024]):
      * transposed once (no per-call HBM transpose),
      * split at row 1000 so the concat fuses into two MXU accumulations,
      * output dim padded 1000 -> 1024: every output tile is a full 128-lane
        column (unmasked vst), padded lanes stay exactly 0 after ReLU,
      * stored in bf16 by default -> half the weight-DMA bytes; accumulation
        stays f32 inside the kernel.
    """
    w_t = dense_w.T                                   # [1512, 1000], done once
    pad = OUT_PAD - OUT_DIM
    wx_t = jnp.pad(w_t[:IN_X, :], ((0, 0), (0, pad))).astype(dtype)
    wp_t = jnp.pad(w_t[IN_X:, :], ((0, 0), (0, pad))).astype(dtype)
    b_pad = jnp.pad(dense_b, (0, pad)).reshape(1, OUT_PAD).astype(jnp.float32)
    return wx_t, wp_t, b_pad


def part_object_pair_concat(x, w_pair, wx_t, wp_t, b_pad, suppressed,
                            *, tn=None, trim=False):
    """'concat' forward for one or many class pairs.

    x:       [Mx, 1000] with Mx == M (per-pair features) or Mx == 1 (shared
             features; broadcast inside the kernel -> no [M, 1000] replica).
    w_pair:  [M, 512] - one row per (i_cls, j_cls) pair.  Stacking many pairs
             amortizes the (dominant) weight fetch across the batch.
    wx_t/wp_t/b_pad: from init_concat_params (pre-transposed / split / padded).
    suppressed: Python bool (suppress_hh resolved on host).
    Returns [M, 1024] padded (trim=False, recommended) or [M, 1000].
    """
    M = w_pair.shape[0]
    out_cols = OUT_DIM if trim else OUT_PAD
    if suppressed:                      # host-side early exit, no kernel launch
        return jnp.zeros((M, out_cols), jnp.float32)

    assert x.shape[0] in (1, M) and x.shape[1] == IN_X
    wdt = wx_t.dtype
    x = x.astype(wdt)                   # match weight dtype: bf16 x bf16 on MXU
    w_pair = w_pair.astype(wdt)

    if tn is None:
        tn = _pick_tn()
    n_steps = OUT_PAD // tn
    Mx = x.shape[0]

    out_pad = pl.pallas_call(
        _concat_dense_relu_kernel,
        out_shape=jax.ShapeDtypeStruct((M, OUT_PAD), jnp.float32),
        grid=(n_steps,),
        in_specs=[
            # x / w_pair map to block (0, 0) for every j -> held resident in
            # VMEM across the N grid (Pallas does not re-fetch an unchanged
            # block index).
            pl.BlockSpec((Mx, IN_X), lambda j: (0, 0)),
            pl.BlockSpec((M, IN_P), lambda j: (0, 0)),
            pl.BlockSpec((IN_X, tn), lambda j: (0, j)),
            pl.BlockSpec((IN_P, tn), lambda j: (0, j)),
            pl.BlockSpec((1, tn), lambda j: (0, j)),
        ],
        out_specs=pl.BlockSpec((M, tn), lambda j: (0, j)),
        compiler_params=pltpu.CompilerParams(
            dimension_semantics=("parallel",),
            # headroom for the f32-weight / tn=1024 configuration on v5e
            vmem_limit_bytes=32 * 1024 * 1024),
    )(x, w_pair, wx_t, wp_t, b_pad)

    # TODO(synk): on v7x, fp8 weight storage (per-output-column scales folded
    # into the epilogue) would cut the weight DMA another 2x.
    return out_pad[:, :OUT_DIM] if trim else out_pad


# ------------------------------ host-side glue --------------------------------
def is_suppressed(suppress_hh, i_human, j_human):
    """suppress_hh gating uses plain Python ints -> resolved entirely on host."""
    if not suppress_hh:
        return False
    if i_human == -1 and i_human == j_human:
        return True
    if i_human != -1 and j_human != -1 and i_human != j_human:
        return True
    return False


if __name__ == "__main__":
    key = jax.random.PRNGKey(0)
    k1, k2, k3, k4, k5, k6 = jax.random.split(key, 6)

    # Deterministic parameter init (shapes from __init__):
    #   'mult'  : 95x95 params of shape [1, 1],  scale=0.01
    #   'concat': 95x95 params of shape [1, 512], scale=0.01; Linear(1512, 1000)
    W_mult = 0.01 * jax.random.normal(k1, (95, 95, 1, 1), jnp.float32)
    W_concat = 0.01 * jax.random.normal(k2, (95, 95, 1, 512), jnp.float32)
    dense_w = jax.random.normal(k3, (1000, 1512), jnp.float32) / math.sqrt(1512.0)
    dense_b = 0.01 * jax.random.normal(k4, (1000,), jnp.float32)

    # One-time init-side prep (bf16 weight storage per perf review).
    wx_t, wp_t, b_pad = init_concat_params(dense_w, dense_b, dtype=jnp.bfloat16)

    # Pair / human indices (plain Python ints, as in the torch forward).
    i_cls, j_cls = 3, 7
    i_human, j_human = 1, 1
    suppressed = is_suppressed(True, i_human, j_human)     # False -> run kernel

    # --- 'mult' mode (plain JAX per perf review) ---
    x_mult = jax.random.normal(k5, (2, IN_X), jnp.float32)
    w_pair_mult = W_mult[i_cls, j_cls]                     # [1, 1]
    out_mult = jax.block_until_ready(
        part_object_pair_mult(x_mult, w_pair_mult, suppressed))
    ref_mult = x_mult * jax.nn.sigmoid(w_pair_mult)
    assert jnp.allclose(out_mult, ref_mult, rtol=1e-5, atol=1e-5)

    # --- 'concat' mode, single pair (M=1: exactly the torch forward) ---
    x_concat = jax.random.normal(k6, (1, IN_X), jnp.float32)
    w_pair_concat = W_concat[i_cls, j_cls]                 # [1, 512]
    out_pad = jax.block_until_ready(
        part_object_pair_concat(x_concat, w_pair_concat, wx_t, wp_t, b_pad,
                                suppressed))
    assert out_pad.shape == (1, OUT_PAD)
    assert not bool(jnp.any(out_pad[:, OUT_DIM:]))          # padded lanes stay 0
    feat_ref = jnp.concatenate([x_concat, w_pair_concat], axis=1)
    ref_concat = jnp.maximum(feat_ref @ dense_w.T + dense_b, 0.0)
    assert jnp.allclose(out_pad[:, :OUT_DIM], ref_concat, rtol=2e-2, atol=2e-2)

    # --- 'concat' mode, batched: P pairs share x and ONE weight fetch ---
    P = 8
    pair_idx = [(p % 95, (3 * p + 1) % 95) for p in range(P)]
    w_pairs = jnp.stack([W_concat[i, j, 0] for (i, j) in pair_idx])   # [P, 512]
    out_batch = jax.block_until_ready(
        part_object_pair_concat(x_concat, w_pairs, wx_t, wp_t, b_pad,
                                suppressed))                # x passed once: [1, 1000]
    feat_b = jnp.concatenate(
        [jnp.broadcast_to(x_concat, (P, IN_X)), w_pairs], axis=1)
    ref_batch = jnp.maximum(feat_b @ dense_w.T + dense_b, 0.0)
    assert out_batch.shape == (P, OUT_PAD)
    assert jnp.allclose(out_batch[:, :OUT_DIM], ref_batch, rtol=2e-2, atol=2e-2)

    # --- suppressed pair: resolved on host, no kernel launch, zeros out ---
    sup = is_suppressed(True, 2, 5)                        # True
    assert not bool(jnp.any(part_object_pair_concat(
        x_concat, w_pair_concat, wx_t, wp_t, b_pad, sup)))
    assert not bool(jnp.any(part_object_pair_mult(x_mult, w_pair_mult, sup)))

    print("KERNEL_OK")
</pallas_src>

<mosaic_0001>
module attributes {stable_mosaic.version = 11 : i64} {
  func.func @_concat_dense_relu_kernel(%arg0: i32, %arg1: memref<1x1000xbf16, #tpu.memory_space<vmem>>, %arg2: memref<1x512xbf16, #tpu.memory_space<vmem>>, %arg3: memref<1000x1024xbf16, #tpu.memory_space<vmem>>, %arg4: memref<512x1024xbf16, #tpu.memory_space<vmem>>, %arg5: memref<1x1024xf32, #tpu.memory_space<vmem>>, %arg6: memref<1x1024xf32, #tpu.memory_space<vmem>>) attributes {dimension_semantics = [#tpu.dimension_semantics<parallel>], iteration_bounds = array<i64: 1>, scalar_prefetch = 0 : i64, scratch_operands = 0 : i64, tpu.core_type = #tpu.core_type<tc>, window_params = [{pipeline_mode = #tpu.pipeline_mode<synchronous>, transform_indices = @transform_0, window_bounds = array<i64: 1, 1000>}, {pipeline_mode = #tpu.pipeline_mode<synchronous>, transform_indices = @transform_1, window_bounds = array<i64: 1, 512>}, {transform_indices = @transform_2, window_bounds = array<i64: 1000, 1024>}, {transform_indices = @transform_3, window_bounds = array<i64: 512, 1024>}, {transform_indices = @transform_4, window_bounds = array<i64: 1, 1024>}, {transform_indices = @transform_5, window_bounds = array<i64: 1, 1024>}]} {
    %c0 = arith.constant 0 : index
    %c0_0 = arith.constant 0 : index
    %0 = vector.load %arg1[%c0, %c0_0] : memref<1x1000xbf16, #tpu.memory_space<vmem>>, vector<1x1000xbf16>
    %c0_1 = arith.constant 0 : index
    %c0_2 = arith.constant 0 : index
    %1 = vector.load %arg3[%c0_1, %c0_2] : memref<1000x1024xbf16, #tpu.memory_space<vmem>>, vector<1000x1024xbf16>
    %cst = arith.constant dense<0.000000e+00> : vector<1x1024xf32>
    %2 = tpu.matmul %0, %1, %cst {dimension_numbers = #tpu.dot_dimension_numbers<[1], [0], [0], [1], [0, 0, 1, 1], [], []>} : vector<1x1000xbf16>, vector<1000x1024xbf16>, vector<1x1024xf32> -> vector<1x1024xf32>
    %c0_3 = arith.constant 0 : index
    %c0_4 = arith.constant 0 : index
    %3 = vector.load %arg2[%c0_3, %c0_4] : memref<1x512xbf16, #tpu.memory_space<vmem>>, vector<1x512xbf16>
    %c0_5 = arith.constant 0 : index
    %c0_6 = arith.constant 0 : index
    %4 = vector.load %arg4[%c0_5, %c0_6] : memref<512x1024xbf16, #tpu.memory_space<vmem>>, vector<512x1024xbf16>
    %cst_7 = arith.constant dense<0.000000e+00> : vector<1x1024xf32>
    %5 = tpu.matmul %3, %4, %cst_7 {dimension_numbers = #tpu.dot_dimension_numbers<[1], [0], [0], [1], [0, 0, 1, 1], [], []>} : vector<1x512xbf16>, vector<512x1024xbf16>, vector<1x1024xf32> -> vector<1x1024xf32>
    %6 = arith.addf %5, %2 : vector<1x1024xf32>
    %c0_8 = arith.constant 0 : index
    %c0_9 = arith.constant 0 : index
    %7 = vector.load %arg5[%c0_8, %c0_9] : memref<1x1024xf32, #tpu.memory_space<vmem>>, vector<1x1024xf32>
    %8 = arith.addf %6, %7 : vector<1x1024xf32>
    %cst_10 = arith.constant 0.000000e+00 : f32
    %9 = vector.broadcast %cst_10 : f32 to vector<1x1024xf32>
    %10 = arith.maximumf %8, %9 : vector<1x1024xf32>
    %c0_11 = arith.constant 0 : index
    %c0_12 = arith.constant 0 : index
    %11 = vector.load %arg6[%c0_11, %c0_12] : memref<1x1024xf32, #tpu.memory_space<vmem>>, vector<1x1024xf32>
    tpu.vector_store %arg6[%c0_11, %c0_12], %10 {strides = array<i32>} : memref<1x1024xf32, #tpu.memory_space<vmem>>, vector<1x1024xf32>,
    return
  }
  func.func @transform_0(%arg0: i32) -> (i32, i32) {
    %c0_i32 = arith.constant 0 : i32
    %c0_i32_0 = arith.constant 0 : i32
    %c0_i32_1 = arith.constant 0 : i32
    return %c0_i32, %c0_i32_0 : i32, i32
  }
  func.func @transform_1(%arg0: i32) -> (i32, i32) {
    %c0_i32 = arith.constant 0 : i32
    %c0_i32_0 = arith.constant 0 : i32
    %c0_i32_1 = arith.constant 0 : i32
    return %c0_i32, %c0_i32_0 : i32, i32
  }
  func.func @transform_2(%arg0: i32) -> (i32, i32) {
    %c0_i32 = arith.constant 0 : i32
    %c0_i32_0 = arith.constant 0 : i32
    return %c0_i32, %arg0 : i32, i32
  }
  func.func @transform_3(%arg0: i32) -> (i32, i32) {
    %c0_i32 = arith.constant 0 : i32
    %c0_i32_0 = arith.constant 0 : i32
    return %c0_i32, %arg0 : i32, i32
  }
  func.func @transform_4(%arg0: i32) -> (i32, i32) {
    %c0_i32 = arith.constant 0 : i32
    %c0_i32_0 = arith.constant 0 : i32
    return %c0_i32, %arg0 : i32, i32
  }
  func.func @transform_5(%arg0: i32) -> (i32, i32) {
    %c0_i32 = arith.constant 0 : i32
    %c0_i32_0 = arith.constant 0 : i32
    return %c0_i32, %arg0 : i32, i32
  }
}

</mosaic_0001>

<bundles_post_ra>
// kernel: tpu_custom_call.1
= control target key start
LH: loop header
LB: loop body
LE: loop exit
PB: predicated region body
PF: predicated region fallthrough
CT: control target
= control target key end

     0   :  { %10 = vsyncpa [#allocation3], 0  ;;  %s7028_s0 = inlined_call_operand.hbm [shape: bf16[1,1000], index: 0, kind: input, shape index: {}]   ;;  %s7029_s1 = inlined_call_operand.hbm [shape: bf16[1,512], index: 1, kind: input, shape index: {}]   ;;  %s7030_s2 = inlined_call_operand.hbm [shape: bf16[1000,1024], index: 2, kind: input, shape index: {}]   ;;  %s7031_s3 = inlined_call_operand.hbm [shape: bf16[512,1024], index: 3, kind: input, shape index: {}]   ;;  %s7032_s4 = inlined_call_operand.hbm [shape: f32[1,1024], index: 4, kind: input, shape index: {}]   ;;  %s7033_s5 = inlined_call_operand.hbm [shape: f32[1,1024], index: 5, kind: output, shape index: {}]  }
   0x1   :  { %11 = vsyncpa [#allocation6], 0 }
   0x2   :  { %12 = vsyncpa [#allocation9], 0 }
   0x3   :  { %13 = vsyncpa [#allocation4], 0  ;;  %s6770_s18 = smov [#allocation5]  }
   0x4   :  { %s30_s19 = sshll.u32 %s6770_s18, 4  ;;  %s31_s19 = int_to_ptr.vmem [resolvable:$true] %s30_s19 }
   0x5   :  { %s6650_s20 = scalar_lea.vmem %s31_s19, 64  ;;  %p6655_p1 = scmp.lt.s32.totalorder %s31_s19, %s31_s19 }
   0x6   :  { %p6651_p0 = scmp.ne.s32.totalorder %s31_s19, %s6650_s20  ;;  %p6656_p2 = scmp.lt.s32.totalorder %s6650_s20, %s6650_s20 }
   0x8   :  { %p6657_p3 = por %p6656_p2, %p6655_p1 }
   0xa   :  { %p6658_p4 = pnand %p6657_p3, %p6651_p0 }
   0xc   :  { %6661 = shalt.err (!%p6658_p4)
}
   0xd   :  { %33 = dma.hbm_to_vmem [thread:$0]  %s7029_s1, 64, %s31_s19, [#allocation6]  }
   0xe   :  { %s6771_s23 = smov [#allocation8]   ;;  %s6772_s25 = smov [#allocation2]  }
   0xf   :  { %s51_s24 = sshll.u32 %s6771_s23, 4  ;;  %s20_s26 = sshll.u32 %s6772_s25, 4  ;;  %s52_s24 = int_to_ptr.vmem [resolvable:$true] %s51_s24  ;;  %s21_s26 = int_to_ptr.vmem [resolvable:$true] %s20_s26 }
  0x10   :  { %s6670_s27 = scalar_lea.vmem %s52_s24, 32768  ;;  %p6675_p6 = scmp.lt.s32.totalorder %s52_s24, %s52_s24 }
  0x11   :  { %p6671_p5 = scmp.ne.s32.totalorder %s52_s24, %s6670_s27  ;;  %p6676_p7 = scmp.lt.s32.totalorder %s6670_s27, %s6670_s27 }
  0x13   :  { %p6677_p8 = por %p6676_p7, %p6675_p6 }
  0x15   :  { %p6678_p9 = pnand %p6677_p8, %p6671_p5 }
  0x17   :  { %6681 = shalt.err (!%p6678_p9)
}
  0x18   :  { %s6773_s28 = smov 512   ;;  %s6774_s29 = smov 32  }
  0x19   :  { %57 = dma.hbm_to_vmem [thread:$0]  %s7031_s3, 32768, %s52_s24, [#allocation9], %s6773_s28, %s6773_s28, %s6774_s29  }
  0x1a   :  { %s6690_s1 = scalar_lea.vmem %s21_s26, 128  ;;  %p6695_p11 = scmp.lt.s32.totalorder %s21_s26, %s21_s26 }
  0x1b   :  { %p6691_p10 = scmp.ne.s32.totalorder %s21_s26, %s6690_s1  ;;  %p6696_p12 = scmp.lt.s32.totalorder %s6690_s1, %s6690_s1 }
  0x1d   :  { %p6697_p13 = por %p6696_p12, %p6695_p11 }
  0x1f   :  { %p6698_p0 = pnand %p6697_p13, %p6691_p10 }
  0x21   :  { %6701 = shalt.err (!%p6698_p0)
}
  0x22   :  { %23 = dma.hbm_to_vmem [thread:$0]  %s7028_s0, 128, %s21_s26, [#allocation3]  }
  0x23   :  { %s6775_s9 = smov [#allocation7]   ;;  %s6776_s11 = smov [#allocation10]  }
  0x24   :  { %s39_s10 = sshll.u32 %s6775_s9, 4  ;;  %s64_s12 = sshll.u32 %s6776_s11, 4  ;;  %s40_s10 = int_to_ptr.vmem [resolvable:$true] %s39_s10  ;;  %s65_s12 = int_to_ptr.vmem [resolvable:$true] %s64_s12 }
  0x25   :  { %s6710_s13 = scalar_lea.vmem %s40_s10, 64000  ;;  %p6715_p2 = scmp.lt.s32.totalorder %s40_s10, %s40_s10 }
  0x26   :  { %p6711_p1 = scmp.ne.s32.totalorder %s40_s10, %s6710_s13  ;;  %p6716_p3 = scmp.lt.s32.totalorder %s6710_s13, %s6710_s13 }
  0x28   :  { %p6717_p4 = por %p6716_p3, %p6715_p2 }
  0x2a   :  { %p6718_p5 = pnand %p6717_p4, %p6711_p1 }
  0x2c   :  { %6721 = shalt.err (!%p6718_p5)
}
  0x2d   :  { %45 = dma.hbm_to_vmem [thread:$0]  %s7030_s2, 64000, %s40_s10, [#allocation6], %s6773_s28, %s6773_s28, %s6774_s29  }
  0x2e   :  { %s6730_s15 = scalar_lea.vmem %s65_s12, 128  ;;  %p6735_p7 = scmp.lt.s32.totalorder %s65_s12, %s65_s12 }
  0x2f   :  { %p6731_p6 = scmp.ne.s32.totalorder %s65_s12, %s6730_s15  ;;  %p6736_p8 = scmp.lt.s32.totalorder %s6730_s15, %s6730_s15 }
  0x31   :  { %p6737_p9 = por %p6736_p8, %p6735_p7 }
  0x33   :  { %p6738_p10 = pnand %p6737_p9, %p6731_p6 }
  0x35   :  { %6741 = shalt.err (!%p6738_p10)
}
  0x36   :  { %67 = dma.hbm_to_vmem [thread:$0]  %s7032_s4, 128, %s65_s12, [#allocation9]  }
  0x37   :  { %6762 = dma.done.wait [#allocation3], 128  }
  0x38   :  { %6763 = vsyncadd [#allocation3], 4294967168 }
  0x39   :  { %6764 = dma.done.wait [#allocation6], 64064  }
  0x3a   :  { %6765 = vsyncadd [#allocation6], 4294903232 }
  0x3b   :  { %6766 = dma.done.wait [#allocation9], 32896  }
  0x3c   :  { %6767 = vsyncadd [#allocation9], 4294934400  ;;  %v141_v0 = vld [vmem:[#allocation7 + $0x1c0] sm:$0xff]  ;;  %v6777_v32 = vmov 1966171168   ;;  %v590_v34 = vlaneseq  ;;  %v6829_v59 = vld [vmem:[#allocation2] sm:$0xff] }
  0x3d   :  { %v145_v1 = vld [vmem:[#allocation7 + $0x1e0] sm:$0xff]  ;;  %v588_v33 = vunpack.c.l.s4 %v6777_v32  ;;  %vm3142_vm0 = vcmask 850944   ;;  %vm3146_vm1 = vcmask 1043456   ;;  %s6778_s2 = smov [#allocation11]  }
  0x3e   :  { %v269_v2 = vld [vmem:[#allocation7 + $0x5c0] sm:$0xff]  ;;  %v5912_v3 = vcombine.high %v141_v0, %v145_v1  ;;  %v5911_v5 = vcombine.low %v141_v0, %v145_v1  ;;  %v6824_v44 = vshrl.u32 %v590_v34, 7  ;;  %s5844_s4 = sshll.u32 %s6778_s2, 4  ;;  %s5845_s4 = int_to_ptr.vmem [resolvable:$true] %s5844_s4 }
  0x3f   :  { %v273_v4 = vld [vmem:[#allocation7 + $0x5e0] sm:$0xff]  ;;  %v589_v43 = vunpack.c.0.s8 %v588_v33  ;;  %s6742_s17 = scalar_lea.vmem %s5845_s4, 128  ;;  %p6747_p12 = scmp.lt.s32.totalorder %s5845_s4, %s5845_s4 }
  0x40   :  { %v133_v6 = vld [vmem:[#allocation7 + $0x180] sm:$0xff]  ;;  %v6040_v8 = vcombine.high %v269_v2, %v273_v4  ;;  %v6039_v9 = vcombine.low %v269_v2, %v273_v4  ;;  %3171 = vmatprep.subr.bf16.mxu0 %v5912_v3  ;;  %p6743_p11 = scmp.ne.s32.totalorder %s5845_s4, %s6742_s17  ;;  %p6748_p13 = scmp.lt.s32.totalorder %s6742_s17, %s6742_s17 }
  0x41   :  { %v137_v7 = vld [vmem:[#allocation7 + $0x1a0] sm:$0xff]  ;;  %3172 = vmatpush1.bf16.msra.mxu0 %v5911_v5  ;;  %v6827_v53 = vsub.s32 %v589_v43, %v6824_v44 }
  0x42   :  { %v5904_v10 = vcombine.high %v133_v6, %v137_v7  ;;  %v261_v11 = vld [vmem:[#allocation7 + $0x580] sm:$0xff]  ;;  %3212 = vmatprep.subr.bf16.mxu1 %v6040_v8  ;;  %v5903_v18 = vcombine.low %v133_v6, %v137_v7  ;;  %p6749_p0 = por %p6748_p13, %p6747_p12 }
  0x43   :  { %v265_v12 = vld [vmem:[#allocation7 + $0x5a0] sm:$0xff]  ;;  %3213 = vmatpush1.bf16.msra.mxu1 %v6039_v9  ;;  %v6833_v63 = vrot.slane %v6829_v59, %v6827_v53 }
  0x44   :  { %v125_v13 = vld [vmem:[#allocation7 + $0x140] sm:$0xff]  ;;  %v6032_v14 = vcombine.high %v261_v11, %v265_v12  ;;  %3173 = vmatprep.subr.bf16.mxu0 %v5904_v10  ;;  %v6031_v19 = vcombine.low %v261_v11, %v265_v12  ;;  %p6750_p1 = pnand %p6749_p0, %p6743_p11 }
  0x45   :  { %v129_v15 = vld [vmem:[#allocation7 + $0x160] sm:$0xff]  ;;  %3174 = vmatpush1.bf16.msra.mxu0 %v5903_v18  ;;  %v601_v3 = vcombine.high %v6833_v63, %v6833_v63 }
  0x46   :  { %v253_v16 = vld [vmem:[#allocation7 + $0x540] sm:$0xff]  ;;  %v5896_v20 = vcombine.high %v125_v13, %v129_v15  ;;  %3214 = vmatprep.subr.bf16.mxu1 %v6032_v14  ;;  %v5895_v26 = vcombine.low %v125_v13, %v129_v15 }
  0x47   :  { %v257_v17 = vld [vmem:[#allocation7 + $0x560] sm:$0xff]  ;;  %3215 = vmatpush1.bf16.msra.mxu1 %v6031_v19  ;;  %v6838_v9 = vrot.slane %v601_v3, %v6827_v53 }
  0x48   :  { %v6024_v21 = vcombine.high %v253_v16, %v257_v17  ;;  %v117_v22 = vld [vmem:[#allocation7 + $0x100] sm:$0xff]  ;;  %3175 = vmatprep.subr.bf16.mxu0 %v5896_v20  ;;  %v6023_v27 = vcombine.low %v253_v16, %v257_v17 }
  0x49   :  { %v121_v23 = vld [vmem:[#allocation7 + $0x120] sm:$0xff]  ;;  %3176 = vmatpush1.bf16.msra.mxu0 %v5895_v26  ;;  %3203 = vmatprep.mubr.bf16.mxu0 %v6838_v9  ;;  %v6843_v13 = vcombine.high %v6838_v9, %v6838_v9 }
  0x4a   :  { %v245_v24 = vld [vmem:[#allocation7 + $0x500] sm:$0xff]  ;;  %v5888_v28 = vcombine.high %v117_v22, %v121_v23  ;;  %3216 = vmatprep.subr.bf16.mxu1 %v6024_v21  ;;  %v5887_v37 = vcombine.low %v117_v22, %v121_v23 }
  0x4b   :  { %v249_v25 = vld [vmem:[#allocation7 + $0x520] sm:$0xff]  ;;  %3217 = vmatpush1.bf16.msra.mxu1 %v6023_v27  ;;  %3244 = vmatprep.mubr.bf16.mxu1 %v6843_v13 }
  0x4c   :  { %v6016_v29 = vcombine.high %v245_v24, %v249_v25  ;;  %v109_v30 = vld [vmem:[#allocation7 + $0xc0] sm:$0xff]  ;;  %3177 = vmatprep.subr.bf16.mxu0 %v5888_v28  ;;  %v6015_v38 = vcombine.low %v245_v24, %v249_v25 }
  0x4d   :  { %v113_v31 = vld [vmem:[#allocation7 + $0xe0] sm:$0xff]  ;;  %3178 = vmatpush1.bf16.msra.mxu0 %v5887_v37 }
  0x4e   :  { %v237_v35 = vld [vmem:[#allocation7 + $0x4c0] sm:$0xff]  ;;  %v5880_v39 = vcombine.high %v109_v30, %v113_v31  ;;  %3218 = vmatprep.subr.bf16.mxu1 %v6016_v29  ;;  %v5879_v47 = vcombine.low %v109_v30, %v113_v31 }
  0x4f   :  { %v241_v36 = vld [vmem:[#allocation7 + $0x4e0] sm:$0xff]  ;;  %3219 = vmatpush1.bf16.msra.mxu1 %v6015_v38 }
  0x50   :  { %v6008_v40 = vcombine.high %v237_v35, %v241_v36  ;;  %v101_v41 = vld [vmem:[#allocation7 + $0x80] sm:$0xff]  ;;  %3179 = vmatprep.subr.bf16.mxu0 %v5880_v39  ;;  %v6007_v48 = vcombine.low %v237_v35, %v241_v36 }
  0x51   :  { %v105_v42 = vld [vmem:[#allocation7 + $0xa0] sm:$0xff]  ;;  %3180 = vmatpush1.bf16.msra.mxu0 %v5879_v47 }
  0x52   :  { %v229_v45 = vld [vmem:[#allocation7 + $0x480] sm:$0xff]  ;;  %v5872_v49 = vcombine.high %v101_v41, %v105_v42  ;;  %3220 = vmatprep.subr.bf16.mxu1 %v6008_v40  ;;  %v5871_v56 = vcombine.low %v101_v41, %v105_v42 }
  0x53   :  { %v233_v46 = vld [vmem:[#allocation7 + $0x4a0] sm:$0xff]  ;;  %3221 = vmatpush1.bf16.msra.mxu1 %v6007_v48 }
  0x54   :  { %v6000_v50 = vcombine.high %v229_v45, %v233_v46  ;;  %v93_v51 = vld [vmem:[#allocation7 + $0x40] sm:$0xff]  ;;  %3181 = vmatprep.subr.bf16.mxu0 %v5872_v49  ;;  %v5999_v57 = vcombine.low %v229_v45, %v233_v46 }
  0x55   :  { %v97_v52 = vld [vmem:[#allocation7 + $0x60] sm:$0xff]  ;;  %3182 = vmatpush1.bf16.msra.mxu0 %v5871_v56 }
  0x56   :  { %v221_v54 = vld [vmem:[#allocation7 + $0x440] sm:$0xff]  ;;  %v5864_v58 = vcombine.high %v93_v51, %v97_v52  ;;  %3222 = vmatprep.subr.bf16.mxu1 %v6000_v50  ;;  %v5863_v2 = vcombine.low %v93_v51, %v97_v52 }
  0x57   :  { %v225_v55 = vld [vmem:[#allocation7 + $0x460] sm:$0xff]  ;;  %3223 = vmatpush1.bf16.msra.mxu1 %v5999_v57 }
  0x58   :  { %v5992_v60 = vcombine.high %v221_v54, %v225_v55  ;;  %v85_v61 = vld [vmem:[#allocation7] sm:$0xff]  ;;  %3183 = vmatprep.subr.bf16.mxu0 %v5864_v58  ;;  %v5991_v4 = vcombine.low %v221_v54, %v225_v55 }
  0x59   :  { %v89_v62 = vld [vmem:[#allocation7 + $0x20] sm:$0xff]  ;;  %3184 = vmatpush1.bf16.msra.mxu0 %v5863_v2 }
  0x5a   :  { %v213_v0 = vld [vmem:[#allocation7 + $0x400] sm:$0xff]  ;;  %v5856_v5 = vcombine.high %v85_v61, %v89_v62  ;;  %3224 = vmatprep.subr.bf16.mxu1 %v5992_v60  ;;  %v5855_v12 = vcombine.low %v85_v61, %v89_v62  ;;  %v586_v62 = vcombine.high %v6829_v59, %v6829_v59 }
  0x5b   :  { %v217_v1 = vld [vmem:[#allocation7 + $0x420] sm:$0xff]  ;;  %3225 = vmatpush1.bf16.msra.mxu1 %v5991_v4 }
  0x5c   :  { %v5984_v6 = vcombine.high %v213_v0, %v217_v1  ;;  %v205_v7 = vld [vmem:[#allocation7 + $0x3c0] sm:$0xff]  ;;  %3185 = vmatprep.subr.bf16.mxu0 %v5856_v5  ;;  %v5983_v14 = vcombine.low %v213_v0, %v217_v1 }
  0x5d   :  { %v209_v8 = vld [vmem:[#allocation7 + $0x3e0] sm:$0xff]  ;;  %3186 = vmatpush1.bf16.msra.mxu0 %v5855_v12 }
  0x5e   :  { %v333_v10 = vld [vmem:[#allocation7 + $0x7c0] sm:$0xff]  ;;  %v5976_v15 = vcombine.high %v205_v7, %v209_v8  ;;  %3226 = vmatprep.subr.bf16.mxu1 %v5984_v6  ;;  %v5975_v21 = vcombine.low %v205_v7, %v209_v8  ;;  %v6849_v8 = vrot.slane %v586_v62, %v6827_v53 }
  0x5f   :  { %v337_v11 = vld [vmem:[#allocation7 + $0x7e0] sm:$0xff]  ;;  %3227 = vmatpush1.bf16.msra.mxu1 %v5983_v14 }
  0x60   :  { %v6104_v16 = vcombine.high %v333_v10, %v337_v11  ;;  %v197_v17 = vld [vmem:[#allocation7 + $0x380] sm:$0xff]  ;;  %3187 = vmatprep.subr.bf16.mxu0 %v5976_v15  ;;  %v6103_v22 = vcombine.low %v333_v10, %v337_v11 }
  0x61   :  { %v201_v18 = vld [vmem:[#allocation7 + $0x3a0] sm:$0xff]  ;;  %3188 = vmatpush2.bf16.msra.mxu0 %v5975_v21 }
  0x62   :  { %v325_v19 = vld [vmem:[#allocation7 + $0x780] sm:$0xff]  ;;  %v5968_v23 = vcombine.high %v197_v17, %v201_v18  ;;  %3228 = vmatprep.subr.bf16.mxu1 %v6104_v16  ;;  %v5967_v29 = vcombine.low %v197_v17, %v201_v18  ;;  %v602_v18 = vcombine.high %v6849_v8, %v6849_v8 }
  0x63   :  { %v329_v20 = vld [vmem:[#allocation7 + $0x7a0] sm:$0xff]  ;;  %3229 = vmatpush2.bf16.msra.mxu1 %v6103_v22  ;;  %v6855_v22 = vrot.slane %v6833_v63, %v6827_v53 }
  0x64   :  { %v6096_v24 = vcombine.high %v325_v19, %v329_v20  ;;  %v189_v25 = vld [vmem:[#allocation7 + $0x340] sm:$0xff]  ;;  %3189 = vmatprep.subr.bf16.mxu0 %v5968_v23  ;;  %v6095_v30 = vcombine.low %v325_v19, %v329_v20 }
  0x65   :  { %v193_v26 = vld [vmem:[#allocation7 + $0x360] sm:$0xff]  ;;  %3190 = vmatpush2.bf16.msra.mxu0 %v5967_v29 }
  0x66   :  { %v317_v27 = vld [vmem:[#allocation7 + $0x740] sm:$0xff]  ;;  %v5960_v31 = vcombine.high %v189_v25, %v193_v26  ;;  %3230 = vmatprep.subr.bf16.mxu1 %v6096_v24  ;;  %v5959_v37 = vcombine.low %v189_v25, %v193_v26 }
  0x67   :  { %v321_v28 = vld [vmem:[#allocation7 + $0x760] sm:$0xff]  ;;  %3231 = vmatpush2.bf16.msra.mxu1 %v6095_v30 }
  0x68   :  { %v6088_v32 = vcombine.high %v317_v27, %v321_v28  ;;  %v181_v33 = vld [vmem:[#allocation7 + $0x300] sm:$0xff]  ;;  %3191 = vmatprep.subr.bf16.mxu0 %v5960_v31  ;;  %v6087_v38 = vcombine.low %v317_v27, %v321_v28  ;;  %v6858_v28 = vrot.slane %v602_v18, %v6827_v53  ;;  %v6862_v31 = vcombine.high %v6855_v22, %v6855_v22 }
  0x69   :  { %v185_v34 = vld [vmem:[#allocation7 + $0x320] sm:$0xff]  ;;  %3192 = vmatpush2.bf16.msra.mxu0 %v5959_v37 }
  0x6a   :  { %v309_v35 = vld [vmem:[#allocation7 + $0x700] sm:$0xff]  ;;  %v5952_v39 = vcombine.high %v181_v33, %v185_v34  ;;  %3232 = vmatprep.subr.bf16.mxu1 %v6088_v32  ;;  %v5951_v46 = vcombine.low %v181_v33, %v185_v34  ;;  %v6866_v37 = vcombine.high %v6858_v28, %v6858_v28 }
  0x6b   :  { %v313_v36 = vld [vmem:[#allocation7 + $0x720] sm:$0xff]  ;;  %3233 = vmatpush2.bf16.msra.mxu1 %v6087_v38 }
  0x6c   :  { %v6080_v40 = vcombine.high %v309_v35, %v313_v36  ;;  %v173_v41 = vld [vmem:[#allocation7 + $0x2c0] sm:$0xff]  ;;  %3193 = vmatprep.subr.bf16.mxu0 %v5952_v39  ;;  %v6079_v47 = vcombine.low %v309_v35, %v313_v36 }
  0x6d   :  { %v177_v42 = vld [vmem:[#allocation7 + $0x2e0] sm:$0xff]  ;;  %3194 = vmatpush2.bf16.msra.mxu0 %v5951_v46 }
  0x6e   :  { %v301_v43 = vld [vmem:[#allocation7 + $0x6c0] sm:$0xff]  ;;  %v5944_v48 = vcombine.high %v173_v41, %v177_v42  ;;  %3234 = vmatprep.subr.bf16.mxu1 %v6080_v40  ;;  %v5943_v55 = vcombine.low %v173_v41, %v177_v42 }
  0x6f   :  { %v305_v45 = vld [vmem:[#allocation7 + $0x6e0] sm:$0xff]  ;;  %3235 = vmatpush2.bf16.msra.mxu1 %v6079_v47 }
  0x70   :  { %v6072_v49 = vcombine.high %v301_v43, %v305_v45  ;;  %v165_v50 = vld [vmem:[#allocation7 + $0x280] sm:$0xff]  ;;  %3195 = vmatprep.subr.bf16.mxu0 %v5944_v48  ;;  %v6071_v56 = vcombine.low %v301_v43, %v305_v45 }
  0x71   :  { %v169_v51 = vld [vmem:[#allocation7 + $0x2a0] sm:$0xff]  ;;  %3196 = vmatpush2.bf16.msra.mxu0 %v5943_v55 }
  0x72   :  { %v293_v52 = vld [vmem:[#allocation7 + $0x680] sm:$0xff]  ;;  %v5936_v57 = vcombine.high %v165_v50, %v169_v51  ;;  %3236 = vmatprep.subr.bf16.mxu1 %v6072_v49  ;;  %v5935_v2 = vcombine.low %v165_v50, %v169_v51 }
  0x73   :  { %v297_v54 = vld [vmem:[#allocation7 + $0x6a0] sm:$0xff]  ;;  %3237 = vmatpush2.bf16.msra.mxu1 %v6071_v56 }
  0x74   :  { %v6064_v58 = vcombine.high %v293_v52, %v297_v54  ;;  %v157_v60 = vld [vmem:[#allocation7 + $0x240] sm:$0xff]  ;;  %3197 = vmatprep.subr.bf16.mxu0 %v5936_v57  ;;  %v6063_v3 = vcombine.low %v293_v52, %v297_v54 }
  0x75   :  { %v161_v61 = vld [vmem:[#allocation7 + $0x260] sm:$0xff]  ;;  %3198 = vmatpush2.bf16.msra.mxu0 %v5935_v2 }
  0x76   :  { %v285_v0 = vld [vmem:[#allocation7 + $0x640] sm:$0xff]  ;;  %v5928_v4 = vcombine.high %v157_v60, %v161_v61  ;;  %3238 = vmatprep.subr.bf16.mxu1 %v6064_v58  ;;  %v5927_v12 = vcombine.low %v157_v60, %v161_v61 }
  0x77   :  { %v289_v1 = vld [vmem:[#allocation7 + $0x660] sm:$0xff]  ;;  %3239 = vmatpush2.bf16.msra.mxu1 %v6063_v3 }
  0x78   :  { %v6056_v5 = vcombine.high %v285_v0, %v289_v1  ;;  %v149_v6 = vld [vmem:[#allocation7 + $0x200] sm:$0xff]  ;;  %3199 = vmatprep.subr.bf16.mxu0 %v5928_v4  ;;  %v6055_v59 = vcombine.low %v285_v0, %v289_v1 }
  0x79   :  { %v153_v7 = vld [vmem:[#allocation7 + $0x220] sm:$0xff]  ;;  %3200 = vmatpush2.bf16.msra.mxu0 %v5927_v12 }
  0x7a   :  { %v277_v10 = vld [vmem:[#allocation7 + $0x600] sm:$0xff]  ;;  %v5920_v14 = vcombine.high %v149_v6, %v153_v7  ;;  %3240 = vmatprep.subr.bf16.mxu1 %v6056_v5  ;;  %v5919_v21 = vcombine.low %v149_v6, %v153_v7 }
  0x7b   :  { %v281_v11 = vld [vmem:[#allocation7 + $0x620] sm:$0xff]  ;;  %3241 = vmatpush2.bf16.msra.mxu1 %v6055_v59 }
  0x7c   :  { %v6048_v15 = vcombine.high %v277_v10, %v281_v11  ;;  %v397_v16 = vld [vmem:[#allocation7 + $0x9c0] sm:$0xff]  ;;  %3201 = vmatprep.subr.bf16.mxu0 %v5920_v14  ;;  %v6047_v23 = vcombine.low %v277_v10, %v281_v11 }
  0x7d   :  { %v401_v17 = vld [vmem:[#allocation7 + $0x9e0] sm:$0xff]  ;;  %3202 = vmatpush2.bf16.msra.mxu0 %v5919_v21 }
  0x7e   :  { %v525_v19 = vld [vmem:[#allocation7 + $0xdc0] sm:$0xff]  ;;  %v6168_v24 = vcombine.high %v397_v16, %v401_v17  ;;  %3242 = vmatprep.subr.bf16.mxu1 %v6048_v15  ;;  %v6167_v63 = vcombine.low %v397_v16, %v401_v17 }
  0x7f   :  { %v529_v20 = vld [vmem:[#allocation7 + $0xde0] sm:$0xff]  ;;  %3243 = vmatpush2.bf16.msra.mxu1 %v6047_v23 }
  0x80   :  { %v6296_v25 = vcombine.high %v525_v19, %v529_v20  ;;  %v389_v26 = vld [vmem:[#allocation7 + $0x980] sm:$0xff]  ;;  %3253 = vmatprep.subr.bf16.mxu0 %v6168_v24  ;;  %v6295_v32 = vcombine.low %v525_v19, %v529_v20  ;;  %3204 = vmatmul.mubr.bf16.vlgmr.msra.gmra.mxu0 %v6855_v22 }
  0x81   :  { %v393_v27 = vld [vmem:[#allocation7 + $0x9a0] sm:$0xff]  ;;  %3254 = vmatpush1.bf16.msra.mxu0 %v6167_v63  ;;  %3285 = vmatprep.mubr.bf16.mxu0 %v6858_v28 }
  0x82   :  { %v517_v29 = vld [vmem:[#allocation7 + $0xd80] sm:$0xff]  ;;  %v6160_v33 = vcombine.high %v389_v26, %v393_v27  ;;  %3294 = vmatprep.subr.bf16.mxu1 %v6296_v25  ;;  %3245 = vmatmul.mubr.bf16.vlgmr.msra.gmra.mxu1 %v6862_v31  ;;  %v6159_v40 = vcombine.low %v389_v26, %v393_v27 }
  0x83   :  { %v521_v30 = vld [vmem:[#allocation7 + $0xda0] sm:$0xff]  ;;  %3295 = vmatpush1.bf16.msra.mxu1 %v6295_v32  ;;  %6360 = vmatprep.mubr.msk.bf16.mxu1 %vm3142_vm0, %v6866_v37 }
  0x84   :  { %v6288_v34 = vcombine.high %v517_v29, %v521_v30  ;;  %v381_v35 = vld [vmem:[#allocation7 + $0x940] sm:$0xff]  ;;  %3255 = vmatprep.subr.bf16.mxu0 %v6160_v33  ;;  %v6287_v41 = vcombine.low %v517_v29, %v521_v30 }
  0x85   :  { %v385_v36 = vld [vmem:[#allocation7 + $0x960] sm:$0xff]  ;;  %3256 = vmatpush1.bf16.msra.mxu0 %v6159_v40 }
  0x86   :  { %v509_v38 = vld [vmem:[#allocation7 + $0xd40] sm:$0xff]  ;;  %v6152_v42 = vcombine.high %v381_v35, %v385_v36  ;;  %3296 = vmatprep.subr.bf16.mxu1 %v6288_v34  ;;  %v6151_v49 = vcombine.low %v381_v35, %v385_v36 }
  0x87   :  { %v513_v39 = vld [vmem:[#allocation7 + $0xd60] sm:$0xff]  ;;  %3297 = vmatpush1.bf16.msra.mxu1 %v6287_v41 }
  0x88   :  { %v6280_v43 = vcombine.high %v509_v38, %v513_v39  ;;  %v373_v45 = vld [vmem:[#allocation7 + $0x900] sm:$0xff]  ;;  %3257 = vmatprep.subr.bf16.mxu0 %v6152_v42  ;;  %v6279_v50 = vcombine.low %v509_v38, %v513_v39 }
  0x89   :  { %v377_v46 = vld [vmem:[#allocation7 + $0x920] sm:$0xff]  ;;  %3258 = vmatpush1.bf16.msra.mxu0 %v6151_v49 }
  0x8a   :  { %v501_v47 = vld [vmem:[#allocation7 + $0xd00] sm:$0xff]  ;;  %v6144_v51 = vcombine.high %v373_v45, %v377_v46  ;;  %3298 = vmatprep.subr.bf16.mxu1 %v6280_v43  ;;  %v6143_v58 = vcombine.low %v373_v45, %v377_v46 }
  0x8b   :  { %v505_v48 = vld [vmem:[#allocation7 + $0xd20] sm:$0xff]  ;;  %3299 = vmatpush1.bf16.msra.mxu1 %v6279_v50 }
  0x8c   :  { %v6272_v52 = vcombine.high %v501_v47, %v505_v48  ;;  %v365_v54 = vld [vmem:[#allocation7 + $0x8c0] sm:$0xff]  ;;  %3259 = vmatprep.subr.bf16.mxu0 %v6144_v51  ;;  %v6271_v60 = vcombine.low %v501_v47, %v505_v48 }
  0x8d   :  { %v369_v55 = vld [vmem:[#allocation7 + $0x8e0] sm:$0xff]  ;;  %3260 = vmatpush1.bf16.msra.mxu0 %v6143_v58 }
  0x8e   :  { %v493_v56 = vld [vmem:[#allocation7 + $0xcc0] sm:$0xff]  ;;  %v6136_v61 = vcombine.high %v365_v54, %v369_v55  ;;  %3300 = vmatprep.subr.bf16.mxu1 %v6272_v52  ;;  %v6135_v4 = vcombine.low %v365_v54, %v369_v55 }
  0x8f   :  { %v497_v57 = vld [vmem:[#allocation7 + $0xce0] sm:$0xff]  ;;  %3301 = vmatpush1.bf16.msra.mxu1 %v6271_v60 }
  0x90   :  { %v6264_v62 = vcombine.high %v493_v56, %v497_v57  ;;  %v357_v0 = vld [vmem:[#allocation7 + $0x880] sm:$0xff]  ;;  %3261 = vmatprep.subr.bf16.mxu0 %v6136_v61  ;;  %v6263_v5 = vcombine.low %v493_v56, %v497_v57 }
  0x91   :  { %v361_v1 = vld [vmem:[#allocation7 + $0x8a0] sm:$0xff]  ;;  %3262 = vmatpush1.bf16.msra.mxu0 %v6135_v4 }
  0x92   :  { %v485_v2 = vld [vmem:[#allocation7 + $0xc80] sm:$0xff]  ;;  %v6128_v6 = vcombine.high %v357_v0, %v361_v1  ;;  %3302 = vmatprep.subr.bf16.mxu1 %v6264_v62  ;;  %v6127_v14 = vcombine.low %v357_v0, %v361_v1 }
  0x93   :  { %v489_v3 = vld [vmem:[#allocation7 + $0xca0] sm:$0xff]  ;;  %3303 = vmatpush1.bf16.msra.mxu1 %v6263_v5 }
  0x94   :  { %v6256_v7 = vcombine.high %v485_v2, %v489_v3  ;;  %v349_v10 = vld [vmem:[#allocation7 + $0x840] sm:$0xff]  ;;  %3263 = vmatprep.subr.bf16.mxu0 %v6128_v6  ;;  %v6255_v15 = vcombine.low %v485_v2, %v489_v3 }
  0x95   :  { %v353_v11 = vld [vmem:[#allocation7 + $0x860] sm:$0xff]  ;;  %3264 = vmatpush1.bf16.msra.mxu0 %v6127_v14 }
  0x96   :  { %v477_v12 = vld [vmem:[#allocation7 + $0xc40] sm:$0xff]  ;;  %v6120_v16 = vcombine.high %v349_v10, %v353_v11  ;;  %3304 = vmatprep.subr.bf16.mxu1 %v6256_v7  ;;  %v6119_v23 = vcombine.low %v349_v10, %v353_v11 }
  0x97   :  { %v481_v59 = vld [vmem:[#allocation7 + $0xc60] sm:$0xff]  ;;  %3305 = vmatpush1.bf16.msra.mxu1 %v6255_v15 }
  0x98   :  { %v6248_v17 = vcombine.high %v477_v12, %v481_v59  ;;  %v341_v18 = vld [vmem:[#allocation7 + $0x800] sm:$0xff]  ;;  %3265 = vmatprep.subr.bf16.mxu0 %v6120_v16  ;;  %v6247_v24 = vcombine.low %v477_v12, %v481_v59 }
  0x99   :  { %v345_v19 = vld [vmem:[#allocation7 + $0x820] sm:$0xff]  ;;  %3266 = vmatpush1.bf16.msra.mxu0 %v6119_v23 }
  0x9a   :  { %v469_v20 = vld [vmem:[#allocation7 + $0xc00] sm:$0xff]  ;;  %v6112_v25 = vcombine.high %v341_v18, %v345_v19  ;;  %3306 = vmatprep.subr.bf16.mxu1 %v6248_v17  ;;  %v6111_v63 = vcombine.low %v341_v18, %v345_v19 }
  0x9b   :  { %v473_v21 = vld [vmem:[#allocation7 + $0xc20] sm:$0xff]  ;;  %3307 = vmatpush1.bf16.msra.mxu1 %v6247_v24 }
  0x9c   :  { %v6240_v26 = vcombine.high %v469_v20, %v473_v21  ;;  %v461_v27 = vld [vmem:[#allocation7 + $0xbc0] sm:$0xff]  ;;  %3267 = vmatprep.subr.bf16.mxu0 %v6112_v25  ;;  %v6239_v32 = vcombine.low %v469_v20, %v473_v21 }
  0x9d   :  { %v465_v29 = vld [vmem:[#allocation7 + $0xbe0] sm:$0xff]  ;;  %3268 = vmatpush1.bf16.msra.mxu0 %v6111_v63  ;;  %v142_v63 = vld [vmem:[#allocation7 + $0x1c8] sm:$0xff] }
  0x9e   :  { %v581_v30 = vld [vmem:[#allocation7 + $0xf80] sm:$0xff]  ;;  %v6232_v33 = vcombine.high %v461_v27, %v465_v29  ;;  %3308 = vmatprep.subr.bf16.mxu1 %v6240_v26  ;;  %v6231_v41 = vcombine.low %v461_v27, %v465_v29 }
  0x9f   :  { %v6352_v34 = vcombine.high %v581_v30, %v581_v30  ;;  %v6351_v35 = vcombine.low %v581_v30, %v581_v30  ;;  %v453_v36 = vld [vmem:[#allocation7 + $0xb80] sm:$0xff]  ;;  %3309 = vmatpush1.bf16.msra.mxu1 %v6239_v32  ;;  %v146_v32 = vld [vmem:[#allocation7 + $0x1e8] sm:$0xff] }
  0xa0   :  { %v457_v38 = vld [vmem:[#allocation7 + $0xba0] sm:$0xff]  ;;  %3269 = vmatprep.subr.bf16.mxu0 %v6232_v33 }
  0xa1   :  { %v573_v39 = vld [vmem:[#allocation7 + $0xf40] sm:$0xff]  ;;  %v6224_v42 = vcombine.high %v453_v36, %v457_v38  ;;  %6359 = vmatprep.subr.msk.bf16.mxu1 %vm3146_vm1, %v6352_v34  ;;  %v3148_v43 = vsel %vm3146_vm1, %v6351_v35, 0  ;;  %3270 = vmatpush2.bf16.msra.mxu0 %v6231_v41  ;;  %v6223_v50 = vcombine.low %v453_v36, %v457_v38  ;;  %v6877_v34 = vrot.slane %v6849_v8, %v6827_v53  ;;  %v134_v41 = vld [vmem:[#allocation7 + $0x188] sm:$0xff] }
  0xa2   :  { %v577_v40 = vld [vmem:[#allocation7 + $0xf60] sm:$0xff]  ;;  %v5914_v38 = vcombine.high %v142_v63, %v146_v32  ;;  %v5913_v8 = vcombine.low %v142_v63, %v146_v32  ;;  %v222_v63 = vld [vmem:[#allocation7 + $0x448] sm:$0xff] }
  0xa3   :  { %v6344_v45 = vcombine.high %v573_v39, %v577_v40  ;;  %v445_v46 = vld [vmem:[#allocation7 + $0xb40] sm:$0xff]  ;;  %3313 = vmatpush2.bf16.msra.mxu1 %v3148_v43  ;;  %3271 = vmatprep.subr.bf16.mxu0 %v6224_v42  ;;  %v6343_v51 = vcombine.low %v573_v39, %v577_v40  ;;  %v270_v39 = vld [vmem:[#allocation7 + $0x5c8] sm:$0xff] }
  0xa4   :  { %v449_v47 = vld [vmem:[#allocation7 + $0xb60] sm:$0xff]  ;;  %v274_v40 = vld [vmem:[#allocation7 + $0x5e8] sm:$0xff] }
  0xa5   :  { %v565_v48 = vld [vmem:[#allocation7 + $0xf00] sm:$0xff]  ;;  %v6216_v52 = vcombine.high %v445_v46, %v449_v47  ;;  %3314 = vmatprep.subr.bf16.mxu1 %v6344_v45  ;;  %3272 = vmatpush2.bf16.msra.mxu0 %v6223_v50  ;;  %v6215_v60 = vcombine.low %v445_v46, %v449_v47  ;;  %v138_v42 = vld [vmem:[#allocation7 + $0x1a8] sm:$0xff]  ;;  %v6881_v45 = vcombine.high %v6877_v34, %v6877_v34 }
  0xa6   :  { %v569_v49 = vld [vmem:[#allocation7 + $0xf20] sm:$0xff]  ;;  %v6042_v46 = vcombine.high %v270_v39, %v274_v40  ;;  %v5906_v47 = vcombine.high %v134_v41, %v138_v42  ;;  %v126_v50 = vld [vmem:[#allocation7 + $0x148] sm:$0xff] }
  0xa7   :  { %v6336_v54 = vcombine.high %v565_v48, %v569_v49  ;;  %v437_v55 = vld [vmem:[#allocation7 + $0xb00] sm:$0xff]  ;;  %3315 = vmatpush2.bf16.msra.mxu1 %v6343_v51  ;;  %3273 = vmatprep.subr.bf16.mxu0 %v6216_v52  ;;  %v6335_v61 = vcombine.low %v565_v48, %v569_v49  ;;  %v262_v48 = vld [vmem:[#allocation7 + $0x588] sm:$0xff]  ;;  %v6041_v52 = vcombine.low %v270_v39, %v274_v40 }
  0xa8   :  { %v441_v56 = vld [vmem:[#allocation7 + $0xb20] sm:$0xff]  ;;  %v266_v49 = vld [vmem:[#allocation7 + $0x5a8] sm:$0xff] }
  0xa9   :  { %v557_v57 = vld [vmem:[#allocation7 + $0xec0] sm:$0xff]  ;;  %v6208_v62 = vcombine.high %v437_v55, %v441_v56  ;;  %3316 = vmatprep.subr.bf16.mxu1 %v6336_v54  ;;  %3274 = vmatpush2.bf16.msra.mxu0 %v6215_v60  ;;  %v6207_v5 = vcombine.low %v437_v55, %v441_v56  ;;  %v130_v51 = vld [vmem:[#allocation7 + $0x168] sm:$0xff]  ;;  %v5905_v54 = vcombine.low %v134_v41, %v138_v42 }
  0xaa   :  { %v561_v58 = vld [vmem:[#allocation7 + $0xee0] sm:$0xff]  ;;  %v6034_v55 = vcombine.high %v262_v48, %v266_v49  ;;  %v5898_v56 = vcombine.high %v126_v50, %v130_v51  ;;  %v118_v60 = vld [vmem:[#allocation7 + $0x108] sm:$0xff] }
  0xab   :  { %v6328_v0 = vcombine.high %v557_v57, %v561_v58  ;;  %v429_v1 = vld [vmem:[#allocation7 + $0xac0] sm:$0xff]  ;;  %3317 = vmatpush2.bf16.msra.mxu1 %v6335_v61  ;;  %3275 = vmatprep.subr.bf16.mxu0 %v6208_v62  ;;  %v6327_v6 = vcombine.low %v557_v57, %v561_v58  ;;  %v254_v57 = vld [vmem:[#allocation7 + $0x548] sm:$0xff]  ;;  %v6033_v62 = vcombine.low %v262_v48, %v266_v49 }
  0xac   :  { %v433_v2 = vld [vmem:[#allocation7 + $0xae0] sm:$0xff]  ;;  %v258_v58 = vld [vmem:[#allocation7 + $0x568] sm:$0xff] }
  0xad   :  { %v549_v3 = vld [vmem:[#allocation7 + $0xe80] sm:$0xff]  ;;  %v6200_v7 = vcombine.high %v429_v1, %v433_v2  ;;  %3318 = vmatprep.subr.bf16.mxu1 %v6328_v0  ;;  %3276 = vmatpush2.bf16.msra.mxu0 %v6207_v5  ;;  %v6199_v15 = vcombine.low %v429_v1, %v433_v2  ;;  %v122_v61 = vld [vmem:[#allocation7 + $0x128] sm:$0xff]  ;;  %v5897_v0 = vcombine.low %v126_v50, %v130_v51 }
  0xae   :  { %v553_v4 = vld [vmem:[#allocation7 + $0xea0] sm:$0xff]  ;;  %v6026_v1 = vcombine.high %v254_v57, %v258_v58  ;;  %v5890_v2 = vcombine.high %v118_v60, %v122_v61  ;;  %v110_v5 = vld [vmem:[#allocation7 + $0xc8] sm:$0xff] }
  0xaf   :  { %v6320_v10 = vcombine.high %v549_v3, %v553_v4  ;;  %v421_v11 = vld [vmem:[#allocation7 + $0xa80] sm:$0xff]  ;;  %3319 = vmatpush2.bf16.msra.mxu1 %v6327_v6  ;;  %3277 = vmatprep.subr.bf16.mxu0 %v6200_v7  ;;  %v6319_v16 = vcombine.low %v549_v3, %v553_v4  ;;  %v246_v3 = vld [vmem:[#allocation7 + $0x508] sm:$0xff]  ;;  %v6025_v7 = vcombine.low %v254_v57, %v258_v58 }
  0xb0   :  { %v425_v12 = vld [vmem:[#allocation7 + $0xaa0] sm:$0xff]  ;;  %v250_v4 = vld [vmem:[#allocation7 + $0x528] sm:$0xff] }
  0xb1   :  { %v541_v59 = vld [vmem:[#allocation7 + $0xe40] sm:$0xff]  ;;  %v6192_v17 = vcombine.high %v421_v11, %v425_v12  ;;  %3320 = vmatprep.subr.bf16.mxu1 %v6320_v10  ;;  %3278 = vmatpush2.bf16.msra.mxu0 %v6199_v15  ;;  %v6191_v24 = vcombine.low %v421_v11, %v425_v12  ;;  %v114_v6 = vld [vmem:[#allocation7 + $0xe8] sm:$0xff]  ;;  %v5889_v10 = vcombine.low %v118_v60, %v122_v61 }
  0xb2   :  { %v545_v14 = vld [vmem:[#allocation7 + $0xe60] sm:$0xff]  ;;  %v6018_v11 = vcombine.high %v246_v3, %v250_v4  ;;  %v5882_v12 = vcombine.high %v110_v5, %v114_v6  ;;  %v102_v15 = vld [vmem:[#allocation7 + $0x88] sm:$0xff] }
  0xb3   :  { %v6312_v18 = vcombine.high %v541_v59, %v545_v14  ;;  %v413_v19 = vld [vmem:[#allocation7 + $0xa40] sm:$0xff]  ;;  %3321 = vmatpush2.bf16.msra.mxu1 %v6319_v16  ;;  %3279 = vmatprep.subr.bf16.mxu0 %v6192_v17  ;;  %v6311_v25 = vcombine.low %v541_v59, %v545_v14  ;;  %v238_v59 = vld [vmem:[#allocation7 + $0x4c8] sm:$0xff]  ;;  %v6017_v17 = vcombine.low %v246_v3, %v250_v4 }
  0xb4   :  { %v417_v20 = vld [vmem:[#allocation7 + $0xa60] sm:$0xff]  ;;  %v242_v14 = vld [vmem:[#allocation7 + $0x4e8] sm:$0xff] }
  0xb5   :  { %v533_v21 = vld [vmem:[#allocation7 + $0xe00] sm:$0xff]  ;;  %v6184_v26 = vcombine.high %v413_v19, %v417_v20  ;;  %3322 = vmatprep.subr.bf16.mxu1 %v6312_v18  ;;  %3280 = vmatpush2.bf16.msra.mxu0 %v6191_v24  ;;  %v6183_v33 = vcombine.low %v413_v19, %v417_v20  ;;  %v106_v16 = vld [vmem:[#allocation7 + $0xa8] sm:$0xff]  ;;  %v5881_v18 = vcombine.low %v110_v5, %v114_v6 }
  0xb6   :  { %v537_v23 = vld [vmem:[#allocation7 + $0xe20] sm:$0xff]  ;;  %v6010_v19 = vcombine.high %v238_v59, %v242_v14  ;;  %v5874_v20 = vcombine.high %v102_v15, %v106_v16  ;;  %v94_v24 = vld [vmem:[#allocation7 + $0x48] sm:$0xff] }
  0xb7   :  { %v6304_v27 = vcombine.high %v533_v21, %v537_v23  ;;  %v405_v29 = vld [vmem:[#allocation7 + $0xa00] sm:$0xff]  ;;  %3323 = vmatpush2.bf16.msra.mxu1 %v6311_v25  ;;  %3281 = vmatprep.subr.bf16.mxu0 %v6184_v26  ;;  %v6303_v35 = vcombine.low %v533_v21, %v537_v23  ;;  %v230_v21 = vld [vmem:[#allocation7 + $0x488] sm:$0xff]  ;;  %v6009_v26 = vcombine.low %v238_v59, %v242_v14 }
  0xb8   :  { %v409_v30 = vld [vmem:[#allocation7 + $0xa20] sm:$0xff]  ;;  %v234_v23 = vld [vmem:[#allocation7 + $0x4a8] sm:$0xff] }
  0xb9   :  { %v6176_v36 = vcombine.high %v405_v29, %v409_v30  ;;  %3324 = vmatprep.subr.bf16.mxu1 %v6304_v27  ;;  %3282 = vmatpush2.bf16.msra.mxu0 %v6183_v33  ;;  %v6175_v43 = vcombine.low %v405_v29, %v409_v30  ;;  %v98_v25 = vld [vmem:[#allocation7 + $0x68] sm:$0xff]  ;;  %v5873_v27 = vcombine.low %v102_v15, %v106_v16 }
  0xba   :  { %v6002_v29 = vcombine.high %v230_v21, %v234_v23  ;;  %v5866_v30 = vcombine.high %v94_v24, %v98_v25  ;;  %v226_v32 = vld [vmem:[#allocation7 + $0x468] sm:$0xff] }
  0xbb   :  { %3325 = vmatpush2.bf16.msra.mxu1 %v6303_v35  ;;  %3283 = vmatprep.subr.bf16.mxu0 %v6176_v36  ;;  %v86_v33 = vld [vmem:[#allocation7 + $0x8] sm:$0xff]  ;;  %v6001_v36 = vcombine.low %v230_v21, %v234_v23  ;;  %v5994_v39 = vcombine.high %v222_v63, %v226_v32 }
  0xbc   :  { %3335 = vmatprep.subr.bf16.mxu1 %v5914_v38  ;;  %v90_v35 = vld [vmem:[#allocation7 + $0x28] sm:$0xff]  ;;  %v5865_v38 = vcombine.low %v94_v24, %v98_v25 }
  0xbd   :  { %3284 = vmatpush2.bf16.msra.mxu0 %v6175_v43  ;;  %v5858_v40 = vcombine.high %v86_v33, %v90_v35  ;;  %v214_v41 = vld [vmem:[#allocation7 + $0x408] sm:$0xff] }
  0xbe   :  { %3327 = vmatmul.mubr.bf16.vlgmr.msra.gmra.mxu1 %v6881_v45  ;;  %3376 = vmatprep.subr.bf16.mxu0 %v6042_v46  ;;  %v218_v42 = vld [vmem:[#allocation7 + $0x428] sm:$0xff]  ;;  %v5993_v46 = vcombine.low %v222_v63, %v226_v32 }
  0xbf   :  { %3336 = vmatpush1.bf16.msra.mxu1 %v5913_v8  ;;  %3367 = vmatprep.mubr.bf16.mxu1 %v6838_v9  ;;  %v206_v43 = vld [vmem:[#allocation7 + $0x3c8] sm:$0xff]  ;;  %v5986_v48 = vcombine.high %v214_v41, %v218_v42 }
  0xc0   :  { %3337 = vmatprep.subr.bf16.mxu1 %v5906_v47  ;;  %3286 = vmatmul.mubr.bf16.vlgmr.msra.gmra.mxu0 %v6877_v34  ;;  %v210_v8 = vld [vmem:[#allocation7 + $0x3e8] sm:$0xff]  ;;  %v5857_v47 = vcombine.low %v86_v33, %v90_v35 }
  0xc1   :  { %3377 = vmatpush1.bf16.msra.mxu0 %v6041_v52  ;;  %3408 = vmatprep.mubr.bf16.mxu0 %v6843_v13  ;;  %v5978_v49 = vcombine.high %v206_v43, %v210_v8  ;;  %v334_v50 = vld [vmem:[#allocation7 + $0x7c8] sm:$0xff] }
  0xc2   :  { %3378 = vmatprep.subr.bf16.mxu0 %v6034_v55  ;;  %v338_v51 = vld [vmem:[#allocation7 + $0x7e8] sm:$0xff]  ;;  %v5985_v55 = vcombine.low %v214_v41, %v218_v42 }
  0xc3   :  { %3338 = vmatpush1.bf16.msra.mxu1 %v5905_v54  ;;  %v198_v52 = vld [vmem:[#allocation7 + $0x388] sm:$0xff]  ;;  %v6106_v57 = vcombine.high %v334_v50, %v338_v51 }
  0xc4   :  { %3339 = vmatprep.subr.bf16.mxu1 %v5898_v56  ;;  %v202_v54 = vld [vmem:[#allocation7 + $0x3a8] sm:$0xff]  ;;  %v5977_v56 = vcombine.low %v206_v43, %v210_v8 }
  0xc5   :  { %3379 = vmatpush1.bf16.msra.mxu0 %v6033_v62  ;;  %v5970_v58 = vcombine.high %v198_v52, %v202_v54  ;;  %v326_v60 = vld [vmem:[#allocation7 + $0x788] sm:$0xff] }
  0xc6   :  { %3380 = vmatprep.subr.bf16.mxu0 %v6026_v1  ;;  %v330_v61 = vld [vmem:[#allocation7 + $0x7a8] sm:$0xff]  ;;  %v6105_v1 = vcombine.low %v334_v50, %v338_v51 }
  0xc7   :  { %3340 = vmatpush1.bf16.msra.mxu1 %v5897_v0  ;;  %v190_v62 = vld [vmem:[#allocation7 + $0x348] sm:$0xff]  ;;  %v6098_v3 = vcombine.high %v326_v60, %v330_v61 }
  0xc8   :  { %3341 = vmatprep.subr.bf16.mxu1 %v5890_v2  ;;  %v194_v0 = vld [vmem:[#allocation7 + $0x368] sm:$0xff]  ;;  %v5969_v2 = vcombine.low %v198_v52, %v202_v54 }
  0xc9   :  { %3381 = vmatpush1.bf16.msra.mxu0 %v6025_v7  ;;  %v5962_v4 = vcombine.high %v190_v62, %v194_v0  ;;  %v318_v5 = vld [vmem:[#allocation7 + $0x748] sm:$0xff] }
  0xca   :  { %3382 = vmatprep.subr.bf16.mxu0 %v6018_v11  ;;  %v322_v6 = vld [vmem:[#allocation7 + $0x768] sm:$0xff]  ;;  %v6097_v11 = vcombine.low %v326_v60, %v330_v61 }
  0xcb   :  { %3342 = vmatpush1.bf16.msra.mxu1 %v5889_v10  ;;  %v182_v7 = vld [vmem:[#allocation7 + $0x308] sm:$0xff]  ;;  %v6090_v59 = vcombine.high %v318_v5, %v322_v6 }
  0xcc   :  { %3343 = vmatprep.subr.bf16.mxu1 %v5882_v12  ;;  %v186_v10 = vld [vmem:[#allocation7 + $0x328] sm:$0xff]  ;;  %v5961_v12 = vcombine.low %v190_v62, %v194_v0 }
  0xcd   :  { %3383 = vmatpush1.bf16.msra.mxu0 %v6017_v17  ;;  %v5954_v14 = vcombine.high %v182_v7, %v186_v10  ;;  %v310_v15 = vld [vmem:[#allocation7 + $0x708] sm:$0xff] }
  0xce   :  { %3384 = vmatprep.subr.bf16.mxu0 %v6010_v19  ;;  %v314_v16 = vld [vmem:[#allocation7 + $0x728] sm:$0xff]  ;;  %v6089_v19 = vcombine.low %v318_v5, %v322_v6 }
  0xcf   :  { %3344 = vmatpush1.bf16.msra.mxu1 %v5881_v18  ;;  %v174_v17 = vld [vmem:[#allocation7 + $0x2c8] sm:$0xff]  ;;  %v6082_v21 = vcombine.high %v310_v15, %v314_v16 }
  0xd0   :  { %3345 = vmatprep.subr.bf16.mxu1 %v5874_v20  ;;  %v178_v18 = vld [vmem:[#allocation7 + $0x2e8] sm:$0xff]  ;;  %v5953_v20 = vcombine.low %v182_v7, %v186_v10 }
  0xd1   :  { %3385 = vmatpush1.bf16.msra.mxu0 %v6009_v26  ;;  %v5946_v23 = vcombine.high %v174_v17, %v178_v18  ;;  %v302_v24 = vld [vmem:[#allocation7 + $0x6c8] sm:$0xff] }
  0xd2   :  { %3386 = vmatprep.subr.bf16.mxu0 %v6002_v29  ;;  %v306_v25 = vld [vmem:[#allocation7 + $0x6e8] sm:$0xff]  ;;  %v6081_v29 = vcombine.low %v310_v15, %v314_v16 }
  0xd3   :  { %3346 = vmatpush1.bf16.msra.mxu1 %v5873_v27  ;;  %v166_v26 = vld [vmem:[#allocation7 + $0x288] sm:$0xff]  ;;  %v6074_v63 = vcombine.high %v302_v24, %v306_v25 }
  0xd4   :  { %3347 = vmatprep.subr.bf16.mxu1 %v5866_v30  ;;  %v170_v27 = vld [vmem:[#allocation7 + $0x2a8] sm:$0xff]  ;;  %v5945_v30 = vcombine.low %v174_v17, %v178_v18 }
  0xd5   :  { %3387 = vmatpush1.bf16.msra.mxu0 %v6001_v36  ;;  %v5938_v32 = vcombine.high %v166_v26, %v170_v27  ;;  %v294_v33 = vld [vmem:[#allocation7 + $0x688] sm:$0xff] }
  0xd6   :  { %3388 = vmatprep.subr.bf16.mxu0 %v5994_v39  ;;  %v298_v35 = vld [vmem:[#allocation7 + $0x6a8] sm:$0xff]  ;;  %v6073_v39 = vcombine.low %v302_v24, %v306_v25 }
  0xd7   :  { %3348 = vmatpush1.bf16.msra.mxu1 %v5865_v38  ;;  %v158_v36 = vld [vmem:[#allocation7 + $0x248] sm:$0xff]  ;;  %v6066_v41 = vcombine.high %v294_v33, %v298_v35 }
  0xd8   :  { %3349 = vmatprep.subr.bf16.mxu1 %v5858_v40  ;;  %v162_v38 = vld [vmem:[#allocation7 + $0x268] sm:$0xff]  ;;  %v5937_v40 = vcombine.low %v166_v26, %v170_v27 }
  0xd9   :  { %3389 = vmatpush1.bf16.msra.mxu0 %v5993_v46  ;;  %v5930_v42 = vcombine.high %v158_v36, %v162_v38  ;;  %v286_v43 = vld [vmem:[#allocation7 + $0x648] sm:$0xff] }
  0xda   :  { %3390 = vmatprep.subr.bf16.mxu0 %v5986_v48  ;;  %v290_v8 = vld [vmem:[#allocation7 + $0x668] sm:$0xff]  ;;  %v6065_v48 = vcombine.low %v294_v33, %v298_v35 }
  0xdb   :  { %3350 = vmatpush1.bf16.msra.mxu1 %v5857_v47  ;;  %v150_v46 = vld [vmem:[#allocation7 + $0x208] sm:$0xff]  ;;  %v6058_v50 = vcombine.high %v286_v43, %v290_v8 }
  0xdc   :  { %3351 = vmatprep.subr.bf16.mxu1 %v5978_v49  ;;  %v154_v47 = vld [vmem:[#allocation7 + $0x228] sm:$0xff]  ;;  %v5929_v49 = vcombine.low %v158_v36, %v162_v38 }
  0xdd   :  { %3391 = vmatpush1.bf16.msra.mxu0 %v5985_v55  ;;  %v5922_v51 = vcombine.high %v150_v46, %v154_v47  ;;  %v278_v52 = vld [vmem:[#allocation7 + $0x608] sm:$0xff] }
  0xde   :  { %3392 = vmatprep.subr.bf16.mxu0 %v6106_v57  ;;  %v282_v54 = vld [vmem:[#allocation7 + $0x628] sm:$0xff]  ;;  %v6057_v57 = vcombine.low %v286_v43, %v290_v8 }
  0xdf   :  { %3352 = vmatpush2.bf16.msra.mxu1 %v5977_v56  ;;  %v398_v55 = vld [vmem:[#allocation7 + $0x9c8] sm:$0xff]  ;;  %v6050_v60 = vcombine.high %v278_v52, %v282_v54 }
  0xe0   :  { %3353 = vmatprep.subr.bf16.mxu1 %v5970_v58  ;;  %v402_v56 = vld [vmem:[#allocation7 + $0x9e8] sm:$0xff]  ;;  %v5921_v58 = vcombine.low %v150_v46, %v154_v47 }
  0xe1   :  { %3393 = vmatpush2.bf16.msra.mxu0 %v6105_v1  ;;  %v6170_v61 = vcombine.high %v398_v55, %v402_v56  ;;  %v526_v62 = vld [vmem:[#allocation7 + $0xdc8] sm:$0xff] }
  0xe2   :  { %3394 = vmatprep.subr.bf16.mxu0 %v6098_v3  ;;  %v530_v0 = vld [vmem:[#allocation7 + $0xde8] sm:$0xff]  ;;  %v6049_v3 = vcombine.low %v278_v52, %v282_v54 }
  0xe3   :  { %3354 = vmatpush2.bf16.msra.mxu1 %v5969_v2  ;;  %v390_v1 = vld [vmem:[#allocation7 + $0x988] sm:$0xff]  ;;  %v6298_v5 = vcombine.high %v526_v62, %v530_v0 }
  0xe4   :  { %3355 = vmatprep.subr.bf16.mxu1 %v5962_v4  ;;  %v394_v2 = vld [vmem:[#allocation7 + $0x9a8] sm:$0xff]  ;;  %v6169_v4 = vcombine.low %v398_v55, %v402_v56 }
  0xe5   :  { %3395 = vmatpush2.bf16.msra.mxu0 %v6097_v11  ;;  %v6162_v6 = vcombine.high %v390_v1, %v394_v2  ;;  %v518_v7 = vld [vmem:[#allocation7 + $0xd88] sm:$0xff] }
  0xe6   :  { %3396 = vmatprep.subr.bf16.mxu0 %v6090_v59  ;;  %v522_v10 = vld [vmem:[#allocation7 + $0xda8] sm:$0xff]  ;;  %v6297_v59 = vcombine.low %v526_v62, %v530_v0 }
  0xe7   :  { %3356 = vmatpush2.bf16.msra.mxu1 %v5961_v12  ;;  %v382_v11 = vld [vmem:[#allocation7 + $0x948] sm:$0xff]  ;;  %v6290_v15 = vcombine.high %v518_v7, %v522_v10 }
  0xe8   :  { %3357 = vmatprep.subr.bf16.mxu1 %v5954_v14  ;;  %v386_v12 = vld [vmem:[#allocation7 + $0x968] sm:$0xff]  ;;  %v6161_v14 = vcombine.low %v390_v1, %v394_v2 }
  0xe9   :  { %3397 = vmatpush2.bf16.msra.mxu0 %v6089_v19  ;;  %v6154_v16 = vcombine.high %v382_v11, %v386_v12  ;;  %v510_v17 = vld [vmem:[#allocation7 + $0xd48] sm:$0xff] }
  0xea   :  { %3398 = vmatprep.subr.bf16.mxu0 %v6082_v21  ;;  %v514_v18 = vld [vmem:[#allocation7 + $0xd68] sm:$0xff]  ;;  %v6289_v21 = vcombine.low %v518_v7, %v522_v10 }
  0xeb   :  { %3358 = vmatpush2.bf16.msra.mxu1 %v5953_v20  ;;  %v374_v19 = vld [vmem:[#allocation7 + $0x908] sm:$0xff]  ;;  %v6282_v24 = vcombine.high %v510_v17, %v514_v18 }
  0xec   :  { %3359 = vmatprep.subr.bf16.mxu1 %v5946_v23  ;;  %v378_v20 = vld [vmem:[#allocation7 + $0x928] sm:$0xff]  ;;  %v6153_v23 = vcombine.low %v382_v11, %v386_v12 }
  0xed   :  { %3399 = vmatpush2.bf16.msra.mxu0 %v6081_v29  ;;  %v6146_v25 = vcombine.high %v374_v19, %v378_v20  ;;  %v502_v26 = vld [vmem:[#allocation7 + $0xd08] sm:$0xff] }
  0xee   :  { %3400 = vmatprep.subr.bf16.mxu0 %v6074_v63  ;;  %v506_v27 = vld [vmem:[#allocation7 + $0xd28] sm:$0xff]  ;;  %v6281_v63 = vcombine.low %v510_v17, %v514_v18 }
  0xef   :  { %3360 = vmatpush2.bf16.msra.mxu1 %v5945_v30  ;;  %v366_v29 = vld [vmem:[#allocation7 + $0x8c8] sm:$0xff]  ;;  %v6274_v33 = vcombine.high %v502_v26, %v506_v27 }
  0xf0   :  { %3361 = vmatprep.subr.bf16.mxu1 %v5938_v32  ;;  %v370_v30 = vld [vmem:[#allocation7 + $0x8e8] sm:$0xff]  ;;  %v6145_v32 = vcombine.low %v374_v19, %v378_v20 }
  0xf1   :  { %3401 = vmatpush2.bf16.msra.mxu0 %v6073_v39  ;;  %v6138_v35 = vcombine.high %v366_v29, %v370_v30  ;;  %v494_v36 = vld [vmem:[#allocation7 + $0xcc8] sm:$0xff] }
  0xf2   :  { %3402 = vmatprep.subr.bf16.mxu0 %v6066_v41  ;;  %v498_v38 = vld [vmem:[#allocation7 + $0xce8] sm:$0xff]  ;;  %v6273_v41 = vcombine.low %v502_v26, %v506_v27 }
  0xf3   :  { %3362 = vmatpush2.bf16.msra.mxu1 %v5937_v40  ;;  %v358_v39 = vld [vmem:[#allocation7 + $0x888] sm:$0xff]  ;;  %v6266_v43 = vcombine.high %v494_v36, %v498_v38 }
  0xf4   :  { %3363 = vmatprep.subr.bf16.mxu1 %v5930_v42  ;;  %v362_v40 = vld [vmem:[#allocation7 + $0x8a8] sm:$0xff]  ;;  %v6137_v42 = vcombine.low %v366_v29, %v370_v30 }
  0xf5   :  { %3403 = vmatpush2.bf16.msra.mxu0 %v6065_v48  ;;  %v6130_v8 = vcombine.high %v358_v39, %v362_v40  ;;  %v486_v46 = vld [vmem:[#allocation7 + $0xc88] sm:$0xff] }
  0xf6   :  { %3404 = vmatprep.subr.bf16.mxu0 %v6058_v50  ;;  %v490_v47 = vld [vmem:[#allocation7 + $0xca8] sm:$0xff]  ;;  %v6265_v50 = vcombine.low %v494_v36, %v498_v38 }
  0xf7   :  { %3364 = vmatpush2.bf16.msra.mxu1 %v5929_v49  ;;  %v350_v48 = vld [vmem:[#allocation7 + $0x848] sm:$0xff]  ;;  %v6258_v52 = vcombine.high %v486_v46, %v490_v47 }
  0xf8   :  { %3365 = vmatprep.subr.bf16.mxu1 %v5922_v51  ;;  %v354_v49 = vld [vmem:[#allocation7 + $0x868] sm:$0xff]  ;;  %v6129_v51 = vcombine.low %v358_v39, %v362_v40 }
  0xf9   :  { %3405 = vmatpush2.bf16.msra.mxu0 %v6057_v57  ;;  %v6122_v54 = vcombine.high %v350_v48, %v354_v49  ;;  %v478_v55 = vld [vmem:[#allocation7 + $0xc48] sm:$0xff] }
  0xfa   :  { %3406 = vmatprep.subr.bf16.mxu0 %v6050_v60  ;;  %v482_v56 = vld [vmem:[#allocation7 + $0xc68] sm:$0xff]  ;;  %v6257_v60 = vcombine.low %v486_v46, %v490_v47 }
  0xfb   :  { %3366 = vmatpush2.bf16.msra.mxu1 %v5921_v58  ;;  %v342_v57 = vld [vmem:[#allocation7 + $0x808] sm:$0xff]  ;;  %v6250_v62 = vcombine.high %v478_v55, %v482_v56 }
  0xfc   :  { %3417 = vmatprep.subr.bf16.mxu1 %v6170_v61  ;;  %v346_v58 = vld [vmem:[#allocation7 + $0x828] sm:$0xff]  ;;  %v6121_v61 = vcombine.low %v350_v48, %v354_v49 }
  0xfd   :  { %3407 = vmatpush2.bf16.msra.mxu0 %v6049_v3  ;;  %v6114_v0 = vcombine.high %v342_v57, %v346_v58  ;;  %v470_v1 = vld [vmem:[#allocation7 + $0xc08] sm:$0xff] }
  0xfe   :  { %3368 = vmatmul.mubr.bf16.vlgmr.msra.gmra.mxu1 %v6855_v22  ;;  %3458 = vmatprep.subr.bf16.mxu0 %v6298_v5  ;;  %v474_v2 = vld [vmem:[#allocation7 + $0xc28] sm:$0xff]  ;;  %v6249_v5 = vcombine.low %v478_v55, %v482_v56 }
  0xff   :  { %3418 = vmatpush1.bf16.msra.mxu1 %v6169_v4  ;;  %3449 = vmatprep.mubr.bf16.mxu1 %v6858_v28  ;;  %v462_v3 = vld [vmem:[#allocation7 + $0xbc8] sm:$0xff]  ;;  %v6242_v7 = vcombine.high %v470_v1, %v474_v2 }
 0x100   :  { %3419 = vmatprep.subr.bf16.mxu1 %v6162_v6  ;;  %3409 = vmatmul.mubr.bf16.vlgmr.msra.gmra.mxu0 %v6862_v31  ;;  %v466_v4 = vld [vmem:[#allocation7 + $0xbe8] sm:$0xff]  ;;  %v6113_v6 = vcombine.low %v342_v57, %v346_v58 }
 0x101   :  { %3459 = vmatpush1.bf16.msra.mxu0 %v6297_v59  ;;  %6362 = vmatprep.mubr.msk.bf16.mxu0 %vm3142_vm0, %v6866_v37  ;;  %v6234_v10 = vcombine.high %v462_v3, %v466_v4  ;;  %v582_v11 = vld [vmem:[#allocation7 + $0xf88] sm:$0xff] }
 0x102   :  { %3460 = vmatprep.subr.bf16.mxu0 %v6290_v15  ;;  %v454_v12 = vld [vmem:[#allocation7 + $0xb88] sm:$0xff]  ;;  %v6233_v15 = vcombine.low %v462_v3, %v466_v4  ;;  %v6353_v17 = vcombine.low %v582_v11, %v582_v11 }
 0x103   :  { %3420 = vmatpush1.bf16.msra.mxu1 %v6161_v14  ;;  %v458_v59 = vld [vmem:[#allocation7 + $0xba8] sm:$0xff]  ;;  %v6241_v14 = vcombine.low %v470_v1, %v474_v2 }
 0x104   :  { %3421 = vmatprep.subr.bf16.mxu1 %v6154_v16  ;;  %v6354_v16 = vcombine.high %v582_v11, %v582_v11  ;;  %v6226_v18 = vcombine.high %v454_v12, %v458_v59  ;;  %v574_v19 = vld [vmem:[#allocation7 + $0xf48] sm:$0xff] }
 0x105   :  { %3461 = vmatpush1.bf16.msra.mxu0 %v6289_v21  ;;  %v578_v20 = vld [vmem:[#allocation7 + $0xf68] sm:$0xff] }
 0x106   :  { %3462 = vmatprep.subr.bf16.mxu0 %v6282_v24  ;;  %v446_v21 = vld [vmem:[#allocation7 + $0xb48] sm:$0xff]  ;;  %v6225_v24 = vcombine.low %v454_v12, %v458_v59  ;;  %v6346_v26 = vcombine.high %v574_v19, %v578_v20  ;;  %v143_v59 = vld [vmem:[#allocation7 + $0x1d0] sm:$0xff] }
 0x107   :  { %3422 = vmatpush1.bf16.msra.mxu1 %v6153_v23  ;;  %v450_v23 = vld [vmem:[#allocation7 + $0xb68] sm:$0xff] }
 0x108   :  { %3423 = vmatprep.subr.bf16.mxu1 %v6146_v25  ;;  %v3154_v25 = vsel %vm3146_vm1, %v6353_v17, 0  ;;  %v6218_v27 = vcombine.high %v446_v21, %v450_v23  ;;  %v566_v29 = vld [vmem:[#allocation7 + $0xf08] sm:$0xff] }
 0x109   :  { %3463 = vmatpush1.bf16.msra.mxu0 %v6281_v63  ;;  %v570_v30 = vld [vmem:[#allocation7 + $0xf28] sm:$0xff] }
 0x10a   :  { %3464 = vmatprep.subr.bf16.mxu0 %v6274_v33  ;;  %v438_v63 = vld [vmem:[#allocation7 + $0xb08] sm:$0xff]  ;;  %v6345_v33 = vcombine.low %v574_v19, %v578_v20  ;;  %v6338_v36 = vcombine.high %v566_v29, %v570_v30 }
 0x10b   :  { %3424 = vmatpush1.bf16.msra.mxu1 %v6145_v32  ;;  %v442_v32 = vld [vmem:[#allocation7 + $0xb28] sm:$0xff] }
 0x10c   :  { %3425 = vmatprep.subr.bf16.mxu1 %v6138_v35  ;;  %v6217_v35 = vcombine.low %v446_v21, %v450_v23  ;;  %v6210_v38 = vcombine.high %v438_v63, %v442_v32  ;;  %v558_v39 = vld [vmem:[#allocation7 + $0xec8] sm:$0xff]  ;;  %v135_v21 = vld [vmem:[#allocation7 + $0x190] sm:$0xff] }
 0x10d   :  { %3465 = vmatpush1.bf16.msra.mxu0 %v6273_v41  ;;  %v562_v40 = vld [vmem:[#allocation7 + $0xee8] sm:$0xff]  ;;  %v139_v23 = vld [vmem:[#allocation7 + $0x1b0] sm:$0xff] }
 0x10e   :  { %3466 = vmatprep.subr.bf16.mxu0 %v6266_v43  ;;  %v430_v41 = vld [vmem:[#allocation7 + $0xac8] sm:$0xff]  ;;  %v6337_v43 = vcombine.low %v566_v29, %v570_v30  ;;  %v6330_v46 = vcombine.high %v558_v39, %v562_v40  ;;  %v5908_v29 = vcombine.high %v135_v21, %v139_v23 }
 0x10f   :  { %3426 = vmatpush1.bf16.msra.mxu1 %v6137_v42  ;;  %v434_v42 = vld [vmem:[#allocation7 + $0xae8] sm:$0xff] }
 0x110   :  { %3427 = vmatprep.subr.bf16.mxu1 %v6130_v8  ;;  %v6209_v8 = vcombine.low %v438_v63, %v442_v32  ;;  %v6202_v47 = vcombine.high %v430_v41, %v434_v42  ;;  %v550_v48 = vld [vmem:[#allocation7 + $0xe88] sm:$0xff]  ;;  %v127_v63 = vld [vmem:[#allocation7 + $0x150] sm:$0xff] }
 0x111   :  { %3467 = vmatpush1.bf16.msra.mxu0 %v6265_v50  ;;  %v554_v49 = vld [vmem:[#allocation7 + $0xea8] sm:$0xff]  ;;  %v131_v32 = vld [vmem:[#allocation7 + $0x170] sm:$0xff] }
 0x112   :  { %3468 = vmatprep.subr.bf16.mxu0 %v6258_v52  ;;  %v422_v50 = vld [vmem:[#allocation7 + $0xa88] sm:$0xff]  ;;  %v6329_v52 = vcombine.low %v558_v39, %v562_v40  ;;  %v6322_v55 = vcombine.high %v550_v48, %v554_v49  ;;  %v5900_v39 = vcombine.high %v127_v63, %v131_v32 }
 0x113   :  { %3428 = vmatpush1.bf16.msra.mxu1 %v6129_v51  ;;  %v426_v51 = vld [vmem:[#allocation7 + $0xaa8] sm:$0xff] }
 0x114   :  { %3429 = vmatprep.subr.bf16.mxu1 %v6122_v54  ;;  %v6201_v54 = vcombine.low %v430_v41, %v434_v42  ;;  %v6194_v56 = vcombine.high %v422_v50, %v426_v51  ;;  %v542_v57 = vld [vmem:[#allocation7 + $0xe48] sm:$0xff]  ;;  %v119_v41 = vld [vmem:[#allocation7 + $0x110] sm:$0xff] }
 0x115   :  { %3469 = vmatpush1.bf16.msra.mxu0 %v6257_v60  ;;  %v546_v58 = vld [vmem:[#allocation7 + $0xe68] sm:$0xff]  ;;  %v123_v42 = vld [vmem:[#allocation7 + $0x130] sm:$0xff] }
 0x116   :  { %3470 = vmatprep.subr.bf16.mxu0 %v6250_v62  ;;  %v414_v60 = vld [vmem:[#allocation7 + $0xa48] sm:$0xff]  ;;  %v6321_v62 = vcombine.low %v550_v48, %v554_v49  ;;  %v6314_v1 = vcombine.high %v542_v57, %v546_v58  ;;  %v5899_v48 = vcombine.low %v127_v63, %v131_v32 }
 0x117   :  { %3430 = vmatpush1.bf16.msra.mxu1 %v6121_v61  ;;  %v418_v61 = vld [vmem:[#allocation7 + $0xa68] sm:$0xff] }
 0x118   :  { %3431 = vmatprep.subr.bf16.mxu1 %v6114_v0  ;;  %v6193_v0 = vcombine.low %v422_v50, %v426_v51  ;;  %v6186_v2 = vcombine.high %v414_v60, %v418_v61  ;;  %v534_v3 = vld [vmem:[#allocation7 + $0xe08] sm:$0xff] }
 0x119   :  { %3471 = vmatpush1.bf16.msra.mxu0 %v6249_v5  ;;  %v538_v4 = vld [vmem:[#allocation7 + $0xe28] sm:$0xff] }
 0x11a   :  { %3472 = vmatprep.subr.bf16.mxu0 %v6242_v7  ;;  %v406_v5 = vld [vmem:[#allocation7 + $0xa08] sm:$0xff]  ;;  %v6313_v7 = vcombine.low %v542_v57, %v546_v58  ;;  %v6306_v11 = vcombine.high %v534_v3, %v538_v4  ;;  %v6305_v17 = vcombine.low %v534_v3, %v538_v4  ;;  %v115_v57 = vld [vmem:[#allocation7 + $0xf0] sm:$0xff] }
 0x11b   :  { %3432 = vmatpush1.bf16.msra.mxu1 %v6113_v6  ;;  %v410_v6 = vld [vmem:[#allocation7 + $0xa28] sm:$0xff] }
 0x11c   :  { %3433 = vmatprep.subr.bf16.mxu1 %v6234_v10  ;;  %v6185_v10 = vcombine.low %v414_v60, %v418_v61  ;;  %v6178_v12 = vcombine.high %v406_v5, %v410_v6  ;;  %v239_v61 = vld [vmem:[#allocation7 + $0x4d0] sm:$0xff] }
 0x11d   :  { %3473 = vmatpush1.bf16.msra.mxu0 %v6241_v14  ;;  %v147_v14 = vld [vmem:[#allocation7 + $0x1f0] sm:$0xff] }
 0x11e   :  { %6361 = vmatprep.subr.msk.bf16.mxu0 %vm3146_vm1, %v6354_v16  ;;  %v275_v16 = vld [vmem:[#allocation7 + $0x5f0] sm:$0xff]  ;;  %v5916_v19 = vcombine.high %v143_v59, %v147_v14 }
 0x11f   :  { %3434 = vmatpush2.bf16.msra.mxu1 %v6233_v15  ;;  %v271_v15 = vld [vmem:[#allocation7 + $0x5d0] sm:$0xff] }
 0x120   :  { %3435 = vmatprep.subr.bf16.mxu1 %v6226_v18  ;;  %v6177_v18 = vcombine.low %v406_v5, %v410_v6  ;;  %v6044_v20 = vcombine.high %v271_v15, %v275_v16 }
 0x121   :  { %3477 = vmatpush2.bf16.msra.mxu0 %v3154_v25  ;;  %v267_v25 = vld [vmem:[#allocation7 + $0x5b0] sm:$0xff] }
 0x122   :  { %3478 = vmatprep.subr.bf16.mxu0 %v6346_v26  ;;  %v5915_v26 = vcombine.low %v143_v59, %v147_v14 }
 0x123   :  { %3436 = vmatpush2.bf16.msra.mxu1 %v6225_v24  ;;  %v263_v24 = vld [vmem:[#allocation7 + $0x590] sm:$0xff] }
 0x124   :  { %3437 = vmatprep.subr.bf16.mxu1 %v6218_v27  ;;  %v6043_v27 = vcombine.low %v271_v15, %v275_v16  ;;  %v6036_v30 = vcombine.high %v263_v24, %v267_v25 }
 0x125   :  { %3479 = vmatpush2.bf16.msra.mxu0 %v6345_v33  ;;  %v255_v33 = vld [vmem:[#allocation7 + $0x550] sm:$0xff] }
 0x126   :  { %3480 = vmatprep.subr.bf16.mxu0 %v6338_v36  ;;  %v5907_v36 = vcombine.low %v135_v21, %v139_v23 }
 0x127   :  { %3438 = vmatpush2.bf16.msra.mxu1 %v6217_v35  ;;  %v259_v35 = vld [vmem:[#allocation7 + $0x570] sm:$0xff] }
 0x128   :  { %3439 = vmatprep.subr.bf16.mxu1 %v6210_v38  ;;  %v6035_v38 = vcombine.low %v263_v24, %v267_v25  ;;  %v6028_v40 = vcombine.high %v255_v33, %v259_v35  ;;  %v6027_v51 = vcombine.low %v255_v33, %v259_v35 }
 0x129   :  { %3481 = vmatpush2.bf16.msra.mxu0 %v6337_v43 }
 0x12a   :  { %3482 = vmatprep.subr.bf16.mxu0 %v6330_v46  ;;  %v251_v46 = vld [vmem:[#allocation7 + $0x530] sm:$0xff] }
 0x12b   :  { %3440 = vmatpush2.bf16.msra.mxu1 %v6209_v8  ;;  %v247_v8 = vld [vmem:[#allocation7 + $0x510] sm:$0xff] }
 0x12c   :  { %3441 = vmatprep.subr.bf16.mxu1 %v6202_v47  ;;  %v6019_v3 = vcombine.low %v247_v8, %v251_v46 }
 0x12d   :  { %3483 = vmatpush2.bf16.msra.mxu0 %v6329_v52  ;;  %v5892_v52 = vcombine.high %v119_v41, %v123_v42 }
 0x12e   :  { %3484 = vmatprep.subr.bf16.mxu0 %v6322_v55  ;;  %v6020_v55 = vcombine.high %v247_v8, %v251_v46  ;;  %v199_v46 = vld [vmem:[#allocation7 + $0x390] sm:$0xff] }
 0x12f   :  { %3442 = vmatpush2.bf16.msra.mxu1 %v6201_v54 }
 0x130   :  { %3443 = vmatprep.subr.bf16.mxu1 %v6194_v56  ;;  %v111_v56 = vld [vmem:[#allocation7 + $0xd0] sm:$0xff] }
 0x131   :  { %3485 = vmatpush2.bf16.msra.mxu0 %v6321_v62  ;;  %v243_v62 = vld [vmem:[#allocation7 + $0x4f0] sm:$0xff]  ;;  %v5884_v4 = vcombine.high %v111_v56, %v115_v57  ;;  %v5883_v59 = vcombine.low %v111_v56, %v115_v57 }
 0x132   :  { %3486 = vmatprep.subr.bf16.mxu0 %v6314_v1  ;;  %v5891_v1 = vcombine.low %v119_v41, %v123_v42  ;;  %v6012_v6 = vcombine.high %v239_v61, %v243_v62  ;;  %v6011_v14 = vcombine.low %v239_v61, %v243_v62  ;;  %v191_v56 = vld [vmem:[#allocation7 + $0x350] sm:$0xff] }
 0x133   :  { %3444 = vmatpush2.bf16.msra.mxu1 %v6193_v0  ;;  %v195_v57 = vld [vmem:[#allocation7 + $0x370] sm:$0xff] }
 0x134   :  { %3445 = vmatprep.subr.bf16.mxu1 %v6186_v2  ;;  %v323_v61 = vld [vmem:[#allocation7 + $0x770] sm:$0xff] }
 0x135   :  { %3487 = vmatpush2.bf16.msra.mxu0 %v6313_v7  ;;  %v103_v7 = vld [vmem:[#allocation7 + $0x90] sm:$0xff] }
 0x136   :  { %3488 = vmatprep.subr.bf16.mxu0 %v6306_v11  ;;  %v231_v11 = vld [vmem:[#allocation7 + $0x490] sm:$0xff] }
 0x137   :  { %3446 = vmatpush2.bf16.msra.mxu1 %v6185_v10  ;;  %v107_v10 = vld [vmem:[#allocation7 + $0xb0] sm:$0xff] }
 0x138   :  { %3447 = vmatprep.subr.bf16.mxu1 %v6178_v12  ;;  %v235_v12 = vld [vmem:[#allocation7 + $0x4b0] sm:$0xff]  ;;  %v5876_v15 = vcombine.high %v103_v7, %v107_v10  ;;  %v5875_v21 = vcombine.low %v103_v7, %v107_v10  ;;  %v5963_v7 = vcombine.low %v191_v56, %v195_v57 }
 0x139   :  { %3489 = vmatpush2.bf16.msra.mxu0 %v6305_v17  ;;  %v6004_v16 = vcombine.high %v231_v11, %v235_v12  ;;  %v95_v17 = vld [vmem:[#allocation7 + $0x50] sm:$0xff]  ;;  %v6003_v23 = vcombine.low %v231_v11, %v235_v12 }
 0x13a   :  { %3499 = vmatprep.subr.bf16.mxu0 %v5916_v19  ;;  %v223_v19 = vld [vmem:[#allocation7 + $0x450] sm:$0xff] }
 0x13b   :  { %3448 = vmatpush2.bf16.msra.mxu1 %v6177_v18  ;;  %v99_v18 = vld [vmem:[#allocation7 + $0x70] sm:$0xff] }
 0x13c   :  { %3540 = vmatprep.subr.bf16.mxu1 %v6044_v20  ;;  %3491 = vmatmul.mubr.bf16.vlgmr.msra.gmra.mxu0 %v6881_v45  ;;  %v227_v20 = vld [vmem:[#allocation7 + $0x470] sm:$0xff]  ;;  %v5868_v24 = vcombine.high %v95_v17, %v99_v18  ;;  %v5867_v63 = vcombine.low %v95_v17, %v99_v18 }
 0x13d   :  { %3500 = vmatpush1.bf16.msra.mxu0 %v5915_v26  ;;  %3531 = vmatprep.mubr.bf16.mxu0 %v6838_v9  ;;  %v5996_v25 = vcombine.high %v223_v19, %v227_v20  ;;  %v87_v26 = vld [vmem:[#allocation7 + $0x10] sm:$0xff]  ;;  %v5995_v32 = vcombine.low %v223_v19, %v227_v20 }
 0x13e   :  { %3450 = vmatmul.mubr.bf16.vlgmr.msra.gmra.mxu1 %v6877_v34  ;;  %3501 = vmatprep.subr.bf16.mxu0 %v5908_v29  ;;  %v215_v29 = vld [vmem:[#allocation7 + $0x410] sm:$0xff] }
 0x13f   :  { %3541 = vmatpush1.bf16.msra.mxu1 %v6043_v27  ;;  %3572 = vmatprep.mubr.bf16.mxu1 %v6843_v13  ;;  %v91_v27 = vld [vmem:[#allocation7 + $0x30] sm:$0xff] }
 0x140   :  { %3542 = vmatprep.subr.bf16.mxu1 %v6036_v30  ;;  %v3205_v43 = vpop.f32.mrf.mxu0  ;;  %v219_v30 = vld [vmem:[#allocation7 + $0x430] sm:$0xff]  ;;  %v5860_v33 = vcombine.high %v87_v26, %v91_v27  ;;  %v5859_v41 = vcombine.low %v87_v26, %v91_v27 }
 0x141   :  { %3502 = vmatpush1.bf16.msra.mxu0 %v5907_v36  ;;  %v5988_v35 = vcombine.high %v215_v29, %v219_v30  ;;  %v207_v36 = vld [vmem:[#allocation7 + $0x3d0] sm:$0xff]  ;;  %v5987_v42 = vcombine.low %v215_v29, %v219_v30 }
 0x142   :  { %v3246_v47 = vpop.f32.mrf.mxu1  ;;  %v3207_v50 = vpop.f32.mrf.mxu0  ;;  %3503 = vmatprep.subr.bf16.mxu0 %v5900_v39  ;;  %v335_v39 = vld [vmem:[#allocation7 + $0x7d0] sm:$0xff] }
 0x143   :  { %v6898_v49 = vadd.f32 %v3246_v47, %v3205_v43  ;;  %3543 = vmatpush1.bf16.msra.mxu1 %v6035_v38  ;;  %v211_v38 = vld [vmem:[#allocation7 + $0x3f0] sm:$0xff] }
 0x144   :  { %v3248_v54 = vpop.f32.mrf.mxu1  ;;  %3544 = vmatprep.subr.bf16.mxu1 %v6028_v40  ;;  %v3209_v60 = vpop.f32.mrf.mxu0  ;;  %v339_v40 = vld [vmem:[#allocation7 + $0x7f0] sm:$0xff]  ;;  %v5980_v43 = vcombine.high %v207_v36, %v211_v38 }
 0x145   :  { %v6900_v58 = vadd.f32 %v3248_v54, %v3207_v50  ;;  %3504 = vmatpush1.bf16.msra.mxu0 %v5899_v48  ;;  %v6108_v8 = vcombine.high %v335_v39, %v339_v40  ;;  %v203_v47 = vld [vmem:[#allocation7 + $0x3b0] sm:$0xff] }
 0x146   :  { %v3250_v0 = vpop.f32.mrf.mxu1  ;;  %v3210_v2 = vpop.f32.mrf.mxu0  ;;  %3505 = vmatprep.subr.bf16.mxu0 %v5892_v52  ;;  %v327_v48 = vld [vmem:[#allocation7 + $0x790] sm:$0xff]  ;;  %v6107_v52 = vcombine.low %v335_v39, %v339_v40  ;;  %v5972_v54 = vcombine.high %v199_v46, %v203_v47  ;;  %v5971_v62 = vcombine.low %v199_v46, %v203_v47 }
 0x147   :  { %3545 = vmatpush1.bf16.msra.mxu1 %v6027_v51  ;;  %v331_v50 = vld [vmem:[#allocation7 + $0x7b0] sm:$0xff]  ;;  %v5979_v51 = vcombine.low %v207_v36, %v211_v38 }
 0x148   :  { %v3251_v5 = vpop.f32.mrf.mxu1  ;;  %3546 = vmatprep.subr.bf16.mxu1 %v6020_v55  ;;  %v6100_v55 = vcombine.high %v327_v48, %v331_v50  ;;  %v319_v60 = vld [vmem:[#allocation7 + $0x750] sm:$0xff]  ;;  %v6099_v0 = vcombine.low %v327_v48, %v331_v50 }
 0x149   :  { %3506 = vmatpush1.bf16.msra.mxu0 %v5891_v1  ;;  %v5964_v1 = vcombine.high %v191_v56, %v195_v57  ;;  %v6092_v2 = vcombine.high %v319_v60, %v323_v61  ;;  %v311_v5 = vld [vmem:[#allocation7 + $0x710] sm:$0xff]  ;;  %v6091_v10 = vcombine.low %v319_v60, %v323_v61 }
 0x14a   :  { %3507 = vmatprep.subr.bf16.mxu0 %v5884_v4  ;;  %v187_v4 = vld [vmem:[#allocation7 + $0x330] sm:$0xff] }
 0x14b   :  { %3547 = vmatpush1.bf16.msra.mxu1 %v6019_v3  ;;  %v183_v3 = vld [vmem:[#allocation7 + $0x310] sm:$0xff] }
 0x14c   :  { %3548 = vmatprep.subr.bf16.mxu1 %v6012_v6  ;;  %v315_v6 = vld [vmem:[#allocation7 + $0x730] sm:$0xff]  ;;  %v5956_v11 = vcombine.high %v183_v3, %v187_v4  ;;  %v5955_v17 = vcombine.low %v183_v3, %v187_v4 }
 0x14d   :  { %3508 = vmatpush1.bf16.msra.mxu0 %v5883_v59  ;;  %v6084_v12 = vcombine.high %v311_v5, %v315_v6  ;;  %v175_v59 = vld [vmem:[#allocation7 + $0x2d0] sm:$0xff]  ;;  %v6083_v18 = vcombine.low %v311_v5, %v315_v6 }
 0x14e   :  { %3509 = vmatprep.subr.bf16.mxu0 %v5876_v15  ;;  %v303_v15 = vld [vmem:[#allocation7 + $0x6d0] sm:$0xff] }
 0x14f   :  { %3549 = vmatpush1.bf16.msra.mxu1 %v6011_v14  ;;  %v179_v14 = vld [vmem:[#allocation7 + $0x2f0] sm:$0xff] }
 0x150   :  { %3550 = vmatprep.subr.bf16.mxu1 %v6004_v16  ;;  %v307_v16 = vld [vmem:[#allocation7 + $0x6f0] sm:$0xff]  ;;  %v5948_v19 = vcombine.high %v175_v59, %v179_v14  ;;  %v5947_v26 = vcombine.low %v175_v59, %v179_v14 }
 0x151   :  { %3510 = vmatpush1.bf16.msra.mxu0 %v5875_v21  ;;  %v6076_v20 = vcombine.high %v303_v15, %v307_v16  ;;  %v167_v21 = vld [vmem:[#allocation7 + $0x290] sm:$0xff]  ;;  %v6075_v27 = vcombine.low %v303_v15, %v307_v16 }
 0x152   :  { %3511 = vmatprep.subr.bf16.mxu0 %v5868_v24  ;;  %v295_v24 = vld [vmem:[#allocation7 + $0x690] sm:$0xff] }
 0x153   :  { %3551 = vmatpush1.bf16.msra.mxu1 %v6003_v23  ;;  %v171_v23 = vld [vmem:[#allocation7 + $0x2b0] sm:$0xff] }
 0x154   :  { %3552 = vmatprep.subr.bf16.mxu1 %v5996_v25  ;;  %v299_v25 = vld [vmem:[#allocation7 + $0x6b0] sm:$0xff]  ;;  %v5940_v29 = vcombine.high %v167_v21, %v171_v23  ;;  %v5939_v36 = vcombine.low %v167_v21, %v171_v23 }
 0x155   :  { %3512 = vmatpush1.bf16.msra.mxu0 %v5867_v63  ;;  %v6068_v30 = vcombine.high %v295_v24, %v299_v25  ;;  %v159_v63 = vld [vmem:[#allocation7 + $0x250] sm:$0xff]  ;;  %v6067_v38 = vcombine.low %v295_v24, %v299_v25 }
 0x156   :  { %3513 = vmatprep.subr.bf16.mxu0 %v5860_v33  ;;  %v287_v33 = vld [vmem:[#allocation7 + $0x650] sm:$0xff] }
 0x157   :  { %3553 = vmatpush1.bf16.msra.mxu1 %v5995_v32  ;;  %v163_v32 = vld [vmem:[#allocation7 + $0x270] sm:$0xff] }
 0x158   :  { %3554 = vmatprep.subr.bf16.mxu1 %v5988_v35  ;;  %v291_v35 = vld [vmem:[#allocation7 + $0x670] sm:$0xff]  ;;  %v5932_v39 = vcombine.high %v159_v63, %v163_v32  ;;  %v5931_v46 = vcombine.low %v159_v63, %v163_v32 }
 0x159   :  { %3514 = vmatpush1.bf16.msra.mxu0 %v5859_v41  ;;  %v6060_v40 = vcombine.high %v287_v33, %v291_v35  ;;  %v151_v41 = vld [vmem:[#allocation7 + $0x210] sm:$0xff]  ;;  %v6059_v47 = vcombine.low %v287_v33, %v291_v35 }
 0x15a   :  { %3515 = vmatprep.subr.bf16.mxu0 %v5980_v43  ;;  %v279_v43 = vld [vmem:[#allocation7 + $0x610] sm:$0xff] }
 0x15b   :  { %3555 = vmatpush1.bf16.msra.mxu1 %v5987_v42  ;;  %v155_v42 = vld [vmem:[#allocation7 + $0x230] sm:$0xff] }
 0x15c   :  { %3556 = vmatprep.subr.bf16.mxu1 %v6108_v8  ;;  %v283_v8 = vld [vmem:[#allocation7 + $0x630] sm:$0xff]  ;;  %v5924_v48 = vcombine.high %v151_v41, %v155_v42  ;;  %v5923_v56 = vcombine.low %v151_v41, %v155_v42 }
 0x15d   :  { %3516 = vmatpush2.bf16.msra.mxu0 %v5979_v51  ;;  %v6052_v50 = vcombine.high %v279_v43, %v283_v8  ;;  %v399_v51 = vld [vmem:[#allocation7 + $0x9d0] sm:$0xff]  ;;  %v6051_v57 = vcombine.low %v279_v43, %v283_v8 }
 0x15e   :  { %3517 = vmatprep.subr.bf16.mxu0 %v5972_v54  ;;  %v527_v54 = vld [vmem:[#allocation7 + $0xdd0] sm:$0xff] }
 0x15f   :  { %3557 = vmatpush2.bf16.msra.mxu1 %v6107_v52  ;;  %v403_v52 = vld [vmem:[#allocation7 + $0x9f0] sm:$0xff] }
 0x160   :  { %3558 = vmatprep.subr.bf16.mxu1 %v6100_v55  ;;  %v531_v55 = vld [vmem:[#allocation7 + $0xdf0] sm:$0xff]  ;;  %v6172_v60 = vcombine.high %v399_v51, %v403_v52  ;;  %v6171_v3 = vcombine.low %v399_v51, %v403_v52 }
 0x161   :  { %3518 = vmatpush2.bf16.msra.mxu0 %v5971_v62  ;;  %v6300_v61 = vcombine.high %v527_v54, %v531_v55  ;;  %v391_v62 = vld [vmem:[#allocation7 + $0x990] sm:$0xff]  ;;  %v6299_v4 = vcombine.low %v527_v54, %v531_v55 }
 0x162   :  { %3519 = vmatprep.subr.bf16.mxu0 %v5964_v1  ;;  %v519_v1 = vld [vmem:[#allocation7 + $0xd90] sm:$0xff] }
 0x163   :  { %3559 = vmatpush2.bf16.msra.mxu1 %v6099_v0  ;;  %v395_v0 = vld [vmem:[#allocation7 + $0x9b0] sm:$0xff] }
 0x164   :  { %3560 = vmatprep.subr.bf16.mxu1 %v6092_v2  ;;  %v523_v2 = vld [vmem:[#allocation7 + $0xdb0] sm:$0xff]  ;;  %v6164_v5 = vcombine.high %v391_v62, %v395_v0  ;;  %v6163_v14 = vcombine.low %v391_v62, %v395_v0 }
 0x165   :  { %3520 = vmatpush2.bf16.msra.mxu0 %v5963_v7  ;;  %v6292_v6 = vcombine.high %v519_v1, %v523_v2  ;;  %v383_v7 = vld [vmem:[#allocation7 + $0x950] sm:$0xff]  ;;  %v6291_v15 = vcombine.low %v519_v1, %v523_v2 }
 0x166   :  { %3521 = vmatprep.subr.bf16.mxu0 %v5956_v11  ;;  %v511_v11 = vld [vmem:[#allocation7 + $0xd50] sm:$0xff] }
 0x167   :  { %3561 = vmatpush2.bf16.msra.mxu1 %v6091_v10  ;;  %v387_v10 = vld [vmem:[#allocation7 + $0x970] sm:$0xff] }
 0x168   :  { %3562 = vmatprep.subr.bf16.mxu1 %v6084_v12  ;;  %v515_v12 = vld [vmem:[#allocation7 + $0xd70] sm:$0xff]  ;;  %v6156_v16 = vcombine.high %v383_v7, %v387_v10 }
 0x169   :  { %3522 = vmatpush2.bf16.msra.mxu0 %v5955_v17  ;;  %v503_v23 = vld [vmem:[#allocation7 + $0xd10] sm:$0xff] }
 0x16a   :  { %3523 = vmatprep.subr.bf16.mxu0 %v5948_v19  ;;  %v375_v19 = vld [vmem:[#allocation7 + $0x910] sm:$0xff] }
 0x16b   :  { %3563 = vmatpush2.bf16.msra.mxu1 %v6083_v18  ;;  %v6284_v18 = vcombine.high %v511_v11, %v515_v12  ;;  %v507_v24 = vld [vmem:[#allocation7 + $0xd30] sm:$0xff] }
 0x16c   :  { %3564 = vmatprep.subr.bf16.mxu1 %v6076_v20  ;;  %v379_v20 = vld [vmem:[#allocation7 + $0x930] sm:$0xff]  ;;  %v6276_v35 = vcombine.high %v503_v23, %v507_v24 }
 0x16d   :  { %3524 = vmatpush2.bf16.msra.mxu0 %v5947_v26  ;;  %v6148_v63 = vcombine.high %v375_v19, %v379_v20  ;;  %v495_v41 = vld [vmem:[#allocation7 + $0xcd0] sm:$0xff]  ;;  %v6147_v42 = vcombine.low %v375_v19, %v379_v20 }
 0x16e   :  { %3525 = vmatprep.subr.bf16.mxu0 %v5940_v29  ;;  %v487_v51 = vld [vmem:[#allocation7 + $0xc90] sm:$0xff] }
 0x16f   :  { %3565 = vmatpush2.bf16.msra.mxu1 %v6075_v27  ;;  %v6155_v27 = vcombine.low %v383_v7, %v387_v10  ;;  %v491_v52 = vld [vmem:[#allocation7 + $0xcb0] sm:$0xff] }
 0x170   :  { %3566 = vmatprep.subr.bf16.mxu1 %v6068_v30  ;;  %v6283_v30 = vcombine.low %v511_v11, %v515_v12  ;;  %v479_v62 = vld [vmem:[#allocation7 + $0xc50] sm:$0xff]  ;;  %v6259_v2 = vcombine.low %v487_v51, %v491_v52 }
 0x171   :  { %3526 = vmatpush2.bf16.msra.mxu0 %v5939_v36  ;;  %v367_v36 = vld [vmem:[#allocation7 + $0x8d0] sm:$0xff] }
 0x172   :  { %3527 = vmatprep.subr.bf16.mxu0 %v5932_v39  ;;  %v483_v0 = vld [vmem:[#allocation7 + $0xc70] sm:$0xff] }
 0x173   :  { %3567 = vmatpush2.bf16.msra.mxu1 %v6067_v38  ;;  %v371_v38 = vld [vmem:[#allocation7 + $0x8f0] sm:$0xff]  ;;  %v6251_v12 = vcombine.low %v479_v62, %v483_v0 }
 0x174   :  { %3568 = vmatprep.subr.bf16.mxu1 %v6060_v40  ;;  %v6139_v54 = vcombine.low %v367_v36, %v371_v38  ;;  %v471_v7 = vld [vmem:[#allocation7 + $0xc10] sm:$0xff] }
 0x175   :  { %3528 = vmatpush2.bf16.msra.mxu0 %v5931_v46  ;;  %v6275_v46 = vcombine.low %v503_v23, %v507_v24  ;;  %v475_v10 = vld [vmem:[#allocation7 + $0xc30] sm:$0xff] }
 0x176   :  { %3529 = vmatprep.subr.bf16.mxu0 %v5924_v48  ;;  %v359_v48 = vld [vmem:[#allocation7 + $0x890] sm:$0xff]  ;;  %v6243_v19 = vcombine.low %v471_v7, %v475_v10 }
 0x177   :  { %3569 = vmatpush2.bf16.msra.mxu1 %v6059_v47  ;;  %v6140_v47 = vcombine.high %v367_v36, %v371_v38  ;;  %v455_v24 = vld [vmem:[#allocation7 + $0xb90] sm:$0xff] }
 0x178   :  { %3570 = vmatprep.subr.bf16.mxu1 %v6052_v50  ;;  %v363_v50 = vld [vmem:[#allocation7 + $0x8b0] sm:$0xff] }
 0x179   :  { %3530 = vmatpush2.bf16.msra.mxu0 %v5923_v56  ;;  %v6132_v56 = vcombine.high %v359_v48, %v363_v50  ;;  %v6131_v1 = vcombine.low %v359_v48, %v363_v50  ;;  %v567_v36 = vld [vmem:[#allocation7 + $0xf10] sm:$0xff] }
 0x17a   :  { %3581 = vmatprep.subr.bf16.mxu0 %v6172_v60  ;;  %v351_v60 = vld [vmem:[#allocation7 + $0x850] sm:$0xff] }
 0x17b   :  { %3571 = vmatpush2.bf16.msra.mxu1 %v6051_v57  ;;  %v6260_v57 = vcombine.high %v487_v51, %v491_v52  ;;  %v571_v38 = vld [vmem:[#allocation7 + $0xf30] sm:$0xff] }
 0x17c   :  { %3622 = vmatprep.subr.bf16.mxu1 %v6300_v61  ;;  %3532 = vmatmul.mubr.bf16.vlgmr.msra.gmra.mxu0 %v6855_v22  ;;  %v355_v61 = vld [vmem:[#allocation7 + $0x870] sm:$0xff]  ;;  %v6339_v50 = vcombine.low %v567_v36, %v571_v38 }
 0x17d   :  { %3582 = vmatpush1.bf16.msra.mxu0 %v6171_v3  ;;  %3613 = vmatprep.mubr.bf16.mxu0 %v6858_v28  ;;  %v6124_v3 = vcombine.high %v351_v60, %v355_v61  ;;  %v6123_v11 = vcombine.low %v351_v60, %v355_v61 }
 0x17e   :  { %v3328_v59 = vpop.f32.mrf.mxu1  ;;  %3573 = vmatmul.mubr.bf16.vlgmr.msra.gmra.mxu1 %v6862_v31  ;;  %3583 = vmatprep.subr.bf16.mxu0 %v6164_v5  ;;  %v343_v5 = vld [vmem:[#allocation7 + $0x810] sm:$0xff] }
 0x17f   :  { %3623 = vmatpush1.bf16.msra.mxu1 %v6299_v4  ;;  %6364 = vmatprep.mubr.msk.bf16.mxu1 %vm3142_vm0, %v6866_v37  ;;  %v6252_v4 = vcombine.high %v479_v62, %v483_v0 }
 0x180   :  { %v3330_v17 = vpop.f32.mrf.mxu1  ;;  %3624 = vmatprep.subr.bf16.mxu1 %v6292_v6  ;;  %v3287_v21 = vpop.f32.mrf.mxu0  ;;  %v347_v6 = vld [vmem:[#allocation7 + $0x830] sm:$0xff] }
 0x181   :  { %v3288_v25 = vadd.f32 %v3287_v21, %v6898_v49  ;;  %3584 = vmatpush1.bf16.msra.mxu0 %v6163_v14  ;;  %v499_v49 = vld [vmem:[#allocation7 + $0xcf0] sm:$0xff]  ;;  %v6244_v14 = vcombine.high %v471_v7, %v475_v10 }
 0x182   :  { %v3332_v26 = vpop.f32.mrf.mxu1  ;;  %v3289_v29 = vpop.f32.mrf.mxu0  ;;  %3585 = vmatprep.subr.bf16.mxu0 %v6156_v16  ;;  %v6267_v55 = vcombine.low %v495_v41, %v499_v49  ;;  %v467_v16 = vld [vmem:[#allocation7 + $0xbf0] sm:$0xff] }
 0x183   :  { %3625 = vmatpush1.bf16.msra.mxu1 %v6291_v15  ;;  %v3290_v32 = vadd.f32 %v3289_v29, %v6900_v58  ;;  %v6909_v39 = vadd.f32 %v3328_v59, %v3288_v25  ;;  %v6268_v58 = vcombine.high %v495_v41, %v499_v49  ;;  %v6116_v59 = vcombine.high %v343_v5, %v347_v6  ;;  %v463_v15 = vld [vmem:[#allocation7 + $0xbd0] sm:$0xff] }
 0x184   :  { %v3333_v33 = vpop.f32.mrf.mxu1  ;;  %3626 = vmatprep.subr.bf16.mxu1 %v6284_v18  ;;  %v3291_v40 = vpop.f32.mrf.mxu0  ;;  %v6115_v18 = vcombine.low %v343_v5, %v347_v6  ;;  %v6236_v20 = vcombine.high %v463_v15, %v467_v16  ;;  %v459_v25 = vld [vmem:[#allocation7 + $0xbb0] sm:$0xff]  ;;  %v6235_v29 = vcombine.low %v463_v15, %v467_v16 }
 0x185   :  { %3586 = vmatpush1.bf16.msra.mxu0 %v6155_v27  ;;  %v6911_v43 = vadd.f32 %v3330_v17, %v3290_v32  ;;  %v583_v17 = vld [vmem:[#allocation7 + $0xf90] sm:$0xff]  ;;  %v6227_v40 = vcombine.low %v455_v24, %v459_v25 }
 0x186   :  { %v3292_v8 = vpop.f32.mrf.mxu0  ;;  %3587 = vmatprep.subr.bf16.mxu0 %v6148_v63  ;;  %v6356_v21 = vcombine.high %v583_v17, %v583_v17  ;;  %v6355_v23 = vcombine.low %v583_v17, %v583_v17  ;;  %v575_v26 = vld [vmem:[#allocation7 + $0xf50] sm:$0xff] }
 0x187   :  { %3627 = vmatpush1.bf16.msra.mxu1 %v6283_v30  ;;  %v579_v27 = vld [vmem:[#allocation7 + $0xf70] sm:$0xff]  ;;  %v6228_v30 = vcombine.high %v455_v24, %v459_v25 }
 0x188   :  { %3628 = vmatprep.subr.bf16.mxu1 %v6276_v35  ;;  %v3160_v63 = vsel %vm3146_vm1, %v6355_v23, 0  ;;  %v6348_v32 = vcombine.high %v575_v26, %v579_v27  ;;  %v447_v33 = vld [vmem:[#allocation7 + $0xb50] sm:$0xff]  ;;  %v6347_v41 = vcombine.low %v575_v26, %v579_v27  ;;  %v148_v23 = vld [vmem:[#allocation7 + $0x1f8] sm:$0xff] }
 0x189   :  { %3588 = vmatpush1.bf16.msra.mxu0 %v6147_v42  ;;  %v451_v35 = vld [vmem:[#allocation7 + $0xb70] sm:$0xff]  ;;  %v6340_v42 = vcombine.high %v567_v36, %v571_v38 }
 0x18a   :  { %3589 = vmatprep.subr.bf16.mxu0 %v6140_v47  ;;  %v6220_v49 = vcombine.high %v447_v33, %v451_v35  ;;  %v439_v8 = vld [vmem:[#allocation7 + $0xb10] sm:$0xff]  ;;  %v6219_v48 = vcombine.low %v447_v33, %v451_v35 }
 0x18b   :  { %3629 = vmatpush1.bf16.msra.mxu1 %v6275_v46  ;;  %v443_v46 = vld [vmem:[#allocation7 + $0xb30] sm:$0xff] }
 0x18c   :  { %3630 = vmatprep.subr.bf16.mxu1 %v6268_v58  ;;  %v559_v47 = vld [vmem:[#allocation7 + $0xed0] sm:$0xff]  ;;  %v6212_v51 = vcombine.high %v439_v8, %v443_v46  ;;  %v6211_v60 = vcombine.low %v439_v8, %v443_v46 }
 0x18d   :  { %3590 = vmatpush1.bf16.msra.mxu0 %v6139_v54  ;;  %v563_v58 = vld [vmem:[#allocation7 + $0xef0] sm:$0xff] }
 0x18e   :  { %3591 = vmatprep.subr.bf16.mxu0 %v6132_v56  ;;  %v6332_v52 = vcombine.high %v559_v47, %v563_v58  ;;  %v431_v54 = vld [vmem:[#allocation7 + $0xad0] sm:$0xff]  ;;  %v6331_v61 = vcombine.low %v559_v47, %v563_v58 }
 0x18f   :  { %3631 = vmatpush1.bf16.msra.mxu1 %v6267_v55  ;;  %v435_v55 = vld [vmem:[#allocation7 + $0xaf0] sm:$0xff] }
 0x190   :  { %3632 = vmatprep.subr.bf16.mxu1 %v6260_v57  ;;  %v551_v56 = vld [vmem:[#allocation7 + $0xe90] sm:$0xff]  ;;  %v6204_v62 = vcombine.high %v431_v54, %v435_v55  ;;  %v6203_v5 = vcombine.low %v431_v54, %v435_v55 }
 0x191   :  { %3592 = vmatpush1.bf16.msra.mxu0 %v6131_v1  ;;  %v555_v57 = vld [vmem:[#allocation7 + $0xeb0] sm:$0xff] }
 0x192   :  { %3593 = vmatprep.subr.bf16.mxu0 %v6124_v3  ;;  %v6324_v0 = vcombine.high %v551_v56, %v555_v57  ;;  %v423_v1 = vld [vmem:[#allocation7 + $0xa90] sm:$0xff]  ;;  %v6323_v6 = vcombine.low %v551_v56, %v555_v57 }
 0x193   :  { %3633 = vmatpush1.bf16.msra.mxu1 %v6259_v2  ;;  %v427_v2 = vld [vmem:[#allocation7 + $0xab0] sm:$0xff] }
 0x194   :  { %3634 = vmatprep.subr.bf16.mxu1 %v6252_v4  ;;  %v543_v3 = vld [vmem:[#allocation7 + $0xe50] sm:$0xff]  ;;  %v6196_v7 = vcombine.high %v423_v1, %v427_v2  ;;  %v6195_v15 = vcombine.low %v423_v1, %v427_v2  ;;  %v116_v2 = vld [vmem:[#allocation7 + $0xf8] sm:$0xff] }
 0x195   :  { %3594 = vmatpush1.bf16.msra.mxu0 %v6123_v11  ;;  %v547_v4 = vld [vmem:[#allocation7 + $0xe70] sm:$0xff] }
 0x196   :  { %3595 = vmatprep.subr.bf16.mxu0 %v6116_v59  ;;  %v6316_v10 = vcombine.high %v543_v3, %v547_v4  ;;  %v415_v11 = vld [vmem:[#allocation7 + $0xa50] sm:$0xff]  ;;  %v6315_v16 = vcombine.low %v543_v3, %v547_v4 }
 0x197   :  { %3635 = vmatpush1.bf16.msra.mxu1 %v6251_v12  ;;  %v419_v12 = vld [vmem:[#allocation7 + $0xa70] sm:$0xff] }
 0x198   :  { %3636 = vmatprep.subr.bf16.mxu1 %v6244_v14  ;;  %v535_v59 = vld [vmem:[#allocation7 + $0xe10] sm:$0xff]  ;;  %v6188_v17 = vcombine.high %v415_v11, %v419_v12  ;;  %v6187_v24 = vcombine.low %v415_v11, %v419_v12 }
 0x199   :  { %3596 = vmatpush1.bf16.msra.mxu0 %v6115_v18  ;;  %v539_v14 = vld [vmem:[#allocation7 + $0xe30] sm:$0xff] }
 0x19a   :  { %3597 = vmatprep.subr.bf16.mxu0 %v6236_v20  ;;  %v6308_v18 = vcombine.high %v535_v59, %v539_v14  ;;  %v411_v20 = vld [vmem:[#allocation7 + $0xa30] sm:$0xff]  ;;  %v6307_v25 = vcombine.low %v535_v59, %v539_v14  ;;  %v240_v59 = vld [vmem:[#allocation7 + $0x4d8] sm:$0xff] }
 0x19b   :  { %3637 = vmatpush1.bf16.msra.mxu1 %v6243_v19  ;;  %v407_v19 = vld [vmem:[#allocation7 + $0xa10] sm:$0xff]  ;;  %v244_v14 = vld [vmem:[#allocation7 + $0x4f8] sm:$0xff] }
 0x19c   :  { %6363 = vmatprep.subr.msk.bf16.mxu1 %vm3146_vm1, %v6356_v21  ;;  %v144_v21 = vld [vmem:[#allocation7 + $0x1d8] sm:$0xff]  ;;  %v6180_v26 = vcombine.high %v407_v19, %v411_v20  ;;  %v6179_v33 = vcombine.low %v407_v19, %v411_v20 }
 0x19d   :  { %3598 = vmatpush2.bf16.msra.mxu0 %v6235_v29  ;;  %v5918_v27 = vcombine.high %v144_v21, %v148_v23  ;;  %v272_v29 = vld [vmem:[#allocation7 + $0x5d8] sm:$0xff]  ;;  %v5917_v35 = vcombine.low %v144_v21, %v148_v23  ;;  %v6014_v21 = vcombine.high %v240_v59, %v244_v14 }
 0x19e   :  { %3599 = vmatprep.subr.bf16.mxu0 %v6228_v30  ;;  %v276_v30 = vld [vmem:[#allocation7 + $0x5f8] sm:$0xff] }
 0x19f   :  { %3641 = vmatpush2.bf16.msra.mxu1 %v3160_v63  ;;  %v136_v63 = vld [vmem:[#allocation7 + $0x198] sm:$0xff]  ;;  %v6046_v36 = vcombine.high %v272_v29, %v276_v30  ;;  %v6045_v8 = vcombine.low %v272_v29, %v276_v30  ;;  %v6013_v29 = vcombine.low %v240_v59, %v244_v14 }
 0x1a0   :  { %3642 = vmatprep.subr.bf16.mxu1 %v6348_v32  ;;  %v140_v32 = vld [vmem:[#allocation7 + $0x1b8] sm:$0xff] }
 0x1a1   :  { %3600 = vmatpush2.bf16.msra.mxu0 %v6227_v40  ;;  %v5910_v38 = vcombine.high %v136_v63, %v140_v32  ;;  %v264_v40 = vld [vmem:[#allocation7 + $0x598] sm:$0xff]  ;;  %v5909_v46 = vcombine.low %v136_v63, %v140_v32 }
 0x1a2   :  { %3601 = vmatprep.subr.bf16.mxu0 %v6220_v49  ;;  %v128_v49 = vld [vmem:[#allocation7 + $0x158] sm:$0xff] }
 0x1a3   :  { %3643 = vmatpush2.bf16.msra.mxu1 %v6347_v41  ;;  %v268_v41 = vld [vmem:[#allocation7 + $0x5b8] sm:$0xff] }
 0x1a4   :  { %3644 = vmatprep.subr.bf16.mxu1 %v6340_v42  ;;  %v132_v42 = vld [vmem:[#allocation7 + $0x178] sm:$0xff]  ;;  %v6038_v47 = vcombine.high %v264_v40, %v268_v41  ;;  %v6037_v55 = vcombine.low %v264_v40, %v268_v41 }
 0x1a5   :  { %3602 = vmatpush2.bf16.msra.mxu0 %v6219_v48  ;;  %v5902_v58 = vcombine.high %v128_v49, %v132_v42  ;;  %v256_v48 = vld [vmem:[#allocation7 + $0x558] sm:$0xff]  ;;  %v5901_v56 = vcombine.low %v128_v49, %v132_v42 }
 0x1a6   :  { %3603 = vmatprep.subr.bf16.mxu0 %v6212_v51  ;;  %v120_v51 = vld [vmem:[#allocation7 + $0x118] sm:$0xff] }
 0x1a7   :  { %3645 = vmatpush2.bf16.msra.mxu1 %v6339_v50  ;;  %v260_v50 = vld [vmem:[#allocation7 + $0x578] sm:$0xff] }
 0x1a8   :  { %3646 = vmatprep.subr.bf16.mxu1 %v6332_v52  ;;  %v124_v52 = vld [vmem:[#allocation7 + $0x138] sm:$0xff]  ;;  %v6030_v57 = vcombine.high %v256_v48, %v260_v50 }
 0x1a9   :  { %3604 = vmatpush2.bf16.msra.mxu0 %v6211_v60  ;;  %v184_v59 = vld [vmem:[#allocation7 + $0x318] sm:$0xff] }
 0x1aa   :  { %3605 = vmatprep.subr.bf16.mxu0 %v6204_v62  ;;  %v248_v62 = vld [vmem:[#allocation7 + $0x518] sm:$0xff] }
 0x1ab   :  { %3647 = vmatpush2.bf16.msra.mxu1 %v6331_v61  ;;  %v5894_v61 = vcombine.high %v120_v51, %v124_v52  ;;  %v188_v14 = vld [vmem:[#allocation7 + $0x338] sm:$0xff] }
 0x1ac   :  { %3648 = vmatprep.subr.bf16.mxu1 %v6324_v0  ;;  %v252_v0 = vld [vmem:[#allocation7 + $0x538] sm:$0xff] }
 0x1ad   :  { %3606 = vmatpush2.bf16.msra.mxu0 %v6203_v5  ;;  %v6029_v5 = vcombine.low %v256_v48, %v260_v50 }
 0x1ae   :  { %3607 = vmatprep.subr.bf16.mxu0 %v6196_v7  ;;  %v6022_v7 = vcombine.high %v248_v62, %v252_v0 }
 0x1af   :  { %3649 = vmatpush2.bf16.msra.mxu1 %v6323_v6 }
 0x1b0   :  { %3650 = vmatprep.subr.bf16.mxu1 %v6316_v10 }
 0x1b1   :  { %3608 = vmatpush2.bf16.msra.mxu0 %v6195_v15 }
 0x1b2   :  { %3609 = vmatprep.subr.bf16.mxu0 %v6188_v17  ;;  %v108_v17 = vld [vmem:[#allocation7 + $0xb8] sm:$0xff] }
 0x1b3   :  { %3651 = vmatpush2.bf16.msra.mxu1 %v6315_v16  ;;  %v104_v16 = vld [vmem:[#allocation7 + $0x98] sm:$0xff] }
 0x1b4   :  { %3652 = vmatprep.subr.bf16.mxu1 %v6308_v18  ;;  %v6021_v18 = vcombine.low %v248_v62, %v252_v0  ;;  %v5878_v23 = vcombine.high %v104_v16, %v108_v17  ;;  %v5877_v30 = vcombine.low %v104_v16, %v108_v17 }
 0x1b5   :  { %3610 = vmatpush2.bf16.msra.mxu0 %v6187_v24  ;;  %v232_v24 = vld [vmem:[#allocation7 + $0x498] sm:$0xff] }
 0x1b6   :  { %3611 = vmatprep.subr.bf16.mxu0 %v6180_v26  ;;  %v96_v26 = vld [vmem:[#allocation7 + $0x58] sm:$0xff] }
 0x1b7   :  { %3653 = vmatpush2.bf16.msra.mxu1 %v6307_v25  ;;  %v236_v25 = vld [vmem:[#allocation7 + $0x4b8] sm:$0xff] }
 0x1b8   :  { %3663 = vmatprep.subr.bf16.mxu1 %v5918_v27  ;;  %v100_v27 = vld [vmem:[#allocation7 + $0x78] sm:$0xff]  ;;  %v6006_v63 = vcombine.high %v232_v24, %v236_v25  ;;  %v6005_v40 = vcombine.low %v232_v24, %v236_v25  ;;  %v5957_v25 = vcombine.low %v184_v59, %v188_v14 }
 0x1b9   :  { %3612 = vmatpush2.bf16.msra.mxu0 %v6179_v33  ;;  %v5870_v32 = vcombine.high %v96_v26, %v100_v27  ;;  %v224_v33 = vld [vmem:[#allocation7 + $0x458] sm:$0xff]  ;;  %v5869_v41 = vcombine.low %v96_v26, %v100_v27 }
 0x1ba   :  { %3655 = vmatmul.mubr.bf16.vlgmr.msra.gmra.mxu1 %v6881_v45  ;;  %3704 = vmatprep.subr.bf16.mxu0 %v6046_v36  ;;  %v88_v36 = vld [vmem:[#allocation7 + $0x18] sm:$0xff] }
 0x1bb   :  { %3664 = vmatpush1.bf16.msra.mxu1 %v5917_v35  ;;  %3695 = vmatprep.mubr.bf16.mxu1 %v6838_v9  ;;  %v112_v9 = vld [vmem:[#allocation7 + $0xd8] sm:$0xff] }
 0x1bc   :  { %3665 = vmatprep.subr.bf16.mxu1 %v5910_v38  ;;  %3614 = vmatmul.mubr.bf16.vlgmr.msra.gmra.mxu0 %v6877_v34  ;;  %v5886_v12 = vcombine.high %v112_v9, %v116_v2  ;;  %v5885_v20 = vcombine.low %v112_v9, %v116_v2  ;;  %v228_v35 = vld [vmem:[#allocation7 + $0x478] sm:$0xff] }
 0x1bd   :  { %3705 = vmatpush1.bf16.msra.mxu0 %v6045_v8  ;;  %3736 = vmatprep.mubr.bf16.mxu0 %v6843_v13  ;;  %v5893_v13 = vcombine.low %v120_v51, %v124_v52  ;;  %v92_v38 = vld [vmem:[#allocation7 + $0x38] sm:$0xff]  ;;  %v5998_v49 = vcombine.high %v224_v33, %v228_v35  ;;  %v5997_v48 = vcombine.low %v224_v33, %v228_v35 }
 0x1be   :  { %v3369_v54 = vpop.f32.mrf.mxu1  ;;  %3706 = vmatprep.subr.bf16.mxu0 %v6038_v47  ;;  %v5862_v42 = vcombine.high %v88_v36, %v92_v38  ;;  %v216_v8 = vld [vmem:[#allocation7 + $0x418] sm:$0xff]  ;;  %v5861_v50 = vcombine.low %v88_v36, %v92_v38 }
 0x1bf   :  { %3666 = vmatpush1.bf16.msra.mxu1 %v5909_v46  ;;  %v220_v46 = vld [vmem:[#allocation7 + $0x438] sm:$0xff] }
 0x1c0   :  { %v3371_v60 = vpop.f32.mrf.mxu1  ;;  %3667 = vmatprep.subr.bf16.mxu1 %v5902_v58  ;;  %v3410_v1 = vpop.f32.mrf.mxu0  ;;  %v208_v47 = vld [vmem:[#allocation7 + $0x3d8] sm:$0xff]  ;;  %v5990_v51 = vcombine.high %v216_v8, %v220_v46 }
 0x1c1   :  { %v6919_v4 = vadd.f32 %v3410_v1, %v3369_v54  ;;  %3707 = vmatpush1.bf16.msra.mxu0 %v6037_v55  ;;  %v212_v58 = vld [vmem:[#allocation7 + $0x3f8] sm:$0xff] }
 0x1c2   :  { %v3373_v3 = vpop.f32.mrf.mxu1  ;;  %v3412_v6 = vpop.f32.mrf.mxu0  ;;  %3708 = vmatprep.subr.bf16.mxu0 %v6030_v57  ;;  %v5982_v52 = vcombine.high %v208_v47, %v212_v58  ;;  %v336_v54 = vld [vmem:[#allocation7 + $0x7d8] sm:$0xff] }
 0x1c3   :  { %3668 = vmatpush1.bf16.msra.mxu1 %v5901_v56  ;;  %v6921_v11 = vadd.f32 %v3412_v6, %v3371_v60  ;;  %v340_v55 = vld [vmem:[#allocation7 + $0x7f8] sm:$0xff]  ;;  %v5989_v60 = vcombine.low %v216_v8, %v220_v46 }
 0x1c4   :  { %v3374_v10 = vpop.f32.mrf.mxu1  ;;  %3669 = vmatprep.subr.bf16.mxu1 %v5894_v61  ;;  %v3414_v15 = vpop.f32.mrf.mxu0  ;;  %v200_v56 = vld [vmem:[#allocation7 + $0x398] sm:$0xff]  ;;  %v5981_v61 = vcombine.low %v208_v47, %v212_v58  ;;  %v6110_v62 = vcombine.high %v336_v54, %v340_v55 }
 0x1c5   :  { %3709 = vmatpush1.bf16.msra.mxu0 %v6029_v5  ;;  %v204_v57 = vld [vmem:[#allocation7 + $0x3b8] sm:$0xff]  ;;  %v6109_v5 = vcombine.low %v336_v54, %v340_v55 }
 0x1c6   :  { %v3415_v19 = vpop.f32.mrf.mxu0  ;;  %3710 = vmatprep.subr.bf16.mxu0 %v6022_v7  ;;  %v5974_v0 = vcombine.high %v200_v56, %v204_v57  ;;  %v328_v1 = vld [vmem:[#allocation7 + $0x798] sm:$0xff]  ;;  %v5973_v6 = vcombine.low %v200_v56, %v204_v57 }
 0x1c7   :  { %3670 = vmatpush1.bf16.msra.mxu1 %v5893_v13  ;;  %v332_v9 = vld [vmem:[#allocation7 + $0x7b8] sm:$0xff] }
 0x1c8   :  { %3671 = vmatprep.subr.bf16.mxu1 %v5886_v12  ;;  %v192_v2 = vld [vmem:[#allocation7 + $0x358] sm:$0xff]  ;;  %v6102_v13 = vcombine.high %v328_v1, %v332_v9  ;;  %v6101_v15 = vcombine.low %v328_v1, %v332_v9 }
 0x1c9   :  { %3711 = vmatpush1.bf16.msra.mxu0 %v6021_v18  ;;  %v196_v3 = vld [vmem:[#allocation7 + $0x378] sm:$0xff]  ;;  %v5958_v18 = vcombine.high %v184_v59, %v188_v14 }
 0x1ca   :  { %3712 = vmatprep.subr.bf16.mxu0 %v6014_v21  ;;  %v5966_v7 = vcombine.high %v192_v2, %v196_v3  ;;  %v320_v10 = vld [vmem:[#allocation7 + $0x758] sm:$0xff]  ;;  %v5965_v16 = vcombine.low %v192_v2, %v196_v3 }
 0x1cb   :  { %3672 = vmatpush1.bf16.msra.mxu1 %v5885_v20  ;;  %v324_v12 = vld [vmem:[#allocation7 + $0x778] sm:$0xff] }
 0x1cc   :  { %3673 = vmatprep.subr.bf16.mxu1 %v5878_v23  ;;  %v6094_v17 = vcombine.high %v320_v10, %v324_v12  ;;  %v312_v19 = vld [vmem:[#allocation7 + $0x718] sm:$0xff]  ;;  %v6093_v24 = vcombine.low %v320_v10, %v324_v12 }
 0x1cd   :  { %3713 = vmatpush1.bf16.msra.mxu0 %v6013_v29  ;;  %v316_v20 = vld [vmem:[#allocation7 + $0x738] sm:$0xff] }
 0x1ce   :  { %3714 = vmatprep.subr.bf16.mxu0 %v6006_v63  ;;  %v176_v21 = vld [vmem:[#allocation7 + $0x2d8] sm:$0xff]  ;;  %v6086_v26 = vcombine.high %v312_v19, %v316_v20  ;;  %v6085_v33 = vcombine.low %v312_v19, %v316_v20 }
 0x1cf   :  { %3674 = vmatpush1.bf16.msra.mxu1 %v5877_v30  ;;  %v180_v23 = vld [vmem:[#allocation7 + $0x2f8] sm:$0xff] }
 0x1d0   :  { %3675 = vmatprep.subr.bf16.mxu1 %v5870_v32  ;;  %v5950_v27 = vcombine.high %v176_v21, %v180_v23  ;;  %v304_v29 = vld [vmem:[#allocation7 + $0x6d8] sm:$0xff]  ;;  %v5949_v35 = vcombine.low %v176_v21, %v180_v23 }
 0x1d1   :  { %3715 = vmatpush1.bf16.msra.mxu0 %v6005_v40  ;;  %v308_v30 = vld [vmem:[#allocation7 + $0x6f8] sm:$0xff] }
 0x1d2   :  { %3716 = vmatprep.subr.bf16.mxu0 %v5998_v49  ;;  %v168_v63 = vld [vmem:[#allocation7 + $0x298] sm:$0xff]  ;;  %v6078_v36 = vcombine.high %v304_v29, %v308_v30  ;;  %v6077_v8 = vcombine.low %v304_v29, %v308_v30 }
 0x1d3   :  { %3676 = vmatpush1.bf16.msra.mxu1 %v5869_v41  ;;  %v172_v32 = vld [vmem:[#allocation7 + $0x2b8] sm:$0xff] }
 0x1d4   :  { %3677 = vmatprep.subr.bf16.mxu1 %v5862_v42  ;;  %v5942_v38 = vcombine.high %v168_v63, %v172_v32  ;;  %v296_v40 = vld [vmem:[#allocation7 + $0x698] sm:$0xff]  ;;  %v5941_v46 = vcombine.low %v168_v63, %v172_v32 }
 0x1d5   :  { %3717 = vmatpush1.bf16.msra.mxu0 %v5997_v48  ;;  %v300_v41 = vld [vmem:[#allocation7 + $0x6b8] sm:$0xff] }
 0x1d6   :  { %3718 = vmatprep.subr.bf16.mxu0 %v5990_v51  ;;  %v160_v49 = vld [vmem:[#allocation7 + $0x258] sm:$0xff]  ;;  %v6070_v47 = vcombine.high %v296_v40, %v300_v41  ;;  %v6069_v54 = vcombine.low %v296_v40, %v300_v41 }
 0x1d7   :  { %3678 = vmatpush1.bf16.msra.mxu1 %v5861_v50  ;;  %v164_v42 = vld [vmem:[#allocation7 + $0x278] sm:$0xff] }
 0x1d8   :  { %3679 = vmatprep.subr.bf16.mxu1 %v5982_v52  ;;  %v5934_v58 = vcombine.high %v160_v49, %v164_v42  ;;  %v288_v48 = vld [vmem:[#allocation7 + $0x658] sm:$0xff]  ;;  %v5933_v55 = vcombine.low %v160_v49, %v164_v42 }
 0x1d9   :  { %3719 = vmatpush1.bf16.msra.mxu0 %v5989_v60  ;;  %v292_v50 = vld [vmem:[#allocation7 + $0x678] sm:$0xff] }
 0x1da   :  { %3720 = vmatprep.subr.bf16.mxu0 %v6110_v62  ;;  %v152_v51 = vld [vmem:[#allocation7 + $0x218] sm:$0xff]  ;;  %v6062_v56 = vcombine.high %v288_v48, %v292_v50  ;;  %v6061_v1 = vcombine.low %v288_v48, %v292_v50 }
 0x1db   :  { %3680 = vmatpush2.bf16.msra.mxu1 %v5981_v61  ;;  %v156_v52 = vld [vmem:[#allocation7 + $0x238] sm:$0xff] }
 0x1dc   :  { %3681 = vmatprep.subr.bf16.mxu1 %v5974_v0  ;;  %v5926_v57 = vcombine.high %v152_v51, %v156_v52  ;;  %v280_v60 = vld [vmem:[#allocation7 + $0x618] sm:$0xff]  ;;  %v5925_v9 = vcombine.low %v152_v51, %v156_v52 }
 0x1dd   :  { %3721 = vmatpush2.bf16.msra.mxu0 %v6109_v5  ;;  %v284_v61 = vld [vmem:[#allocation7 + $0x638] sm:$0xff] }
 0x1de   :  { %3722 = vmatprep.subr.bf16.mxu0 %v6102_v13  ;;  %v400_v62 = vld [vmem:[#allocation7 + $0x9d8] sm:$0xff]  ;;  %v6054_v2 = vcombine.high %v280_v60, %v284_v61  ;;  %v6053_v10 = vcombine.low %v280_v60, %v284_v61 }
 0x1df   :  { %3682 = vmatpush2.bf16.msra.mxu1 %v5973_v6  ;;  %v404_v0 = vld [vmem:[#allocation7 + $0x9f8] sm:$0xff] }
 0x1e0   :  { %3683 = vmatprep.subr.bf16.mxu1 %v5966_v7  ;;  %v6174_v3 = vcombine.high %v400_v62, %v404_v0  ;;  %v528_v5 = vld [vmem:[#allocation7 + $0xdd8] sm:$0xff]  ;;  %v6173_v12 = vcombine.low %v400_v62, %v404_v0 }
 0x1e1   :  { %3723 = vmatpush2.bf16.msra.mxu0 %v6101_v15  ;;  %v532_v6 = vld [vmem:[#allocation7 + $0xdf8] sm:$0xff] }
 0x1e2   :  { %3724 = vmatprep.subr.bf16.mxu0 %v6094_v17  ;;  %v392_v13 = vld [vmem:[#allocation7 + $0x998] sm:$0xff]  ;;  %v6302_v59 = vcombine.high %v528_v5, %v532_v6  ;;  %v6301_v19 = vcombine.low %v528_v5, %v532_v6 }
 0x1e3   :  { %3684 = vmatpush2.bf16.msra.mxu1 %v5965_v16  ;;  %v396_v7 = vld [vmem:[#allocation7 + $0x9b8] sm:$0xff] }
 0x1e4   :  { %3685 = vmatprep.subr.bf16.mxu1 %v5958_v18  ;;  %v6166_v14 = vcombine.high %v392_v13, %v396_v7  ;;  %v520_v15 = vld [vmem:[#allocation7 + $0xd98] sm:$0xff]  ;;  %v6165_v20 = vcombine.low %v392_v13, %v396_v7 }
 0x1e5   :  { %3725 = vmatpush2.bf16.msra.mxu0 %v6093_v24  ;;  %v524_v16 = vld [vmem:[#allocation7 + $0xdb8] sm:$0xff] }
 0x1e6   :  { %3726 = vmatprep.subr.bf16.mxu0 %v6086_v26  ;;  %v384_v17 = vld [vmem:[#allocation7 + $0x958] sm:$0xff]  ;;  %v6294_v21 = vcombine.high %v520_v15, %v524_v16 }
 0x1e7   :  { %3686 = vmatpush2.bf16.msra.mxu1 %v5957_v25  ;;  %v388_v18 = vld [vmem:[#allocation7 + $0x978] sm:$0xff] }
 0x1e8   :  { %3687 = vmatprep.subr.bf16.mxu1 %v5950_v27  ;;  %v6158_v23 = vcombine.high %v384_v17, %v388_v18  ;;  %v512_v24 = vld [vmem:[#allocation7 + $0xd58] sm:$0xff] }
 0x1e9   :  { %3727 = vmatpush2.bf16.msra.mxu0 %v6085_v33  ;;  %v516_v25 = vld [vmem:[#allocation7 + $0xd78] sm:$0xff]  ;;  %v6157_v33 = vcombine.low %v384_v17, %v388_v18 }
 0x1ea   :  { %3728 = vmatprep.subr.bf16.mxu0 %v6078_v36  ;;  %v376_v27 = vld [vmem:[#allocation7 + $0x918] sm:$0xff] }
 0x1eb   :  { %3688 = vmatpush2.bf16.msra.mxu1 %v5949_v35  ;;  %v380_v29 = vld [vmem:[#allocation7 + $0x938] sm:$0xff]  ;;  %v6286_v35 = vcombine.high %v512_v24, %v516_v25 }
 0x1ec   :  { %3689 = vmatprep.subr.bf16.mxu1 %v5942_v38  ;;  %v504_v38 = vld [vmem:[#allocation7 + $0xd18] sm:$0xff] }
 0x1ed   :  { %3729 = vmatpush2.bf16.msra.mxu0 %v6077_v8  ;;  %v368_v42 = vld [vmem:[#allocation7 + $0x8d8] sm:$0xff] }
 0x1ee   :  { %3730 = vmatprep.subr.bf16.mxu0 %v6070_v47  ;;  %v372_v8 = vld [vmem:[#allocation7 + $0x8f8] sm:$0xff] }
 0x1ef   :  { %3690 = vmatpush2.bf16.msra.mxu1 %v5941_v46  ;;  %v6142_v51 = vcombine.high %v368_v42, %v372_v8  ;;  %v496_v52 = vld [vmem:[#allocation7 + $0xcd8] sm:$0xff] }
 0x1f0   :  { %3691 = vmatprep.subr.bf16.mxu1 %v5934_v58  ;;  %v6149_v58 = vcombine.low %v376_v27, %v380_v29  ;;  %v488_v62 = vld [vmem:[#allocation7 + $0xc98] sm:$0xff] }
 0x1f1   :  { %3731 = vmatpush2.bf16.msra.mxu0 %v6069_v54  ;;  %v500_v54 = vld [vmem:[#allocation7 + $0xcf8] sm:$0xff] }
 0x1f2   :  { %3732 = vmatprep.subr.bf16.mxu0 %v6062_v56  ;;  %v6270_v60 = vcombine.high %v496_v52, %v500_v54  ;;  %v492_v0 = vld [vmem:[#allocation7 + $0xcb8] sm:$0xff] }
 0x1f3   :  { %3692 = vmatpush2.bf16.msra.mxu1 %v5933_v55  ;;  %v360_v55 = vld [vmem:[#allocation7 + $0x898] sm:$0xff]  ;;  %v6262_v5 = vcombine.high %v488_v62, %v492_v0 }
 0x1f4   :  { %3693 = vmatprep.subr.bf16.mxu1 %v5926_v57  ;;  %v6141_v57 = vcombine.low %v368_v42, %v372_v8  ;;  %v480_v13 = vld [vmem:[#allocation7 + $0xc58] sm:$0xff] }
 0x1f5   :  { %3733 = vmatpush2.bf16.msra.mxu0 %v6061_v1  ;;  %v352_v1 = vld [vmem:[#allocation7 + $0x858] sm:$0xff] }
 0x1f6   :  { %3734 = vmatprep.subr.bf16.mxu0 %v6054_v2  ;;  %v6269_v2 = vcombine.low %v496_v52, %v500_v54  ;;  %v484_v7 = vld [vmem:[#allocation7 + $0xc78] sm:$0xff] }
 0x1f7   :  { %3694 = vmatpush2.bf16.msra.mxu1 %v5925_v9  ;;  %v356_v9 = vld [vmem:[#allocation7 + $0x878] sm:$0xff] }
 0x1f8   :  { %3745 = vmatprep.subr.bf16.mxu1 %v6174_v3  ;;  %v6126_v6 = vcombine.high %v352_v1, %v356_v9  ;;  %v472_v17 = vld [vmem:[#allocation7 + $0xc18] sm:$0xff] }
 0x1f9   :  { %3735 = vmatpush2.bf16.msra.mxu0 %v6053_v10  ;;  %v344_v10 = vld [vmem:[#allocation7 + $0x818] sm:$0xff] }
 0x1fa   :  { %3696 = vmatmul.mubr.bf16.vlgmr.msra.gmra.mxu1 %v6855_v22  ;;  %3786 = vmatprep.subr.bf16.mxu0 %v6302_v59  ;;  %v6293_v22 = vcombine.low %v520_v15, %v524_v16  ;;  %v6261_v59 = vcombine.low %v488_v62, %v492_v0  ;;  %v6254_v15 = vcombine.high %v480_v13, %v484_v7  ;;  %v476_v18 = vld [vmem:[#allocation7 + $0xc38] sm:$0xff] }
 0x1fb   :  { %3746 = vmatpush1.bf16.msra.mxu1 %v6173_v12  ;;  %3777 = vmatprep.mubr.bf16.mxu1 %v6858_v28  ;;  %v6150_v28 = vcombine.high %v376_v27, %v380_v29  ;;  %v348_v12 = vld [vmem:[#allocation7 + $0x838] sm:$0xff] }
 0x1fc   :  { %3747 = vmatprep.subr.bf16.mxu1 %v6166_v14  ;;  %v3492_v26 = vpop.f32.mrf.mxu0  ;;  %3737 = vmatmul.mubr.bf16.vlgmr.msra.gmra.mxu0 %v6862_v31  ;;  %v508_v31 = vld [vmem:[#allocation7 + $0xd38] sm:$0xff]  ;;  %v6125_v14 = vcombine.low %v352_v1, %v356_v9  ;;  %v6118_v16 = vcombine.high %v344_v10, %v348_v12 }
 0x1fd   :  { %3787 = vmatpush1.bf16.msra.mxu0 %v6301_v19  ;;  %6366 = vmatprep.mubr.msk.bf16.mxu0 %vm3142_vm0, %v6866_v37  ;;  %v6278_v48 = vcombine.high %v504_v38, %v508_v31  ;;  %v6277_v56 = vcombine.low %v504_v38, %v508_v31  ;;  %v464_v19 = vld [vmem:[#allocation7 + $0xbd8] sm:$0xff] }
 0x1fe   :  { %v3451_v30 = vpop.f32.mrf.mxu1  ;;  %v3494_v32 = vpop.f32.mrf.mxu0  ;;  %3788 = vmatprep.subr.bf16.mxu0 %v6294_v21  ;;  %v6253_v21 = vcombine.low %v480_v13, %v484_v7  ;;  %v456_v27 = vld [vmem:[#allocation7 + $0xb98] sm:$0xff] }
 0x1ff   :  { %v3452_v63 = vadd.f32 %v3451_v30, %v6919_v4  ;;  %3748 = vmatpush1.bf16.msra.mxu1 %v6165_v20  ;;  %v6285_v4 = vcombine.low %v512_v24, %v516_v25  ;;  %v468_v20 = vld [vmem:[#allocation7 + $0xbf8] sm:$0xff]  ;;  %v6246_v24 = vcombine.high %v472_v17, %v476_v18  ;;  %v6245_v30 = vcombine.low %v472_v17, %v476_v18 }
 0x200   :  { %v3453_v36 = vpop.f32.mrf.mxu1  ;;  %3749 = vmatprep.subr.bf16.mxu1 %v6158_v23  ;;  %v3496_v49 = vpop.f32.mrf.mxu0  ;;  %v6117_v23 = vcombine.low %v344_v10, %v348_v12  ;;  %v6238_v25 = vcombine.high %v464_v19, %v468_v20  ;;  %v460_v29 = vld [vmem:[#allocation7 + $0xbb8] sm:$0xff] }
 0x201   :  { %v6929_v40 = vadd.f32 %v3492_v26, %v3452_v63  ;;  %v3454_v41 = vadd.f32 %v3453_v36, %v6921_v11  ;;  %3789 = vmatpush1.bf16.msra.mxu0 %v6293_v22  ;;  %v364_v11 = vld [vmem:[#allocation7 + $0x8b8] sm:$0xff]  ;;  %v6237_v22 = vcombine.low %v464_v19, %v468_v20  ;;  %v6229_v31 = vcombine.low %v456_v27, %v460_v29 }
 0x202   :  { %v3455_v37 = vpop.f32.mrf.mxu1  ;;  %v3497_v47 = vpop.f32.mrf.mxu0  ;;  %3790 = vmatprep.subr.bf16.mxu0 %v6286_v35  ;;  %v6134_v61 = vcombine.high %v360_v55, %v364_v11  ;;  %v6133_v3 = vcombine.low %v360_v55, %v364_v11  ;;  %v584_v26 = vld [vmem:[#allocation7 + $0xf98] sm:$0xff] }
 0x203   :  { %v6932_v46 = vadd.f32 %v3494_v32, %v3454_v41  ;;  %3750 = vmatpush1.bf16.msra.mxu1 %v6157_v33  ;;  %v6358_v63 = vcombine.high %v584_v26, %v584_v26  ;;  %v6357_v32 = vcombine.low %v584_v26, %v584_v26  ;;  %v6230_v33 = vcombine.high %v456_v27, %v460_v29  ;;  %v576_v35 = vld [vmem:[#allocation7 + $0xf58] sm:$0xff]  ;;  %v3884_v27 = vld [vmem:[#allocation8 + $0x1c0] sm:$0xff] }
 0x204   :  { %v3456_v50 = vpop.f32.mrf.mxu1  ;;  %3751 = vmatprep.subr.bf16.mxu1 %v6150_v28  ;;  %v580_v36 = vld [vmem:[#allocation7 + $0xf78] sm:$0xff]  ;;  %v3888_v29 = vld [vmem:[#allocation8 + $0x1e0] sm:$0xff] }
 0x205   :  { %3791 = vmatpush1.bf16.msra.mxu0 %v6285_v4  ;;  %v448_v28 = vld [vmem:[#allocation7 + $0xb58] sm:$0xff]  ;;  %v3166_v41 = vsel %vm3146_vm1, %v6357_v32, 0  ;;  %v6350_v49 = vcombine.high %v576_v35, %v580_v36 }
 0x206   :  { %3792 = vmatprep.subr.bf16.mxu0 %v6278_v48  ;;  %v452_v38 = vld [vmem:[#allocation7 + $0xb78] sm:$0xff] }
 0x207   :  { %3752 = vmatpush1.bf16.msra.mxu1 %v6149_v58  ;;  %v6222_v42 = vcombine.high %v448_v28, %v452_v38  ;;  %v568_v8 = vld [vmem:[#allocation7 + $0xf18] sm:$0xff]  ;;  %v6349_v58 = vcombine.low %v576_v35, %v580_v36  ;;  %v6221_v48 = vcombine.low %v448_v28, %v452_v38  ;;  %v6425_v35 = vcombine.high %v3884_v27, %v3888_v29  ;;  %v3876_v28 = vld [vmem:[#allocation8 + $0x180] sm:$0xff] }
 0x208   :  { %3753 = vmatprep.subr.bf16.mxu1 %v6142_v51  ;;  %v572_v37 = vld [vmem:[#allocation7 + $0xf38] sm:$0xff]  ;;  %v3880_v38 = vld [vmem:[#allocation8 + $0x1a0] sm:$0xff] }
 0x209   :  { %3793 = vmatpush1.bf16.msra.mxu0 %v6277_v56  ;;  %v440_v4 = vld [vmem:[#allocation7 + $0xb18] sm:$0xff]  ;;  %v6342_v50 = vcombine.high %v568_v8, %v572_v37  ;;  %v6341_v56 = vcombine.low %v568_v8, %v572_v37  ;;  %v6417_v37 = vcombine.high %v3876_v28, %v3880_v38 }
 0x20a   :  { %3794 = vmatprep.subr.bf16.mxu0 %v6270_v60  ;;  %v444_v47 = vld [vmem:[#allocation7 + $0xb38] sm:$0xff] }
 0x20b   :  { %3754 = vmatpush1.bf16.msra.mxu1 %v6141_v57  ;;  %v6214_v51 = vcombine.high %v440_v4, %v444_v47  ;;  %v560_v52 = vld [vmem:[#allocation7 + $0xed8] sm:$0xff]  ;;  %v6213_v57 = vcombine.low %v440_v4, %v444_v47  ;;  %v3868_v47 = vld [vmem:[#allocation8 + $0x140] sm:$0xff] }
 0x20c   :  { %3755 = vmatprep.subr.bf16.mxu1 %v6134_v61  ;;  %v564_v54 = vld [vmem:[#allocation7 + $0xef8] sm:$0xff] }
 0x20d   :  { %3795 = vmatpush1.bf16.msra.mxu0 %v6269_v2  ;;  %v432_v55 = vld [vmem:[#allocation7 + $0xad8] sm:$0xff]  ;;  %v6334_v60 = vcombine.high %v560_v52, %v564_v54  ;;  %v6333_v2 = vcombine.low %v560_v52, %v564_v54  ;;  %v6416_v52 = vcombine.low %v3876_v28, %v3880_v38 }
 0x20e   :  { %3796 = vmatprep.subr.bf16.mxu0 %v6262_v5  ;;  %v436_v11 = vld [vmem:[#allocation7 + $0xaf8] sm:$0xff] }
 0x20f   :  { %3756 = vmatpush1.bf16.msra.mxu1 %v6133_v3  ;;  %v6206_v61 = vcombine.high %v432_v55, %v436_v11  ;;  %v552_v62 = vld [vmem:[#allocation7 + $0xe98] sm:$0xff]  ;;  %v6205_v3 = vcombine.low %v432_v55, %v436_v11 }
 0x210   :  { %3757 = vmatprep.subr.bf16.mxu1 %v6126_v6  ;;  %v556_v0 = vld [vmem:[#allocation7 + $0xeb8] sm:$0xff] }
 0x211   :  { %3797 = vmatpush1.bf16.msra.mxu0 %v6261_v59  ;;  %v424_v1 = vld [vmem:[#allocation7 + $0xa98] sm:$0xff]  ;;  %v6326_v5 = vcombine.high %v552_v62, %v556_v0  ;;  %v6325_v59 = vcombine.low %v552_v62, %v556_v0 }
 0x212   :  { %3798 = vmatprep.subr.bf16.mxu0 %v6254_v15  ;;  %v428_v9 = vld [vmem:[#allocation7 + $0xab8] sm:$0xff] }
 0x213   :  { %3758 = vmatpush1.bf16.msra.mxu1 %v6125_v14  ;;  %v6198_v6 = vcombine.high %v424_v1, %v428_v9  ;;  %v544_v13 = vld [vmem:[#allocation7 + $0xe58] sm:$0xff]  ;;  %v6197_v14 = vcombine.low %v424_v1, %v428_v9 }
 0x214   :  { %3759 = vmatprep.subr.bf16.mxu1 %v6118_v16  ;;  %v548_v7 = vld [vmem:[#allocation7 + $0xe78] sm:$0xff] }
 0x215   :  { %3799 = vmatpush1.bf16.msra.mxu0 %v6253_v21  ;;  %v416_v10 = vld [vmem:[#allocation7 + $0xa58] sm:$0xff]  ;;  %v6318_v15 = vcombine.high %v544_v13, %v548_v7  ;;  %v6317_v21 = vcombine.low %v544_v13, %v548_v7  ;;  %v3856_v13 = vld [vmem:[#allocation8 + $0xe0] sm:$0xff] }
 0x216   :  { %3800 = vmatprep.subr.bf16.mxu0 %v6246_v24  ;;  %v420_v12 = vld [vmem:[#allocation7 + $0xa78] sm:$0xff] }
 0x217   :  { %3760 = vmatpush1.bf16.msra.mxu1 %v6117_v23  ;;  %v6190_v16 = vcombine.high %v416_v10, %v420_v12  ;;  %v536_v17 = vld [vmem:[#allocation7 + $0xe18] sm:$0xff]  ;;  %v6189_v24 = vcombine.low %v416_v10, %v420_v12  ;;  %v3980_v12 = vld [vmem:[#allocation8 + $0x4c0] sm:$0xff] }
 0x218   :  { %3761 = vmatprep.subr.bf16.mxu1 %v6238_v25  ;;  %v540_v18 = vld [vmem:[#allocation7 + $0xe38] sm:$0xff] }
 0x219   :  { %3801 = vmatpush1.bf16.msra.mxu0 %v6245_v30  ;;  %v408_v19 = vld [vmem:[#allocation7 + $0xa18] sm:$0xff]  ;;  %v6310_v25 = vcombine.high %v536_v17, %v540_v18  ;;  %v4012_v30 = vld [vmem:[#allocation8 + $0x5c0] sm:$0xff]  ;;  %v6309_v32 = vcombine.low %v536_v17, %v540_v18 }
 0x21a   :  { %6365 = vmatprep.subr.msk.bf16.mxu0 %vm3146_vm1, %v6358_v63  ;;  %v412_v20 = vld [vmem:[#allocation7 + $0xa38] sm:$0xff] }
 0x21b   :  { %3762 = vmatpush2.bf16.msra.mxu1 %v6237_v22  ;;  %v6936_v23 = vld.sshfl [vmem:[#allocation5] sm:$0x33 pattern:$0x75316420]  ;;  %v6182_v26 = vcombine.high %v408_v19, %v412_v20  ;;  %v4016_v22 = vld [vmem:[#allocation8 + $0x5e0] sm:$0xff] }
 0x21c   :  { %3763 = vmatprep.subr.bf16.mxu1 %v6230_v33  ;;  %v4092_v63 = vcombine.high %v6936_v23, %v6936_v23  ;;  %v6181_v33 = vcombine.low %v408_v19, %v412_v20  ;;  %v6553_v36 = vcombine.high %v4012_v30, %v4016_v22  ;;  %v6552_v8 = vcombine.low %v4012_v30, %v4016_v22 }
 0x21d   :  { %3805 = vmatpush2.bf16.msra.mxu0 %v3166_v41  ;;  %v4008_v41 = vld [vmem:[#allocation8 + $0x5a0] sm:$0xff] }
 0x21e   :  { %3806 = vmatprep.subr.bf16.mxu0 %v6350_v49  ;;  %v6941_v49 = vrot.slane %v4092_v63, %v6827_v53  ;;  %v3836_v63 = vld [vmem:[#allocation8 + $0x40] sm:$0xff] }
 0x21f   :  { %3764 = vmatpush2.bf16.msra.mxu1 %v6229_v31  ;;  %v4004_v31 = vld [vmem:[#allocation8 + $0x580] sm:$0xff] }
 0x220   :  { %3765 = vmatprep.subr.bf16.mxu1 %v6222_v42  ;;  %v6424_v42 = vcombine.low %v3884_v27, %v3888_v29  ;;  %v6545_v4 = vcombine.high %v4004_v31, %v4008_v41  ;;  %v6544_v54 = vcombine.low %v4004_v31, %v4008_v41  ;;  %v3828_v41 = vld [vmem:[#allocation8] sm:$0xff] }
 0x221   :  { %3807 = vmatpush2.bf16.msra.mxu0 %v6349_v58  ;;  %v3872_v58 = vld [vmem:[#allocation8 + $0x160] sm:$0xff] }
 0x222   :  { %3808 = vmatprep.subr.bf16.mxu0 %v6342_v50  ;;  %v4000_v50 = vld [vmem:[#allocation8 + $0x560] sm:$0xff]  ;;  %v6409_v55 = vcombine.high %v3868_v47, %v3872_v58 }
 0x223   :  { %3766 = vmatpush2.bf16.msra.mxu1 %v6221_v48  ;;  %v3996_v48 = vld [vmem:[#allocation8 + $0x540] sm:$0xff] }
 0x224   :  { %3767 = vmatprep.subr.bf16.mxu1 %v6214_v51  ;;  %v6946_v51 = vcombine.high %v6941_v49, %v6941_v49  ;;  %v6537_v11 = vcombine.high %v3996_v48, %v4000_v50  ;;  %v6536_v9 = vcombine.low %v3996_v48, %v4000_v50  ;;  %v3948_v50 = vld [vmem:[#allocation8 + $0x3c0] sm:$0xff] }
 0x225   :  { %3809 = vmatpush2.bf16.msra.mxu0 %v6341_v56  ;;  %v3860_v56 = vld [vmem:[#allocation8 + $0x100] sm:$0xff] }
 0x226   :  { %3810 = vmatprep.subr.bf16.mxu0 %v6334_v60  ;;  %v3988_v60 = vld [vmem:[#allocation8 + $0x500] sm:$0xff] }
 0x227   :  { %3768 = vmatpush2.bf16.msra.mxu1 %v6213_v57  ;;  %v3864_v57 = vld [vmem:[#allocation8 + $0x120] sm:$0xff] }
 0x228   :  { %3769 = vmatprep.subr.bf16.mxu1 %v6206_v61  ;;  %v3992_v61 = vld [vmem:[#allocation8 + $0x520] sm:$0xff] }
 0x229   :  { %3811 = vmatpush2.bf16.msra.mxu0 %v6333_v2  ;;  %v6401_v2 = vcombine.high %v3860_v56, %v3864_v57  ;;  %v6528_v17 = vcombine.low %v3988_v60, %v3992_v61 }
 0x22a   :  { %3812 = vmatprep.subr.bf16.mxu0 %v6326_v5  ;;  %v6529_v5 = vcombine.high %v3988_v60, %v3992_v61  ;;  %v3940_v60 = vld [vmem:[#allocation8 + $0x380] sm:$0xff] }
 0x22b   :  { %3770 = vmatpush2.bf16.msra.mxu1 %v6205_v3  ;;  %v3944_v61 = vld [vmem:[#allocation8 + $0x3a0] sm:$0xff] }
 0x22c   :  { %3771 = vmatprep.subr.bf16.mxu1 %v6198_v6  ;;  %v3852_v6 = vld [vmem:[#allocation8 + $0xc0] sm:$0xff] }
 0x22d   :  { %3813 = vmatpush2.bf16.msra.mxu0 %v6325_v59  ;;  %v3984_v59 = vld [vmem:[#allocation8 + $0x4e0] sm:$0xff]  ;;  %v6393_v18 = vcombine.high %v3852_v6, %v3856_v13  ;;  %v6392_v27 = vcombine.low %v3852_v6, %v3856_v13 }
 0x22e   :  { %3814 = vmatprep.subr.bf16.mxu0 %v6318_v15  ;;  %v6400_v15 = vcombine.low %v3860_v56, %v3864_v57  ;;  %v6521_v20 = vcombine.high %v3980_v12, %v3984_v59  ;;  %v6520_v29 = vcombine.low %v3980_v12, %v3984_v59  ;;  %v3936_v6 = vld [vmem:[#allocation8 + $0x360] sm:$0xff]  ;;  %v6480_v12 = vcombine.low %v3940_v60, %v3944_v61 }
 0x22f   :  { %3772 = vmatpush2.bf16.msra.mxu1 %v6197_v14  ;;  %v4060_v13 = vld [vmem:[#allocation8 + $0x740] sm:$0xff] }
 0x230   :  { %3773 = vmatprep.subr.bf16.mxu1 %v6190_v16 }
 0x231   :  { %3815 = vmatpush2.bf16.msra.mxu0 %v6317_v21  ;;  %v3844_v21 = vld [vmem:[#allocation8 + $0x80] sm:$0xff] }
 0x232   :  { %3816 = vmatprep.subr.bf16.mxu0 %v6310_v25  ;;  %v3972_v25 = vld [vmem:[#allocation8 + $0x480] sm:$0xff] }
 0x233   :  { %3774 = vmatpush2.bf16.msra.mxu1 %v6189_v24  ;;  %v3848_v24 = vld [vmem:[#allocation8 + $0xa0] sm:$0xff] }
 0x234   :  { %3775 = vmatprep.subr.bf16.mxu1 %v6182_v26  ;;  %v3976_v26 = vld [vmem:[#allocation8 + $0x4a0] sm:$0xff]  ;;  %v6385_v30 = vcombine.high %v3844_v21, %v3848_v24 }
 0x235   :  { %3817 = vmatpush2.bf16.msra.mxu0 %v6309_v32  ;;  %v6513_v22 = vcombine.high %v3972_v25, %v3976_v26  ;;  %v3840_v32 = vld [vmem:[#allocation8 + $0x60] sm:$0xff]  ;;  %v6512_v28 = vcombine.low %v3972_v25, %v3976_v26 }
 0x236   :  { %5393 = vmatprep.subr.bf16.mxu0 %v6425_v35  ;;  %v3968_v35 = vld [vmem:[#allocation8 + $0x460] sm:$0xff]  ;;  %v6377_v38 = vcombine.high %v3836_v63, %v3840_v32 }
 0x237   :  { %3776 = vmatpush2.bf16.msra.mxu1 %v6181_v33  ;;  %v3964_v33 = vld [vmem:[#allocation8 + $0x440] sm:$0xff] }
 0x238   :  { %5434 = vmatprep.subr.bf16.mxu1 %v6553_v36  ;;  %3819 = vmatmul.mubr.bf16.vlgmr.msra.gmra.mxu0 %v6881_v45  ;;  %v6384_v36 = vcombine.low %v3844_v21, %v3848_v24  ;;  %v6505_v31 = vcombine.high %v3964_v33, %v3968_v35  ;;  %v3916_v26 = vld [vmem:[#allocation8 + $0x2c0] sm:$0xff] }
 0x239   :  { %5394 = vmatpush1.bf16.msra.mxu0 %v6424_v42  ;;  %5425 = vmatprep.mubr.bf16.mxu0 %v6941_v49  ;;  %v3832_v42 = vld [vmem:[#allocation8 + $0x20] sm:$0xff] }
 0x23a   :  { %3778 = vmatmul.mubr.bf16.vlgmr.msra.gmra.mxu1 %v6877_v34  ;;  %5395 = vmatprep.subr.bf16.mxu0 %v6417_v37  ;;  %v6408_v34 = vcombine.low %v3868_v47, %v3872_v58  ;;  %v3960_v37 = vld [vmem:[#allocation8 + $0x420] sm:$0xff]  ;;  %v6504_v47 = vcombine.low %v3964_v33, %v3968_v35  ;;  %v6369_v58 = vcombine.high %v3828_v41, %v3832_v42 }
 0x23b   :  { %5435 = vmatpush1.bf16.msra.mxu1 %v6552_v8  ;;  %5466 = vmatprep.mubr.bf16.mxu1 %v6946_v51  ;;  %v3956_v8 = vld [vmem:[#allocation8 + $0x400] sm:$0xff] }
 0x23c   :  { %5436 = vmatprep.subr.bf16.mxu1 %v6545_v4  ;;  %v3533_v45 = vpop.f32.mrf.mxu0  ;;  %v6376_v4 = vcombine.low %v3836_v63, %v3840_v32  ;;  %v6497_v48 = vcombine.high %v3956_v8, %v3960_v37  ;;  %v6496_v56 = vcombine.low %v3956_v8, %v3960_v37  ;;  %v3908_v35 = vld [vmem:[#allocation8 + $0x280] sm:$0xff] }
 0x23d   :  { %5396 = vmatpush1.bf16.msra.mxu0 %v6416_v52  ;;  %v3952_v52 = vld [vmem:[#allocation8 + $0x3e0] sm:$0xff] }
 0x23e   :  { %v3574_v62 = vpop.f32.mrf.mxu1  ;;  %v3535_v1 = vpop.f32.mrf.mxu0  ;;  %5397 = vmatprep.subr.bf16.mxu0 %v6409_v55  ;;  %v4080_v55 = vld [vmem:[#allocation8 + $0x7e0] sm:$0xff]  ;;  %v6489_v57 = vcombine.high %v3948_v50, %v3952_v52 }
 0x23f   :  { %v6951_v0 = vadd.f32 %v3574_v62, %v3533_v45  ;;  %5437 = vmatpush1.bf16.msra.mxu1 %v6544_v54  ;;  %v4076_v54 = vld [vmem:[#allocation8 + $0x7c0] sm:$0xff] }
 0x240   :  { %v3576_v3 = vpop.f32.mrf.mxu1  ;;  %5438 = vmatprep.subr.bf16.mxu1 %v6537_v11  ;;  %v3537_v10 = vpop.f32.mrf.mxu0  ;;  %v6368_v11 = vcombine.low %v3828_v41, %v3832_v42  ;;  %v6617_v45 = vcombine.high %v4076_v54, %v4080_v55  ;;  %v4068_v62 = vld [vmem:[#allocation8 + $0x780] sm:$0xff] }
 0x241   :  { %v6953_v7 = vadd.f32 %v3576_v3, %v3535_v1  ;;  %5398 = vmatpush1.bf16.msra.mxu0 %v6408_v34  ;;  %v4072_v34 = vld [vmem:[#allocation8 + $0x7a0] sm:$0xff]  ;;  %v6488_v1 = vcombine.low %v3948_v50, %v3952_v52 }
 0x242   :  { %v3578_v14 = vpop.f32.mrf.mxu1  ;;  %v3538_v16 = vpop.f32.mrf.mxu0  ;;  %5399 = vmatprep.subr.bf16.mxu0 %v6401_v2  ;;  %v6481_v2 = vcombine.high %v3940_v60, %v3944_v61  ;;  %v6609_v3 = vcombine.high %v4068_v62, %v4072_v34  ;;  %v4064_v10 = vld [vmem:[#allocation8 + $0x760] sm:$0xff]  ;;  %v6608_v59 = vcombine.low %v4068_v62, %v4072_v34  ;;  %v3885_v34 = vld [vmem:[#allocation8 + $0x1c8] sm:$0xff] }
 0x243   :  { %5439 = vmatpush1.bf16.msra.mxu1 %v6536_v9  ;;  %v6616_v9 = vcombine.low %v4076_v54, %v4080_v55  ;;  %v3924_v16 = vld [vmem:[#allocation8 + $0x300] sm:$0xff]  ;;  %v6600_v21 = vcombine.low %v4060_v13, %v4064_v10 }
 0x244   :  { %v3579_v19 = vpop.f32.mrf.mxu1  ;;  %5440 = vmatprep.subr.bf16.mxu1 %v6529_v5  ;;  %v3932_v5 = vld [vmem:[#allocation8 + $0x340] sm:$0xff] }
 0x245   :  { %5400 = vmatpush1.bf16.msra.mxu0 %v6400_v15  ;;  %v6473_v14 = vcombine.high %v3932_v5, %v3936_v6  ;;  %v6601_v15 = vcombine.high %v4060_v13, %v4064_v10  ;;  %v4056_v19 = vld [vmem:[#allocation8 + $0x720] sm:$0xff] }
 0x246   :  { %5401 = vmatprep.subr.bf16.mxu0 %v6393_v18  ;;  %v4052_v18 = vld [vmem:[#allocation8 + $0x700] sm:$0xff] }
 0x247   :  { %5441 = vmatpush1.bf16.msra.mxu1 %v6528_v17  ;;  %v3928_v17 = vld [vmem:[#allocation8 + $0x320] sm:$0xff]  ;;  %v6593_v25 = vcombine.high %v4052_v18, %v4056_v19  ;;  %v6592_v63 = vcombine.low %v4052_v18, %v4056_v19 }
 0x248   :  { %5442 = vmatprep.subr.bf16.mxu1 %v6521_v20  ;;  %v6472_v20 = vcombine.low %v3932_v5, %v3936_v6  ;;  %v6465_v24 = vcombine.high %v3924_v16, %v3928_v17  ;;  %v3900_v37 = vld [vmem:[#allocation8 + $0x240] sm:$0xff]  ;;  %v6957_v5 = vrot.slane %v6936_v23, %v6827_v53 }
 0x249   :  { %5402 = vmatpush1.bf16.msra.mxu0 %v6392_v27  ;;  %v3920_v27 = vld [vmem:[#allocation8 + $0x2e0] sm:$0xff] }
 0x24a   :  { %5403 = vmatprep.subr.bf16.mxu0 %v6385_v30  ;;  %v4048_v30 = vld [vmem:[#allocation8 + $0x6e0] sm:$0xff]  ;;  %v6457_v32 = vcombine.high %v3916_v26, %v3920_v27 }
 0x24b   :  { %5443 = vmatpush1.bf16.msra.mxu1 %v6520_v29  ;;  %v4044_v29 = vld [vmem:[#allocation8 + $0x6c0] sm:$0xff] }
 0x24c   :  { %5444 = vmatprep.subr.bf16.mxu1 %v6513_v22  ;;  %v6464_v22 = vcombine.low %v3924_v16, %v3928_v17  ;;  %v6585_v33 = vcombine.high %v4044_v29, %v4048_v30  ;;  %v6584_v41 = vcombine.low %v4044_v29, %v4048_v30  ;;  %v3892_v55 = vld [vmem:[#allocation8 + $0x200] sm:$0xff]  ;;  %v6961_v16 = vcombine.high %v6957_v5, %v6957_v5 }
 0x24d   :  { %5404 = vmatpush1.bf16.msra.mxu0 %v6384_v36  ;;  %v3912_v36 = vld [vmem:[#allocation8 + $0x2a0] sm:$0xff] }
 0x24e   :  { %5405 = vmatprep.subr.bf16.mxu0 %v6377_v38  ;;  %v4040_v38 = vld [vmem:[#allocation8 + $0x6a0] sm:$0xff]  ;;  %v6449_v42 = vcombine.high %v3908_v35, %v3912_v36 }
 0x24f   :  { %5445 = vmatpush1.bf16.msra.mxu1 %v6512_v28  ;;  %v4036_v28 = vld [vmem:[#allocation8 + $0x680] sm:$0xff] }
 0x250   :  { %5446 = vmatprep.subr.bf16.mxu1 %v6505_v31  ;;  %v6456_v31 = vcombine.low %v3916_v26, %v3920_v27  ;;  %v6577_v8 = vcombine.high %v4036_v28, %v4040_v38  ;;  %v6576_v50 = vcombine.low %v4036_v28, %v4040_v38  ;;  %v3993_v28 = vld [vmem:[#allocation8 + $0x528] sm:$0xff] }
 0x251   :  { %5406 = vmatpush1.bf16.msra.mxu0 %v6376_v4  ;;  %v3904_v4 = vld [vmem:[#allocation8 + $0x260] sm:$0xff] }
 0x252   :  { %5407 = vmatprep.subr.bf16.mxu0 %v6369_v58  ;;  %v4032_v58 = vld [vmem:[#allocation8 + $0x660] sm:$0xff]  ;;  %v6441_v52 = vcombine.high %v3900_v37, %v3904_v4 }
 0x253   :  { %5447 = vmatpush1.bf16.msra.mxu1 %v6504_v47  ;;  %v4028_v47 = vld [vmem:[#allocation8 + $0x640] sm:$0xff] }
 0x254   :  { %5448 = vmatprep.subr.bf16.mxu1 %v6497_v48  ;;  %v6448_v48 = vcombine.low %v3908_v35, %v3912_v36  ;;  %v6569_v54 = vcombine.high %v4028_v47, %v4032_v58  ;;  %v6568_v60 = vcombine.low %v4028_v47, %v4032_v58  ;;  %v3989_v36 = vld [vmem:[#allocation8 + $0x508] sm:$0xff] }
 0x255   :  { %5408 = vmatpush1.bf16.msra.mxu0 %v6368_v11  ;;  %v3896_v11 = vld [vmem:[#allocation8 + $0x220] sm:$0xff]  ;;  %v6531_v58 = vcombine.high %v3989_v36, %v3993_v28 }
 0x256   :  { %5409 = vmatprep.subr.bf16.mxu0 %v6489_v57  ;;  %v4024_v57 = vld [vmem:[#allocation8 + $0x620] sm:$0xff]  ;;  %v6433_v61 = vcombine.high %v3892_v55, %v3896_v11 }
 0x257   :  { %5449 = vmatpush1.bf16.msra.mxu1 %v6496_v56  ;;  %v4020_v56 = vld [vmem:[#allocation8 + $0x600] sm:$0xff] }
 0x258   :  { %5450 = vmatprep.subr.bf16.mxu1 %v6617_v45  ;;  %v6440_v45 = vcombine.low %v3900_v37, %v3904_v4  ;;  %v6561_v62 = vcombine.high %v4020_v56, %v4024_v57  ;;  %v6560_v6 = vcombine.low %v4020_v56, %v4024_v57 }
 0x259   :  { %5410 = vmatpush2.bf16.msra.mxu0 %v6488_v1  ;;  %v3889_v1 = vld [vmem:[#allocation8 + $0x1e8] sm:$0xff] }
 0x25a   :  { %5411 = vmatprep.subr.bf16.mxu0 %v6481_v2  ;;  %v4017_v2 = vld [vmem:[#allocation8 + $0x5e8] sm:$0xff]  ;;  %v6427_v13 = vcombine.high %v3885_v34, %v3889_v1  ;;  %v6426_v17 = vcombine.low %v3885_v34, %v3889_v1 }
 0x25b   :  { %5451 = vmatpush2.bf16.msra.mxu1 %v6616_v9  ;;  %v4013_v9 = vld [vmem:[#allocation8 + $0x5c8] sm:$0xff] }
 0x25c   :  { %5452 = vmatprep.subr.bf16.mxu1 %v6609_v3  ;;  %v6432_v3 = vcombine.low %v3892_v55, %v3896_v11  ;;  %v6555_v10 = vcombine.high %v4013_v9, %v4017_v2  ;;  %v6554_v23 = vcombine.low %v4013_v9, %v4017_v2  ;;  %v3981_v55 = vld [vmem:[#allocation8 + $0x4c8] sm:$0xff] }
 0x25d   :  { %5412 = vmatpush2.bf16.msra.mxu0 %v6480_v12  ;;  %v3877_v12 = vld [vmem:[#allocation8 + $0x188] sm:$0xff] }
 0x25e   :  { %5413 = vmatprep.subr.bf16.mxu0 %v6473_v14  ;;  %v4005_v14 = vld [vmem:[#allocation8 + $0x588] sm:$0xff] }
 0x25f   :  { %5453 = vmatpush2.bf16.msra.mxu1 %v6608_v59  ;;  %v3881_v59 = vld [vmem:[#allocation8 + $0x1a8] sm:$0xff] }
 0x260   :  { %5454 = vmatprep.subr.bf16.mxu1 %v6601_v15  ;;  %v4009_v15 = vld [vmem:[#allocation8 + $0x5a8] sm:$0xff]  ;;  %v6419_v18 = vcombine.high %v3877_v12, %v3881_v59  ;;  %v6418_v27 = vcombine.low %v3877_v12, %v3881_v59 }
 0x261   :  { %5414 = vmatpush2.bf16.msra.mxu0 %v6472_v20  ;;  %v6547_v19 = vcombine.high %v4005_v14, %v4009_v15  ;;  %v3869_v20 = vld [vmem:[#allocation8 + $0x148] sm:$0xff]  ;;  %v6546_v29 = vcombine.low %v4005_v14, %v4009_v15 }
 0x262   :  { %5415 = vmatprep.subr.bf16.mxu0 %v6465_v24  ;;  %v3997_v24 = vld [vmem:[#allocation8 + $0x548] sm:$0xff] }
 0x263   :  { %5455 = vmatpush2.bf16.msra.mxu1 %v6600_v21  ;;  %v3873_v21 = vld [vmem:[#allocation8 + $0x168] sm:$0xff] }
 0x264   :  { %5456 = vmatprep.subr.bf16.mxu1 %v6593_v25  ;;  %v4001_v25 = vld [vmem:[#allocation8 + $0x568] sm:$0xff]  ;;  %v6411_v30 = vcombine.high %v3869_v20, %v3873_v21 }
 0x265   :  { %5416 = vmatpush2.bf16.msra.mxu0 %v6464_v22  ;;  %v3973_v34 = vld [vmem:[#allocation8 + $0x488] sm:$0xff] }
 0x266   :  { %5417 = vmatprep.subr.bf16.mxu0 %v6457_v32  ;;  %v3861_v32 = vld [vmem:[#allocation8 + $0x108] sm:$0xff] }
 0x267   :  { %5457 = vmatpush2.bf16.msra.mxu1 %v6592_v63  ;;  %v6539_v63 = vcombine.high %v3997_v24, %v4001_v25  ;;  %v3977_v1 = vld [vmem:[#allocation8 + $0x4a8] sm:$0xff] }
 0x268   :  { %5458 = vmatprep.subr.bf16.mxu1 %v6585_v33  ;;  %v3865_v33 = vld [vmem:[#allocation8 + $0x128] sm:$0xff]  ;;  %v6514_v15 = vcombine.low %v3973_v34, %v3977_v1 }
 0x269   :  { %5418 = vmatpush2.bf16.msra.mxu0 %v6456_v31  ;;  %v6403_v37 = vcombine.high %v3861_v32, %v3865_v33  ;;  %v6402_v11 = vcombine.low %v3861_v32, %v3865_v33  ;;  %v3965_v12 = vld [vmem:[#allocation8 + $0x448] sm:$0xff] }
 0x26a   :  { %5419 = vmatprep.subr.bf16.mxu0 %v6449_v42  ;;  %v3969_v59 = vld [vmem:[#allocation8 + $0x468] sm:$0xff] }
 0x26b   :  { %5459 = vmatpush2.bf16.msra.mxu1 %v6584_v41  ;;  %v6410_v41 = vcombine.low %v3869_v20, %v3873_v21  ;;  %v3957_v20 = vld [vmem:[#allocation8 + $0x408] sm:$0xff] }
 0x26c   :  { %5460 = vmatprep.subr.bf16.mxu1 %v6577_v8  ;;  %v6538_v8 = vcombine.low %v3997_v24, %v4001_v25  ;;  %v3961_v21 = vld [vmem:[#allocation8 + $0x428] sm:$0xff]  ;;  %v6506_v25 = vcombine.low %v3965_v12, %v3969_v59 }
 0x26d   :  { %5420 = vmatpush2.bf16.msra.mxu0 %v6448_v48  ;;  %v3853_v48 = vld [vmem:[#allocation8 + $0xc8] sm:$0xff]  ;;  %v6498_v33 = vcombine.low %v3957_v20, %v3961_v21 }
 0x26e   :  { %5421 = vmatprep.subr.bf16.mxu0 %v6441_v52 }
 0x26f   :  { %5461 = vmatpush2.bf16.msra.mxu1 %v6576_v50  ;;  %v3857_v50 = vld [vmem:[#allocation8 + $0xe8] sm:$0xff] }
 0x270   :  { %5462 = vmatprep.subr.bf16.mxu1 %v6569_v54  ;;  %v6394_v9 = vcombine.low %v3853_v48, %v3857_v50 }
 0x271   :  { %5422 = vmatpush2.bf16.msra.mxu0 %v6440_v45  ;;  %v6530_v45 = vcombine.low %v3989_v36, %v3993_v28  ;;  %v3941_v28 = vld [vmem:[#allocation8 + $0x388] sm:$0xff] }
 0x272   :  { %5423 = vmatprep.subr.bf16.mxu0 %v6433_v61  ;;  %v3845_v61 = vld [vmem:[#allocation8 + $0x88] sm:$0xff] }
 0x273   :  { %5463 = vmatpush2.bf16.msra.mxu1 %v6568_v60  ;;  %v6395_v60 = vcombine.high %v3853_v48, %v3857_v50  ;;  %v4061_v48 = vld [vmem:[#allocation8 + $0x748] sm:$0xff] }
 0x274   :  { %5464 = vmatprep.subr.bf16.mxu1 %v6561_v62  ;;  %v3849_v62 = vld [vmem:[#allocation8 + $0xa8] sm:$0xff] }
 0x275   :  { %5424 = vmatpush2.bf16.msra.mxu0 %v6432_v3  ;;  %v6387_v3 = vcombine.high %v3845_v61, %v3849_v62  ;;  %v6386_v14 = vcombine.low %v3845_v61, %v3849_v62  ;;  %v4065_v50 = vld [vmem:[#allocation8 + $0x768] sm:$0xff] }
 0x276   :  { %5475 = vmatprep.subr.bf16.mxu0 %v6427_v13  ;;  %v3837_v13 = vld [vmem:[#allocation8 + $0x48] sm:$0xff]  ;;  %v6602_v62 = vcombine.low %v4061_v48, %v4065_v50 }
 0x277   :  { %5465 = vmatpush2.bf16.msra.mxu1 %v6560_v6  ;;  %v6515_v6 = vcombine.high %v3973_v34, %v3977_v1 }
 0x278   :  { %5516 = vmatprep.subr.bf16.mxu1 %v6555_v10  ;;  %5426 = vmatmul.mubr.bf16.vlgmr.msra.gmra.mxu0 %v6957_v5  ;;  %v3841_v10 = vld [vmem:[#allocation8 + $0x68] sm:$0xff] }
 0x279   :  { %5476 = vmatpush1.bf16.msra.mxu0 %v6426_v17  ;;  %5507 = vmatprep.mubr.bf16.mxu0 %v6941_v49  ;;  %v6379_v17 = vcombine.high %v3837_v13, %v3841_v10  ;;  %v6378_v24 = vcombine.low %v3837_v13, %v3841_v10 }
 0x27a   :  { %v3656_v26 = vpop.f32.mrf.mxu1  ;;  %5467 = vmatmul.mubr.bf16.vlgmr.msra.gmra.mxu1 %v6961_v16  ;;  %5477 = vmatprep.subr.bf16.mxu0 %v6419_v18  ;;  %v3829_v18 = vld [vmem:[#allocation8 + $0x8] sm:$0xff] }
 0x27b   :  { %5517 = vmatpush1.bf16.msra.mxu1 %v6554_v23  ;;  %5548 = vmatprep.mubr.bf16.mxu1 %v6946_v51  ;;  %v6507_v23 = vcombine.high %v3965_v12, %v3969_v59 }
 0x27c   :  { %v3658_v22 = vpop.f32.mrf.mxu1  ;;  %5518 = vmatprep.subr.bf16.mxu1 %v6547_v19  ;;  %v3615_v35 = vpop.f32.mrf.mxu0  ;;  %v3833_v19 = vld [vmem:[#allocation8 + $0x28] sm:$0xff] }
 0x27d   :  { %v3616_v38 = vadd.f32 %v3615_v35, %v6951_v0  ;;  %5478 = vmatpush1.bf16.msra.mxu0 %v6418_v27  ;;  %v3985_v0 = vld [vmem:[#allocation8 + $0x4e8] sm:$0xff]  ;;  %v6499_v27 = vcombine.high %v3957_v20, %v3961_v21  ;;  %v6370_v32 = vcombine.low %v3829_v18, %v3833_v19 }
 0x27e   :  { %v3660_v31 = vpop.f32.mrf.mxu1  ;;  %v3617_v42 = vpop.f32.mrf.mxu0  ;;  %5479 = vmatprep.subr.bf16.mxu0 %v6411_v30  ;;  %v6522_v2 = vcombine.low %v3981_v55, %v3985_v0  ;;  %v3953_v30 = vld [vmem:[#allocation8 + $0x3e8] sm:$0xff] }
 0x27f   :  { %5519 = vmatpush1.bf16.msra.mxu1 %v6546_v29  ;;  %v3618_v4 = vadd.f32 %v3617_v42, %v6953_v7  ;;  %v6969_v52 = vadd.f32 %v3656_v26, %v3616_v38  ;;  %v6523_v7 = vcombine.high %v3981_v55, %v3985_v0  ;;  %v6371_v26 = vcombine.high %v3829_v18, %v3833_v19  ;;  %v3949_v29 = vld [vmem:[#allocation8 + $0x3c8] sm:$0xff] }
 0x280   :  { %v3661_v47 = vpop.f32.mrf.mxu1  ;;  %5520 = vmatprep.subr.bf16.mxu1 %v6539_v63  ;;  %v3619_v54 = vpop.f32.mrf.mxu0  ;;  %v4081_v63 = vld [vmem:[#allocation8 + $0x7e8] sm:$0xff]  ;;  %v6491_v35 = vcombine.high %v3949_v29, %v3953_v30  ;;  %v6490_v42 = vcombine.low %v3949_v29, %v3953_v30 }
 0x281   :  { %5480 = vmatpush1.bf16.msra.mxu0 %v6410_v41  ;;  %v6971_v56 = vadd.f32 %v3658_v22, %v3618_v4  ;;  %v4077_v22 = vld [vmem:[#allocation8 + $0x7c8] sm:$0xff] }
 0x282   :  { %v3620_v57 = vpop.f32.mrf.mxu0  ;;  %5481 = vmatprep.subr.bf16.mxu0 %v6403_v37  ;;  %v6619_v36 = vcombine.high %v4077_v22, %v4081_v63  ;;  %v3945_v38 = vld [vmem:[#allocation8 + $0x3a8] sm:$0xff] }
 0x283   :  { %5521 = vmatpush1.bf16.msra.mxu1 %v6538_v8  ;;  %v4069_v31 = vld [vmem:[#allocation8 + $0x788] sm:$0xff]  ;;  %v6618_v8 = vcombine.low %v4077_v22, %v4081_v63  ;;  %v6483_v37 = vcombine.high %v3941_v28, %v3945_v38  ;;  %v6482_v54 = vcombine.low %v3941_v28, %v3945_v38 }
 0x284   :  { %5522 = vmatprep.subr.bf16.mxu1 %v6531_v58  ;;  %v4073_v41 = vld [vmem:[#allocation8 + $0x7a8] sm:$0xff] }
 0x285   :  { %5482 = vmatpush1.bf16.msra.mxu0 %v6402_v11  ;;  %v6611_v4 = vcombine.high %v4069_v31, %v4073_v41  ;;  %v3933_v47 = vld [vmem:[#allocation8 + $0x348] sm:$0xff]  ;;  %v6610_v55 = vcombine.low %v4069_v31, %v4073_v41  ;;  %v6603_v11 = vcombine.high %v4061_v48, %v4065_v50 }
 0x286   :  { %5483 = vmatprep.subr.bf16.mxu0 %v6395_v60  ;;  %v3937_v58 = vld [vmem:[#allocation8 + $0x368] sm:$0xff] }
 0x287   :  { %5523 = vmatpush1.bf16.msra.mxu1 %v6530_v45  ;;  %v6475_v0 = vcombine.high %v3933_v47, %v3937_v58  ;;  %v3925_v57 = vld [vmem:[#allocation8 + $0x308] sm:$0xff]  ;;  %v6474_v61 = vcombine.low %v3933_v47, %v3937_v58 }
 0x288   :  { %5524 = vmatprep.subr.bf16.mxu1 %v6523_v7  ;;  %v3929_v45 = vld [vmem:[#allocation8 + $0x328] sm:$0xff] }
 0x289   :  { %5484 = vmatpush1.bf16.msra.mxu0 %v6394_v9  ;;  %v4053_v60 = vld [vmem:[#allocation8 + $0x708] sm:$0xff]  ;;  %v6467_v34 = vcombine.high %v3925_v57, %v3929_v45  ;;  %v6466_v13 = vcombine.low %v3925_v57, %v3929_v45 }
 0x28a   :  { %5485 = vmatprep.subr.bf16.mxu0 %v6387_v3  ;;  %v4057_v7 = vld [vmem:[#allocation8 + $0x728] sm:$0xff] }
 0x28b   :  { %5525 = vmatpush1.bf16.msra.mxu1 %v6522_v2  ;;  %v6595_v1 = vcombine.high %v4053_v60, %v4057_v7  ;;  %v3917_v9 = vld [vmem:[#allocation8 + $0x2c8] sm:$0xff]  ;;  %v6594_v10 = vcombine.low %v4053_v60, %v4057_v7 }
 0x28c   :  { %5526 = vmatprep.subr.bf16.mxu1 %v6515_v6  ;;  %v3921_v2 = vld [vmem:[#allocation8 + $0x2e8] sm:$0xff] }
 0x28d   :  { %5486 = vmatpush1.bf16.msra.mxu0 %v6386_v14  ;;  %v4045_v3 = vld [vmem:[#allocation8 + $0x6c8] sm:$0xff]  ;;  %v6459_v12 = vcombine.high %v3917_v9, %v3921_v2  ;;  %v6458_v18 = vcombine.low %v3917_v9, %v3921_v2 }
 0x28e   :  { %5487 = vmatprep.subr.bf16.mxu0 %v6379_v17  ;;  %v4049_v6 = vld [vmem:[#allocation8 + $0x6e8] sm:$0xff] }
 0x28f   :  { %5527 = vmatpush1.bf16.msra.mxu1 %v6514_v15  ;;  %v6587_v59 = vcombine.high %v4045_v3, %v4049_v6  ;;  %v3909_v14 = vld [vmem:[#allocation8 + $0x288] sm:$0xff]  ;;  %v6586_v19 = vcombine.low %v4045_v3, %v4049_v6 }
 0x290   :  { %5528 = vmatprep.subr.bf16.mxu1 %v6507_v23  ;;  %v3913_v15 = vld [vmem:[#allocation8 + $0x2a8] sm:$0xff] }
 0x291   :  { %5488 = vmatpush1.bf16.msra.mxu0 %v6378_v24  ;;  %v4037_v17 = vld [vmem:[#allocation8 + $0x688] sm:$0xff]  ;;  %v6451_v20 = vcombine.high %v3909_v14, %v3913_v15  ;;  %v6450_v29 = vcombine.low %v3909_v14, %v3913_v15  ;;  %v3990_v15 = vld [vmem:[#allocation8 + $0x510] sm:$0xff] }
 0x292   :  { %5489 = vmatprep.subr.bf16.mxu0 %v6371_v26  ;;  %v4041_v23 = vld [vmem:[#allocation8 + $0x6a8] sm:$0xff] }
 0x293   :  { %5529 = vmatpush1.bf16.msra.mxu1 %v6506_v25  ;;  %v6579_v21 = vcombine.high %v4037_v17, %v4041_v23  ;;  %v3901_v24 = vld [vmem:[#allocation8 + $0x248] sm:$0xff]  ;;  %v6578_v30 = vcombine.low %v4037_v17, %v4041_v23  ;;  %v3994_v17 = vld [vmem:[#allocation8 + $0x530] sm:$0xff] }
 0x294   :  { %5530 = vmatprep.subr.bf16.mxu1 %v6499_v27  ;;  %v3905_v25 = vld [vmem:[#allocation8 + $0x268] sm:$0xff] }
 0x295   :  { %5490 = vmatpush1.bf16.msra.mxu0 %v6370_v32  ;;  %v4029_v26 = vld [vmem:[#allocation8 + $0x648] sm:$0xff]  ;;  %v6443_v22 = vcombine.high %v3901_v24, %v3905_v25  ;;  %v6442_v28 = vcombine.low %v3901_v24, %v3905_v25 }
 0x296   :  { %5491 = vmatprep.subr.bf16.mxu0 %v6491_v35  ;;  %v4033_v27 = vld [vmem:[#allocation8 + $0x668] sm:$0xff] }
 0x297   :  { %5531 = vmatpush1.bf16.msra.mxu1 %v6498_v33  ;;  %v6571_v63 = vcombine.high %v4029_v26, %v4033_v27  ;;  %v3893_v32 = vld [vmem:[#allocation8 + $0x208] sm:$0xff]  ;;  %v6570_v38 = vcombine.low %v4029_v26, %v4033_v27  ;;  %v6533_v27 = vcombine.high %v3990_v15, %v3994_v17 }
 0x298   :  { %5532 = vmatprep.subr.bf16.mxu1 %v6619_v36  ;;  %v3897_v33 = vld [vmem:[#allocation8 + $0x228] sm:$0xff] }
 0x299   :  { %5492 = vmatpush2.bf16.msra.mxu0 %v6490_v42  ;;  %v4021_v35 = vld [vmem:[#allocation8 + $0x608] sm:$0xff]  ;;  %v6435_v31 = vcombine.high %v3893_v32, %v3897_v33  ;;  %v3886_v42 = vld [vmem:[#allocation8 + $0x1d0] sm:$0xff]  ;;  %v6434_v47 = vcombine.low %v3893_v32, %v3897_v33 }
 0x29a   :  { %5493 = vmatprep.subr.bf16.mxu0 %v6483_v37  ;;  %v4025_v36 = vld [vmem:[#allocation8 + $0x628] sm:$0xff]  ;;  %v4014_v37 = vld [vmem:[#allocation8 + $0x5d0] sm:$0xff] }
 0x29b   :  { %5533 = vmatpush2.bf16.msra.mxu1 %v6618_v8  ;;  %v6563_v41 = vcombine.high %v4021_v35, %v4025_v36  ;;  %v3890_v8 = vld [vmem:[#allocation8 + $0x1f0] sm:$0xff]  ;;  %v6562_v58 = vcombine.low %v4021_v35, %v4025_v36  ;;  %v6532_v36 = vcombine.low %v3990_v15, %v3994_v17 }
 0x29c   :  { %5534 = vmatprep.subr.bf16.mxu1 %v6611_v4  ;;  %v4018_v4 = vld [vmem:[#allocation8 + $0x5f0] sm:$0xff]  ;;  %v6429_v48 = vcombine.high %v3886_v42, %v3890_v8  ;;  %v6428_v57 = vcombine.low %v3886_v42, %v3890_v8 }
 0x29d   :  { %5494 = vmatpush2.bf16.msra.mxu0 %v6482_v54  ;;  %v6557_v50 = vcombine.high %v4014_v37, %v4018_v4  ;;  %v3878_v54 = vld [vmem:[#allocation8 + $0x190] sm:$0xff]  ;;  %v6556_v45 = vcombine.low %v4014_v37, %v4018_v4 }
 0x29e   :  { %5495 = vmatprep.subr.bf16.mxu0 %v6475_v0  ;;  %v4006_v0 = vld [vmem:[#allocation8 + $0x590] sm:$0xff] }
 0x29f   :  { %5535 = vmatpush2.bf16.msra.mxu1 %v6610_v55  ;;  %v3882_v55 = vld [vmem:[#allocation8 + $0x1b0] sm:$0xff] }
 0x2a0   :  { %5536 = vmatprep.subr.bf16.mxu1 %v6603_v11  ;;  %v4010_v11 = vld [vmem:[#allocation8 + $0x5b0] sm:$0xff]  ;;  %v6421_v60 = vcombine.high %v3878_v54, %v3882_v55  ;;  %v6420_v2 = vcombine.low %v3878_v54, %v3882_v55 }
 0x2a1   :  { %5496 = vmatpush2.bf16.msra.mxu0 %v6474_v61  ;;  %v6549_v7 = vcombine.high %v4006_v0, %v4010_v11  ;;  %v3870_v61 = vld [vmem:[#allocation8 + $0x150] sm:$0xff]  ;;  %v6548_v3 = vcombine.low %v4006_v0, %v4010_v11 }
 0x2a2   :  { %5497 = vmatprep.subr.bf16.mxu0 %v6467_v34  ;;  %v3998_v34 = vld [vmem:[#allocation8 + $0x550] sm:$0xff] }
 0x2a3   :  { %5537 = vmatpush2.bf16.msra.mxu1 %v6602_v62  ;;  %v3874_v62 = vld [vmem:[#allocation8 + $0x170] sm:$0xff] }
 0x2a4   :  { %5538 = vmatprep.subr.bf16.mxu1 %v6595_v1  ;;  %v4002_v1 = vld [vmem:[#allocation8 + $0x570] sm:$0xff]  ;;  %v6413_v6 = vcombine.high %v3870_v61, %v3874_v62 }
 0x2a5   :  { %5498 = vmatpush2.bf16.msra.mxu0 %v6466_v13  ;;  %v3986_v32 = vld [vmem:[#allocation8 + $0x4f0] sm:$0xff] }
 0x2a6   :  { %5499 = vmatprep.subr.bf16.mxu0 %v6459_v12  ;;  %v3862_v12 = vld [vmem:[#allocation8 + $0x110] sm:$0xff] }
 0x2a7   :  { %5539 = vmatpush2.bf16.msra.mxu1 %v6594_v10  ;;  %v6541_v10 = vcombine.high %v3998_v34, %v4002_v1  ;;  %v3974_v42 = vld [vmem:[#allocation8 + $0x490] sm:$0xff] }
 0x2a8   :  { %5540 = vmatprep.subr.bf16.mxu1 %v6587_v59  ;;  %v3866_v59 = vld [vmem:[#allocation8 + $0x130] sm:$0xff] }
 0x2a9   :  { %5500 = vmatpush2.bf16.msra.mxu0 %v6458_v18  ;;  %v6405_v24 = vcombine.high %v3862_v12, %v3866_v59  ;;  %v6404_v33 = vcombine.low %v3862_v12, %v3866_v59  ;;  %v3978_v8 = vld [vmem:[#allocation8 + $0x4b0] sm:$0xff] }
 0x2aa   :  { %5501 = vmatprep.subr.bf16.mxu0 %v6451_v20  ;;  %v3966_v54 = vld [vmem:[#allocation8 + $0x450] sm:$0xff]  ;;  %v6516_v11 = vcombine.low %v3974_v42, %v3978_v8 }
 0x2ab   :  { %5541 = vmatpush2.bf16.msra.mxu1 %v6586_v19  ;;  %v6412_v19 = vcombine.low %v3870_v61, %v3874_v62  ;;  %v3970_v55 = vld [vmem:[#allocation8 + $0x470] sm:$0xff] }
 0x2ac   :  { %5542 = vmatprep.subr.bf16.mxu1 %v6579_v21  ;;  %v6540_v21 = vcombine.low %v3998_v34, %v4002_v1  ;;  %v3958_v61 = vld [vmem:[#allocation8 + $0x410] sm:$0xff]  ;;  %v6508_v1 = vcombine.low %v3966_v54, %v3970_v55 }
 0x2ad   :  { %5502 = vmatpush2.bf16.msra.mxu0 %v6450_v29  ;;  %v3854_v29 = vld [vmem:[#allocation8 + $0xd0] sm:$0xff] }
 0x2ae   :  { %5503 = vmatprep.subr.bf16.mxu0 %v6443_v22  ;;  %v3962_v62 = vld [vmem:[#allocation8 + $0x430] sm:$0xff] }
 0x2af   :  { %5543 = vmatpush2.bf16.msra.mxu1 %v6578_v30  ;;  %v3858_v30 = vld [vmem:[#allocation8 + $0xf0] sm:$0xff]  ;;  %v6500_v59 = vcombine.low %v3958_v61, %v3962_v62 }
 0x2b0   :  { %5544 = vmatprep.subr.bf16.mxu1 %v6571_v63  ;;  %v3982_v63 = vld [vmem:[#allocation8 + $0x4d0] sm:$0xff]  ;;  %v6396_v37 = vcombine.low %v3854_v29, %v3858_v30 }
 0x2b1   :  { %5504 = vmatpush2.bf16.msra.mxu0 %v6442_v28  ;;  %v6397_v28 = vcombine.high %v3854_v29, %v3858_v30  ;;  %v6524_v4 = vcombine.low %v3982_v63, %v3986_v32  ;;  %v3942_v17 = vld [vmem:[#allocation8 + $0x390] sm:$0xff] }
 0x2b2   :  { %5505 = vmatprep.subr.bf16.mxu0 %v6435_v31  ;;  %v3846_v31 = vld [vmem:[#allocation8 + $0x90] sm:$0xff] }
 0x2b3   :  { %5545 = vmatpush2.bf16.msra.mxu1 %v6570_v38  ;;  %v6525_v38 = vcombine.high %v3982_v63, %v3986_v32  ;;  %v3934_v29 = vld [vmem:[#allocation8 + $0x350] sm:$0xff] }
 0x2b4   :  { %5546 = vmatprep.subr.bf16.mxu1 %v6563_v41  ;;  %v3850_v41 = vld [vmem:[#allocation8 + $0xb0] sm:$0xff] }
 0x2b5   :  { %5506 = vmatpush2.bf16.msra.mxu0 %v6434_v47  ;;  %v6389_v47 = vcombine.high %v3846_v31, %v3850_v41  ;;  %v6388_v0 = vcombine.low %v3846_v31, %v3850_v41  ;;  %v3938_v30 = vld [vmem:[#allocation8 + $0x370] sm:$0xff] }
 0x2b6   :  { %5557 = vmatprep.subr.bf16.mxu0 %v6429_v48  ;;  %v3838_v48 = vld [vmem:[#allocation8 + $0x50] sm:$0xff] }
 0x2b7   :  { %5547 = vmatpush2.bf16.msra.mxu1 %v6562_v58  ;;  %v6517_v58 = vcombine.high %v3974_v42, %v3978_v8  ;;  %v4066_v63 = vld [vmem:[#allocation8 + $0x770] sm:$0xff]  ;;  %v6476_v42 = vcombine.low %v3934_v29, %v3938_v30 }
 0x2b8   :  { %5598 = vmatprep.subr.bf16.mxu1 %v6557_v50  ;;  %5508 = vmatmul.mubr.bf16.vlgmr.msra.gmra.mxu0 %v6957_v5  ;;  %v3842_v50 = vld [vmem:[#allocation8 + $0x70] sm:$0xff] }
 0x2b9   :  { %5558 = vmatpush1.bf16.msra.mxu0 %v6428_v57  ;;  %5589 = vmatprep.mubr.bf16.mxu0 %v6941_v49  ;;  %v6381_v57 = vcombine.high %v3838_v48, %v3842_v50  ;;  %v6380_v34 = vcombine.low %v3838_v48, %v3842_v50  ;;  %v4054_v31 = vld [vmem:[#allocation8 + $0x710] sm:$0xff] }
 0x2ba   :  { %v3697_v9 = vpop.f32.mrf.mxu1  ;;  %5549 = vmatmul.mubr.bf16.vlgmr.msra.gmra.mxu1 %v6961_v16  ;;  %5559 = vmatprep.subr.bf16.mxu0 %v6421_v60  ;;  %v3830_v60 = vld [vmem:[#allocation8 + $0x10] sm:$0xff] }
 0x2bb   :  { %5599 = vmatpush1.bf16.msra.mxu1 %v6556_v45  ;;  %5630 = vmatprep.mubr.bf16.mxu1 %v6946_v51  ;;  %v6509_v45 = vcombine.high %v3966_v54, %v3970_v55  ;;  %v4058_v41 = vld [vmem:[#allocation8 + $0x730] sm:$0xff] }
 0x2bc   :  { %v3699_v13 = vpop.f32.mrf.mxu1  ;;  %5600 = vmatprep.subr.bf16.mxu1 %v6549_v7  ;;  %v3738_v14 = vpop.f32.mrf.mxu0  ;;  %v3834_v7 = vld [vmem:[#allocation8 + $0x30] sm:$0xff]  ;;  %v6596_v55 = vcombine.low %v4054_v31, %v4058_v41 }
 0x2bd   :  { %v6977_v18 = vadd.f32 %v3738_v14, %v3697_v9  ;;  %5560 = vmatpush1.bf16.msra.mxu0 %v6420_v2  ;;  %v6373_v9 = vcombine.high %v3830_v60, %v3834_v7  ;;  %v6501_v2 = vcombine.high %v3958_v61, %v3962_v62  ;;  %v6372_v12 = vcombine.low %v3830_v60, %v3834_v7  ;;  %v4046_v48 = vld [vmem:[#allocation8 + $0x6d0] sm:$0xff] }
 0x2be   :  { %v3701_v23 = vpop.f32.mrf.mxu1  ;;  %v3740_v20 = vpop.f32.mrf.mxu0  ;;  %5561 = vmatprep.subr.bf16.mxu0 %v6413_v6  ;;  %v3954_v6 = vld [vmem:[#allocation8 + $0x3f0] sm:$0xff] }
 0x2bf   :  { %5601 = vmatpush1.bf16.msra.mxu1 %v6548_v3  ;;  %v6979_v26 = vadd.f32 %v3740_v20, %v3699_v13  ;;  %v3950_v3 = vld [vmem:[#allocation8 + $0x3d0] sm:$0xff] }
 0x2c0   :  { %v3702_v25 = vpop.f32.mrf.mxu1  ;;  %5602 = vmatprep.subr.bf16.mxu1 %v6541_v10  ;;  %v3742_v22 = vpop.f32.mrf.mxu0  ;;  %v4078_v13 = vld [vmem:[#allocation8 + $0x7d0] sm:$0xff]  ;;  %v6493_v14 = vcombine.high %v3950_v3, %v3954_v6 }
 0x2c1   :  { %5562 = vmatpush1.bf16.msra.mxu0 %v6412_v19  ;;  %v4082_v10 = vld [vmem:[#allocation8 + $0x7f0] sm:$0xff] }
 0x2c2   :  { %v3743_v35 = vpop.f32.mrf.mxu0  ;;  %5563 = vmatprep.subr.bf16.mxu0 %v6405_v24  ;;  %v6621_v15 = vcombine.high %v4078_v13, %v4082_v10  ;;  %v3946_v23 = vld [vmem:[#allocation8 + $0x3b0] sm:$0xff]  ;;  %v6620_v24 = vcombine.low %v4078_v13, %v4082_v10 }
 0x2c3   :  { %5603 = vmatpush1.bf16.msra.mxu1 %v6540_v21  ;;  %v4070_v19 = vld [vmem:[#allocation8 + $0x790] sm:$0xff]  ;;  %v6492_v21 = vcombine.low %v3950_v3, %v3954_v6  ;;  %v6485_v25 = vcombine.high %v3942_v17, %v3946_v23  ;;  %v6484_v32 = vcombine.low %v3942_v17, %v3946_v23  ;;  %v6477_v35 = vcombine.high %v3934_v29, %v3938_v30  ;;  %v4015_v29 = vld [vmem:[#allocation8 + $0x5d8] sm:$0xff] }
 0x2c4   :  { %5604 = vmatprep.subr.bf16.mxu1 %v6533_v27  ;;  %v4074_v20 = vld [vmem:[#allocation8 + $0x7b0] sm:$0xff]  ;;  %v4019_v30 = vld [vmem:[#allocation8 + $0x5f8] sm:$0xff] }
 0x2c5   :  { %5564 = vmatpush1.bf16.msra.mxu0 %v6404_v33  ;;  %v6613_v27 = vcombine.high %v4070_v19, %v4074_v20  ;;  %v4062_v22 = vld [vmem:[#allocation8 + $0x750] sm:$0xff]  ;;  %v6612_v33 = vcombine.low %v4070_v19, %v4074_v20 }
 0x2c6   :  { %5565 = vmatprep.subr.bf16.mxu0 %v6397_v28  ;;  %v3926_v28 = vld [vmem:[#allocation8 + $0x310] sm:$0xff]  ;;  %v6604_v8 = vcombine.low %v4062_v22, %v4066_v63 }
 0x2c7   :  { %5605 = vmatpush1.bf16.msra.mxu1 %v6532_v36  ;;  %v6605_v36 = vcombine.high %v4062_v22, %v4066_v63  ;;  %v4050_v50 = vld [vmem:[#allocation8 + $0x6f0] sm:$0xff] }
 0x2c8   :  { %5606 = vmatprep.subr.bf16.mxu1 %v6525_v38  ;;  %v3930_v38 = vld [vmem:[#allocation8 + $0x330] sm:$0xff]  ;;  %v6588_v62 = vcombine.low %v4046_v48, %v4050_v50 }
 0x2c9   :  { %5566 = vmatpush1.bf16.msra.mxu0 %v6396_v37  ;;  %v6469_v37 = vcombine.high %v3926_v28, %v3930_v38  ;;  %v6468_v54 = vcombine.low %v3926_v28, %v3930_v38  ;;  %v4038_v60 = vld [vmem:[#allocation8 + $0x690] sm:$0xff]  ;;  %v4007_v28 = vld [vmem:[#allocation8 + $0x598] sm:$0xff] }
 0x2ca   :  { %5567 = vmatprep.subr.bf16.mxu0 %v6389_v47  ;;  %v3918_v47 = vld [vmem:[#allocation8 + $0x2d0] sm:$0xff]  ;;  %v4011_v38 = vld [vmem:[#allocation8 + $0x5b8] sm:$0xff] }
 0x2cb   :  { %5607 = vmatpush1.bf16.msra.mxu1 %v6524_v4  ;;  %v6597_v4 = vcombine.high %v4054_v31, %v4058_v41  ;;  %v4042_v7 = vld [vmem:[#allocation8 + $0x6b0] sm:$0xff]  ;;  %v6558_v41 = vcombine.low %v4015_v29, %v4019_v30 }
 0x2cc   :  { %5608 = vmatprep.subr.bf16.mxu1 %v6517_v58  ;;  %v3922_v58 = vld [vmem:[#allocation8 + $0x2f0] sm:$0xff]  ;;  %v6580_v10 = vcombine.low %v4038_v60, %v4042_v7 }
 0x2cd   :  { %5568 = vmatpush1.bf16.msra.mxu0 %v6388_v0  ;;  %v6461_v0 = vcombine.high %v3918_v47, %v3922_v58  ;;  %v6460_v61 = vcombine.low %v3918_v47, %v3922_v58  ;;  %v4030_v3 = vld [vmem:[#allocation8 + $0x650] sm:$0xff]  ;;  %v3999_v58 = vld [vmem:[#allocation8 + $0x558] sm:$0xff] }
 0x2ce   :  { %5569 = vmatprep.subr.bf16.mxu0 %v6381_v57  ;;  %v3910_v57 = vld [vmem:[#allocation8 + $0x290] sm:$0xff] }
 0x2cf   :  { %5609 = vmatpush1.bf16.msra.mxu1 %v6516_v11  ;;  %v6589_v11 = vcombine.high %v4046_v48, %v4050_v50  ;;  %v4034_v6 = vld [vmem:[#allocation8 + $0x670] sm:$0xff]  ;;  %v4003_v48 = vld [vmem:[#allocation8 + $0x578] sm:$0xff] }
 0x2d0   :  { %5610 = vmatprep.subr.bf16.mxu1 %v6509_v45  ;;  %v3914_v45 = vld [vmem:[#allocation8 + $0x2b0] sm:$0xff]  ;;  %v6572_v20 = vcombine.low %v4030_v3, %v4034_v6 }
 0x2d1   :  { %5570 = vmatpush1.bf16.msra.mxu0 %v6380_v34  ;;  %v6453_v34 = vcombine.high %v3910_v57, %v3914_v45  ;;  %v6452_v13 = vcombine.low %v3910_v57, %v3914_v45  ;;  %v4022_v17 = vld [vmem:[#allocation8 + $0x610] sm:$0xff] }
 0x2d2   :  { %5571 = vmatprep.subr.bf16.mxu0 %v6373_v9  ;;  %v3902_v9 = vld [vmem:[#allocation8 + $0x250] sm:$0xff] }
 0x2d3   :  { %5611 = vmatpush1.bf16.msra.mxu1 %v6508_v1  ;;  %v6581_v1 = vcombine.high %v4038_v60, %v4042_v7  ;;  %v4026_v23 = vld [vmem:[#allocation8 + $0x630] sm:$0xff]  ;;  %v6543_v60 = vcombine.high %v3999_v58, %v4003_v48  ;;  %v3863_v7 = vld [vmem:[#allocation8 + $0x118] sm:$0xff] }
 0x2d4   :  { %5612 = vmatprep.subr.bf16.mxu1 %v6501_v2  ;;  %v3906_v2 = vld [vmem:[#allocation8 + $0x270] sm:$0xff]  ;;  %v6564_v63 = vcombine.low %v4022_v17, %v4026_v23 }
 0x2d5   :  { %5572 = vmatpush1.bf16.msra.mxu0 %v6372_v12  ;;  %v6445_v12 = vcombine.high %v3902_v9, %v3906_v2  ;;  %v6444_v19 = vcombine.low %v3902_v9, %v3906_v2  ;;  %v3991_v9 = vld [vmem:[#allocation8 + $0x518] sm:$0xff] }
 0x2d6   :  { %5573 = vmatprep.subr.bf16.mxu0 %v6493_v14  ;;  %v3894_v14 = vld [vmem:[#allocation8 + $0x210] sm:$0xff]  ;;  %v3995_v2 = vld [vmem:[#allocation8 + $0x538] sm:$0xff] }
 0x2d7   :  { %5613 = vmatpush1.bf16.msra.mxu1 %v6500_v59  ;;  %v6573_v59 = vcombine.high %v4030_v3, %v4034_v6 }
 0x2d8   :  { %5614 = vmatprep.subr.bf16.mxu1 %v6621_v15  ;;  %v3898_v15 = vld [vmem:[#allocation8 + $0x230] sm:$0xff] }
 0x2d9   :  { %5574 = vmatpush2.bf16.msra.mxu0 %v6492_v21  ;;  %v6437_v21 = vcombine.high %v3894_v14, %v3898_v15  ;;  %v6436_v22 = vcombine.low %v3894_v14, %v3898_v15  ;;  %v3855_v14 = vld [vmem:[#allocation8 + $0xd8] sm:$0xff] }
 0x2da   :  { %5575 = vmatprep.subr.bf16.mxu0 %v6485_v25  ;;  %v3887_v25 = vld [vmem:[#allocation8 + $0x1d8] sm:$0xff] }
 0x2db   :  { %5615 = vmatpush2.bf16.msra.mxu1 %v6620_v24  ;;  %v6565_v24 = vcombine.high %v4022_v17, %v4026_v23  ;;  %v3983_v15 = vld [vmem:[#allocation8 + $0x4d8] sm:$0xff] }
 0x2dc   :  { %5616 = vmatprep.subr.bf16.mxu1 %v6613_v27  ;;  %v3891_v27 = vld [vmem:[#allocation8 + $0x1f8] sm:$0xff] }
 0x2dd   :  { %5576 = vmatpush2.bf16.msra.mxu0 %v6484_v32  ;;  %v6431_v32 = vcombine.high %v3887_v25, %v3891_v27  ;;  %v6430_v31 = vcombine.low %v3887_v25, %v3891_v27  ;;  %v3987_v17 = vld [vmem:[#allocation8 + $0x4f8] sm:$0xff] }
 0x2de   :  { %5577 = vmatprep.subr.bf16.mxu0 %v6477_v35  ;;  %v3879_v35 = vld [vmem:[#allocation8 + $0x198] sm:$0xff] }
 0x2df   :  { %5617 = vmatpush2.bf16.msra.mxu1 %v6612_v33  ;;  %v6559_v33 = vcombine.high %v4015_v29, %v4019_v30  ;;  %v3975_v25 = vld [vmem:[#allocation8 + $0x498] sm:$0xff]  ;;  %v6526_v30 = vcombine.low %v3983_v15, %v3987_v17 }
 0x2e0   :  { %5618 = vmatprep.subr.bf16.mxu1 %v6605_v36  ;;  %v3883_v36 = vld [vmem:[#allocation8 + $0x1b8] sm:$0xff] }
 0x2e1   :  { %5578 = vmatpush2.bf16.msra.mxu0 %v6476_v42  ;;  %v6423_v42 = vcombine.high %v3879_v35, %v3883_v36  ;;  %v3979_v27 = vld [vmem:[#allocation8 + $0x4b8] sm:$0xff] }
 0x2e2   :  { %5579 = vmatprep.subr.bf16.mxu0 %v6469_v37  ;;  %v3871_v37 = vld [vmem:[#allocation8 + $0x158] sm:$0xff] }
 0x2e3   :  { %5619 = vmatpush2.bf16.msra.mxu1 %v6604_v8  ;;  %v6551_v8 = vcombine.high %v4007_v28, %v4011_v38 }
 0x2e4   :  { %5620 = vmatprep.subr.bf16.mxu1 %v6597_v4  ;;  %v3875_v4 = vld [vmem:[#allocation8 + $0x178] sm:$0xff] }
 0x2e5   :  { %5580 = vmatpush2.bf16.msra.mxu0 %v6468_v54  ;;  %v6422_v54 = vcombine.low %v3879_v35, %v3883_v36  ;;  %v6415_v57 = vcombine.high %v3871_v37, %v3875_v4  ;;  %v6414_v3 = vcombine.low %v3871_v37, %v3875_v4  ;;  %v3967_v35 = vld [vmem:[#allocation8 + $0x458] sm:$0xff] }
 0x2e6   :  { %5581 = vmatprep.subr.bf16.mxu0 %v6461_v0  ;;  %v3971_v36 = vld [vmem:[#allocation8 + $0x478] sm:$0xff] }
 0x2e7   :  { %5621 = vmatpush2.bf16.msra.mxu1 %v6596_v55  ;;  %v3959_v37 = vld [vmem:[#allocation8 + $0x418] sm:$0xff] }
 0x2e8   :  { %5622 = vmatprep.subr.bf16.mxu1 %v6589_v11  ;;  %v6550_v11 = vcombine.low %v4007_v28, %v4011_v38  ;;  %v6518_v38 = vcombine.low %v3975_v25, %v3979_v27  ;;  %v3963_v4 = vld [vmem:[#allocation8 + $0x438] sm:$0xff] }
 0x2e9   :  { %5582 = vmatpush2.bf16.msra.mxu0 %v6460_v61  ;;  %v3867_v61 = vld [vmem:[#allocation8 + $0x138] sm:$0xff] }
 0x2ea   :  { %5583 = vmatprep.subr.bf16.mxu0 %v6453_v34  ;;  %v6406_v23 = vcombine.low %v3863_v7, %v3867_v61 }
 0x2eb   :  { %5623 = vmatpush2.bf16.msra.mxu1 %v6588_v62 }
 0x2ec   :  { %5624 = vmatprep.subr.bf16.mxu1 %v6581_v1 }
 0x2ed   :  { %5584 = vmatpush2.bf16.msra.mxu0 %v6452_v13 }
 0x2ee   :  { %5585 = vmatprep.subr.bf16.mxu0 %v6445_v12  ;;  %v6407_v12 = vcombine.high %v3863_v7, %v3867_v61  ;;  %v3943_v61 = vld [vmem:[#allocation8 + $0x398] sm:$0xff] }
 0x2ef   :  { %5625 = vmatpush2.bf16.msra.mxu1 %v6580_v10  ;;  %v6542_v10 = vcombine.low %v3999_v58, %v4003_v48  ;;  %v6510_v58 = vcombine.low %v3967_v35, %v3971_v36 }
 0x2f0   :  { %5626 = vmatprep.subr.bf16.mxu1 %v6573_v59  ;;  %v6535_v59 = vcombine.high %v3991_v9, %v3995_v2 }
 0x2f1   :  { %5586 = vmatpush2.bf16.msra.mxu0 %v6444_v19 }
 0x2f2   :  { %5587 = vmatprep.subr.bf16.mxu0 %v6437_v21  ;;  %v3847_v21 = vld [vmem:[#allocation8 + $0x98] sm:$0xff] }
 0x2f3   :  { %5627 = vmatpush2.bf16.msra.mxu1 %v6572_v20  ;;  %v6527_v20 = vcombine.high %v3983_v15, %v3987_v17 }
 0x2f4   :  { %5628 = vmatprep.subr.bf16.mxu1 %v6565_v24  ;;  %v3851_v24 = vld [vmem:[#allocation8 + $0xb8] sm:$0xff] }
 0x2f5   :  { %5588 = vmatpush2.bf16.msra.mxu0 %v6436_v22  ;;  %v6391_v22 = vcombine.high %v3847_v21, %v3851_v24  ;;  %v6390_v28 = vcombine.low %v3847_v21, %v3851_v24 }
 0x2f6   :  { %5639 = vmatprep.subr.bf16.mxu0 %v6431_v32  ;;  %v3839_v32 = vld [vmem:[#allocation8 + $0x58] sm:$0xff] }
 0x2f7   :  { %5629 = vmatpush2.bf16.msra.mxu1 %v6564_v63  ;;  %v6519_v63 = vcombine.high %v3975_v25, %v3979_v27 }
 0x2f8   :  { %5680 = vmatprep.subr.bf16.mxu1 %v6559_v33  ;;  %v3820_v47 = vpop.f32.mrf.mxu0  ;;  %5590 = vmatmul.mubr.bf16.vlgmr.msra.gmra.mxu0 %v6957_v5  ;;  %v3843_v33 = vld [vmem:[#allocation8 + $0x78] sm:$0xff] }
 0x2f9   :  { %5640 = vmatpush1.bf16.msra.mxu0 %v6430_v31  ;;  %5671 = vmatprep.mubr.bf16.mxu0 %v6941_v49  ;;  %v6383_v31 = vcombine.high %v3839_v32, %v3843_v33 }
 0x2fa   :  { %v3779_v50 = vpop.f32.mrf.mxu1  ;;  %5631 = vmatmul.mubr.bf16.vlgmr.msra.gmra.mxu1 %v6961_v16  ;;  %v3822_v0 = vpop.f32.mrf.mxu0  ;;  %5641 = vmatprep.subr.bf16.mxu0 %v6423_v42  ;;  %v3831_v42 = vld [vmem:[#allocation8 + $0x18] sm:$0xff] }
 0x2fb   :  { %v3780_v55 = vadd.f32 %v3779_v50, %v6977_v18  ;;  %5681 = vmatpush1.bf16.msra.mxu1 %v6558_v41  ;;  %5712 = vmatprep.mubr.bf16.mxu1 %v6946_v51  ;;  %v6534_v51 = vcombine.low %v3991_v9, %v3995_v2  ;;  %v6511_v41 = vcombine.high %v3967_v35, %v3971_v36  ;;  %v4075_v9 = vld [vmem:[#allocation8 + $0x7b8] sm:$0xff] }
 0x2fc   :  { %v3781_v45 = vpop.f32.mrf.mxu1  ;;  %5682 = vmatprep.subr.bf16.mxu1 %v6551_v8  ;;  %v3824_v1 = vpop.f32.mrf.mxu0  ;;  %v3835_v8 = vld [vmem:[#allocation8 + $0x38] sm:$0xff]  ;;  %v6503_v50 = vcombine.high %v3959_v37, %v3963_v4 }
 0x2fd   :  { %v6985_v62 = vadd.f32 %v3820_v47, %v3780_v55  ;;  %v3782_v34 = vadd.f32 %v3781_v45, %v6979_v26  ;;  %5642 = vmatpush1.bf16.msra.mxu0 %v6422_v54  ;;  %v3859_v26 = vld [vmem:[#allocation8 + $0xf8] sm:$0xff]  ;;  %v6382_v47 = vcombine.low %v3839_v32, %v3843_v33  ;;  %v6375_v48 = vcombine.high %v3831_v42, %v3835_v8 }
 0x2fe   :  { %v3783_v18 = vpop.f32.mrf.mxu1  ;;  %v3825_v13 = vpop.f32.mrf.mxu0  ;;  %5643 = vmatprep.subr.bf16.mxu0 %v6415_v57  ;;  %v6399_v19 = vcombine.high %v3855_v14, %v3859_v26  ;;  %v6398_v29 = vcombine.low %v3855_v14, %v3859_v26  ;;  %v3951_v54 = vld [vmem:[#allocation8 + $0x3d8] sm:$0xff]  ;;  %v6374_v57 = vcombine.low %v3831_v42, %v3835_v8  ;;  %v6502_v45 = vcombine.low %v3959_v37, %v3963_v4 }
 0x2ff   :  { %v6989_v6 = vadd.f32 %v3822_v0, %v3782_v34  ;;  %5683 = vmatpush1.bf16.msra.mxu1 %v6550_v11  ;;  %v3955_v55 = vld [vmem:[#allocation8 + $0x3f8] sm:$0xff] }
 0x300   :  { %v3784_v49 = vpop.f32.mrf.mxu1  ;;  %5684 = vmatprep.subr.bf16.mxu1 %v6543_v60  ;;  %v4079_v0 = vld [vmem:[#allocation8 + $0x7d8] sm:$0xff]  ;;  %v6495_v60 = vcombine.high %v3951_v54, %v3955_v55  ;;  %v6494_v2 = vcombine.low %v3951_v54, %v3955_v55 }
 0x301   :  { %5644 = vmatpush1.bf16.msra.mxu0 %v6414_v3  ;;  %v4083_v11 = vld [vmem:[#allocation8 + $0x7f8] sm:$0xff] }
 0x302   :  { %5645 = vmatprep.subr.bf16.mxu0 %v6407_v12  ;;  %v6623_v7 = vcombine.high %v4079_v0, %v4083_v11  ;;  %v3947_v34 = vld [vmem:[#allocation8 + $0x3b8] sm:$0xff]  ;;  %v6622_v18 = vcombine.low %v4079_v0, %v4083_v11 }
 0x303   :  { %5685 = vmatpush1.bf16.msra.mxu1 %v6542_v10  ;;  %v4071_v1 = vld [vmem:[#allocation8 + $0x798] sm:$0xff]  ;;  %v6487_v3 = vcombine.high %v3943_v61, %v3947_v34  ;;  %v6486_v14 = vcombine.low %v3943_v61, %v3947_v34 }
 0x304   :  { %5686 = vmatprep.subr.bf16.mxu1 %v6535_v59  ;;  %v6615_v13 = vcombine.high %v4071_v1, %v4075_v9  ;;  %v3935_v10 = vld [vmem:[#allocation8 + $0x358] sm:$0xff]  ;;  %v6614_v26 = vcombine.low %v4071_v1, %v4075_v9 }
 0x305   :  { %5646 = vmatpush1.bf16.msra.mxu0 %v6406_v23  ;;  %v3939_v12 = vld [vmem:[#allocation8 + $0x378] sm:$0xff] }
 0x306   :  { %5647 = vmatprep.subr.bf16.mxu0 %v6399_v19  ;;  %v4063_v49 = vld [vmem:[#allocation8 + $0x758] sm:$0xff]  ;;  %v6479_v15 = vcombine.high %v3935_v10, %v3939_v12  ;;  %v6478_v21 = vcombine.low %v3935_v10, %v3939_v12  ;;  %v5729_v10 = vsub.s32 1, %v6824_v44 }
 0x307   :  { %5687 = vmatpush1.bf16.msra.mxu1 %v6534_v51  ;;  %v4067_v59 = vld [vmem:[#allocation8 + $0x778] sm:$0xff] }
 0x308   :  { %5688 = vmatprep.subr.bf16.mxu1 %v6527_v20  ;;  %v6607_v17 = vcombine.high %v4063_v49, %v4067_v59  ;;  %v3927_v23 = vld [vmem:[#allocation8 + $0x318] sm:$0xff]  ;;  %v6606_v24 = vcombine.low %v4063_v49, %v4067_v59 }
 0x309   :  { %5648 = vmatpush1.bf16.msra.mxu0 %v6398_v29  ;;  %v3931_v51 = vld [vmem:[#allocation8 + $0x338] sm:$0xff] }
 0x30a   :  { %5649 = vmatprep.subr.bf16.mxu0 %v6391_v22  ;;  %v4055_v19 = vld [vmem:[#allocation8 + $0x718] sm:$0xff]  ;;  %v6471_v25 = vcombine.high %v3927_v23, %v3931_v51  ;;  %v6470_v32 = vcombine.low %v3927_v23, %v3931_v51 }
 0x30b   :  { %5689 = vmatpush1.bf16.msra.mxu1 %v6526_v30  ;;  %v4059_v20 = vld [vmem:[#allocation8 + $0x738] sm:$0xff] }
 0x30c   :  { %5690 = vmatprep.subr.bf16.mxu1 %v6519_v63  ;;  %v6599_v27 = vcombine.high %v4055_v19, %v4059_v20  ;;  %v3919_v29 = vld [vmem:[#allocation8 + $0x2d8] sm:$0xff]  ;;  %v6598_v33 = vcombine.low %v4055_v19, %v4059_v20 }
 0x30d   :  { %5650 = vmatpush1.bf16.msra.mxu0 %v6390_v28  ;;  %v3923_v30 = vld [vmem:[#allocation8 + $0x2f8] sm:$0xff] }
 0x30e   :  { %5651 = vmatprep.subr.bf16.mxu0 %v6383_v31  ;;  %v4047_v22 = vld [vmem:[#allocation8 + $0x6d8] sm:$0xff]  ;;  %v6463_v35 = vcombine.high %v3919_v29, %v3923_v30  ;;  %v6462_v42 = vcombine.low %v3919_v29, %v3923_v30 }
 0x30f   :  { %5691 = vmatpush1.bf16.msra.mxu1 %v6518_v38  ;;  %v4051_v63 = vld [vmem:[#allocation8 + $0x6f8] sm:$0xff] }
 0x310   :  { %5692 = vmatprep.subr.bf16.mxu1 %v6511_v41  ;;  %v6591_v36 = vcombine.high %v4047_v22, %v4051_v63  ;;  %v3911_v28 = vld [vmem:[#allocation8 + $0x298] sm:$0xff]  ;;  %v6590_v8 = vcombine.low %v4047_v22, %v4051_v63  ;;  %v5733_v22 = vsub.s32 2, %v6824_v44 }
 0x311   :  { %5652 = vmatpush1.bf16.msra.mxu0 %v6382_v47  ;;  %v3915_v38 = vld [vmem:[#allocation8 + $0x2b8] sm:$0xff] }
 0x312   :  { %5653 = vmatprep.subr.bf16.mxu0 %v6375_v48  ;;  %v4039_v31 = vld [vmem:[#allocation8 + $0x698] sm:$0xff]  ;;  %v6455_v37 = vcombine.high %v3911_v28, %v3915_v38  ;;  %v6454_v54 = vcombine.low %v3911_v28, %v3915_v38 }
 0x313   :  { %5693 = vmatpush1.bf16.msra.mxu1 %v6510_v58  ;;  %v4043_v41 = vld [vmem:[#allocation8 + $0x6b8] sm:$0xff] }
 0x314   :  { %5694 = vmatprep.subr.bf16.mxu1 %v6503_v50  ;;  %v6583_v4 = vcombine.high %v4039_v31, %v4043_v41  ;;  %v3903_v47 = vld [vmem:[#allocation8 + $0x258] sm:$0xff]  ;;  %v6582_v55 = vcombine.low %v4039_v31, %v4043_v41 }
 0x315   :  { %5654 = vmatpush1.bf16.msra.mxu0 %v6374_v57  ;;  %v3907_v58 = vld [vmem:[#allocation8 + $0x278] sm:$0xff] }
 0x316   :  { %5655 = vmatprep.subr.bf16.mxu0 %v6495_v60  ;;  %v4031_v48 = vld [vmem:[#allocation8 + $0x658] sm:$0xff]  ;;  %v6447_v0 = vcombine.high %v3903_v47, %v3907_v58  ;;  %v6446_v61 = vcombine.low %v3903_v47, %v3907_v58 }
 0x317   :  { %5695 = vmatpush1.bf16.msra.mxu1 %v6502_v45  ;;  %v4035_v50 = vld [vmem:[#allocation8 + $0x678] sm:$0xff] }
 0x318   :  { %5696 = vmatprep.subr.bf16.mxu1 %v6623_v7  ;;  %v6575_v11 = vcombine.high %v4031_v48, %v4035_v50  ;;  %v3895_v57 = vld [vmem:[#allocation8 + $0x218] sm:$0xff]  ;;  %v6574_v34 = vcombine.low %v4031_v48, %v4035_v50 }
 0x319   :  { %5656 = vmatpush2.bf16.msra.mxu0 %v6494_v2  ;;  %v3899_v45 = vld [vmem:[#allocation8 + $0x238] sm:$0xff] }
 0x31a   :  { %5657 = vmatprep.subr.bf16.mxu0 %v6487_v3  ;;  %v4023_v60 = vld [vmem:[#allocation8 + $0x618] sm:$0xff]  ;;  %v6439_v1 = vcombine.high %v3895_v57, %v3899_v45  ;;  %v6438_v2 = vcombine.low %v3895_v57, %v3899_v45  ;;  %v5725_v3 = vsub.s32 0, %v6824_v44 }
 0x31b   :  { %5697 = vmatpush2.bf16.msra.mxu1 %v6622_v18  ;;  %v4027_v7 = vld [vmem:[#allocation8 + $0x638] sm:$0xff] }
 0x31c   :  { %5698 = vmatprep.subr.bf16.mxu1 %v6615_v13  ;;  %v6567_v9 = vcombine.high %v4023_v60, %v4027_v7  ;;  %v6566_v18 = vcombine.low %v4023_v60, %v4027_v7  ;;  %v6992_v13 = vld [vmem:[#allocation10] sm:$0xff] }
 0x31d   :  { %5658 = vmatpush2.bf16.msra.mxu0 %v6486_v14  ;;  %v5726_v14 = vrot.slane %v6992_v13, %v5725_v3  ;;  %v5730_v51 = vrot.slane %v6992_v13, %v5729_v10 }
 0x31e   :  { %5659 = vmatprep.subr.bf16.mxu0 %v6479_v15 }
 0x31f   :  { %5699 = vmatpush2.bf16.msra.mxu1 %v6614_v26 }
 0x320   :  { %5700 = vmatprep.subr.bf16.mxu1 %v6607_v17 }
 0x321   :  { %5660 = vmatpush2.bf16.msra.mxu0 %v6478_v21 }
 0x322   :  { %5661 = vmatprep.subr.bf16.mxu0 %v6471_v25 }
 0x323   :  { %5701 = vmatpush2.bf16.msra.mxu1 %v6606_v24 }
 0x324   :  { %5702 = vmatprep.subr.bf16.mxu1 %v6599_v27 }
 0x325   :  { %5662 = vmatpush2.bf16.msra.mxu0 %v6470_v32 }
 0x326   :  { %5663 = vmatprep.subr.bf16.mxu0 %v6463_v35 }
 0x327   :  { %5703 = vmatpush2.bf16.msra.mxu1 %v6598_v33  ;;  %v5734_v33 = vrot.slane %v6992_v13, %v5733_v22 }
 0x328   :  { %5704 = vmatprep.subr.bf16.mxu1 %v6591_v36 }
 0x329   :  { %5664 = vmatpush2.bf16.msra.mxu0 %v6462_v42 }
 0x32a   :  { %5665 = vmatprep.subr.bf16.mxu0 %v6455_v37 }
 0x32b   :  { %5705 = vmatpush2.bf16.msra.mxu1 %v6590_v8 }
 0x32c   :  { %5706 = vmatprep.subr.bf16.mxu1 %v6583_v4 }
 0x32d   :  { %5666 = vmatpush2.bf16.msra.mxu0 %v6454_v54 }
 0x32e   :  { %5667 = vmatprep.subr.bf16.mxu0 %v6447_v0 }
 0x32f   :  { %5707 = vmatpush2.bf16.msra.mxu1 %v6582_v55 }
 0x330   :  { %5708 = vmatprep.subr.bf16.mxu1 %v6575_v11  ;;  %v5745_v11 = vsub.s32 5, %v6824_v44 }
 0x331   :  { %5668 = vmatpush2.bf16.msra.mxu0 %v6446_v61 }
 0x332   :  { %5669 = vmatprep.subr.bf16.mxu0 %v6439_v1 }
 0x333   :  { %5709 = vmatpush2.bf16.msra.mxu1 %v6574_v34 }
 0x334   :  { %5710 = vmatprep.subr.bf16.mxu1 %v6567_v9 }
 0x335   :  { %5670 = vmatpush2.bf16.msra.mxu0 %v6438_v2  ;;  %v5746_v2 = vrot.slane %v6992_v13, %v5745_v11 }
 0x337   :  { %5711 = vmatpush2.bf16.msra.mxu1 %v6566_v18 }
 0x338   :  { %v5427_v12 = vpop.f32.mrf.mxu0  ;;  %5672 = vmatmul.mubr.bf16.vlgmr.msra.gmra.mxu0 %v6957_v5 }
 0x339   :  { %v5428_v49 = vadd.f32 %v5427_v12, %v6909_v39 }
 0x33a   :  { %v5468_v59 = vpop.f32.mrf.mxu1  ;;  %5713 = vmatmul.mubr.bf16.vlgmr.msra.gmra.mxu1 %v6961_v16  ;;  %v5429_v26 = vpop.f32.mrf.mxu0  ;;  %v5737_v16 = vsub.s32 3, %v6824_v44 }
 0x33b   :  { %v5469_v15 = vadd.f32 %v5468_v59, %v5428_v49  ;;  %v5430_v17 = vadd.f32 %v5429_v26, %v6911_v43 }
 0x33c   :  { %v5470_v23 = vpop.f32.mrf.mxu1  ;;  %v5431_v19 = vpop.f32.mrf.mxu0  ;;  %v5738_v31 = vrot.slane %v6992_v13, %v5737_v16 }
 0x33d   :  { %v5763_v20 = vadd.f32 %v5726_v14, %v5469_v15  ;;  %v5471_v21 = vadd.f32 %v5470_v23, %v5430_v17  ;;  %v5749_v17 = vsub.s32 6, %v6824_v44  ;;  %v5753_v23 = vsub.s32 7, %v6824_v44 }
 0x33e   :  { %v5472_v24 = vpop.f32.mrf.mxu1  ;;  %v5432_v25 = vpop.f32.mrf.mxu0 }
 0x33f   :  { %v5764_v5 = vadd.f32 %v5730_v51, %v5471_v21  ;;  %v5771_v39 = vmax.f32 %v5763_v20, 0.0  ;;  %v5750_v20 = vrot.slane %v6992_v13, %v5749_v17 }
 0x340   :  { %v5473_v27 = vpop.f32.mrf.mxu1 }
 0x341   :  { %v5772_v29 = vmax.f32 %v5764_v5, 0.0  ;;  %v5754_v27 = vrot.slane %v6992_v13, %v5753_v23 }
 0x343   :  { %v5787_v30 = vcombine.low %v5771_v39, %v5772_v29 }
 0x345   :  { %v5797_v54 = vrot.slane %v5787_v30, %v6827_v53 }
 0x378   :  { %v5509_v63 = vpop.f32.mrf.mxu0 }
 0x379   :  { %v5510_v43 = vadd.f32 %v5509_v63, %v6929_v40 }
 0x37a   :  { %v5550_v32 = vpop.f32.mrf.mxu1  ;;  %v5511_v35 = vpop.f32.mrf.mxu0 }
 0x37b   :  { %v5551_v36 = vadd.f32 %v5550_v32, %v5510_v43  ;;  %v5512_v28 = vadd.f32 %v5511_v35, %v6932_v46  ;;  %v5741_v46 = vsub.s32 4, %v6824_v44 }
 0x37c   :  { %v5552_v38 = vpop.f32.mrf.mxu1  ;;  %v5513_v41 = vpop.f32.mrf.mxu0 }
 0x37d   :  { %v5765_v42 = vadd.f32 %v5734_v33, %v5551_v36  ;;  %v5553_v8 = vadd.f32 %v5552_v38, %v5512_v28  ;;  %v5742_v7 = vrot.slane %v6992_v13, %v5741_v46 }
 0x37e   :  { %v5554_v37 = vpop.f32.mrf.mxu1  ;;  %v5514_v4 = vpop.f32.mrf.mxu0 }
 0x37f   :  { %v5766_v47 = vadd.f32 %v5738_v31, %v5553_v8  ;;  %v5773_v48 = vmax.f32 %v5765_v42, 0.0 }
 0x380   :  { %v5555_v58 = vpop.f32.mrf.mxu1 }
 0x381   :  { %v5774_v50 = vmax.f32 %v5766_v47, 0.0 }
 0x383   :  { %v5788_v40 = vcombine.low %v5773_v48, %v5774_v50 }
 0x385   :  { %v5804_v55 = vrot.slane %v5788_v40, %v6827_v53 }
 0x387   :  { %v5819_v0 = vcombine.low %v5797_v54, %v5804_v55 }
 0x3b8   :  { %v5591_v57 = vpop.f32.mrf.mxu0 }
 0x3b9   :  { %v5592_v45 = vadd.f32 %v5591_v57, %v6969_v52 }
 0x3ba   :  { %v5632_v60 = vpop.f32.mrf.mxu1  ;;  %v5593_v61 = vpop.f32.mrf.mxu0 }
 0x3bb   :  { %v5633_v34 = vadd.f32 %v5632_v60, %v5592_v45  ;;  %v5594_v1 = vadd.f32 %v5593_v61, %v6971_v56 }
 0x3bc   :  { %v5634_v9 = vpop.f32.mrf.mxu1  ;;  %v5595_v18 = vpop.f32.mrf.mxu0 }
 0x3bd   :  { %v5767_v3 = vadd.f32 %v5742_v7, %v5633_v34  ;;  %v5635_v10 = vadd.f32 %v5634_v9, %v5594_v1 }
 0x3be   :  { %v5636_v12 = vpop.f32.mrf.mxu1  ;;  %v5596_v49 = vpop.f32.mrf.mxu0 }
 0x3bf   :  { %v5768_v59 = vadd.f32 %v5746_v2, %v5635_v10  ;;  %v5775_v26 = vmax.f32 %v5767_v3, 0.0 }
 0x3c0   :  { %v5637_v14 = vpop.f32.mrf.mxu1 }
 0x3c1   :  { %v5776_v15 = vmax.f32 %v5768_v59, 0.0 }
 0x3c3   :  { %v5789_v52 = vcombine.low %v5775_v26, %v5776_v15 }
 0x3c5   :  { %v5811_v33 = vrot.slane %v5789_v52, %v6827_v53 }
 0x3f8   :  { %v5673_v51 = vpop.f32.mrf.mxu0 }
 0x3f9   :  { %v5674_v56 = vadd.f32 %v5673_v51, %v6985_v62 }
 0x3fa   :  { %v5714_v19 = vpop.f32.mrf.mxu1  ;;  %v5675_v21 = vpop.f32.mrf.mxu0 }
 0x3fb   :  { %v5715_v24 = vadd.f32 %v5714_v19, %v5674_v56  ;;  %v5676_v25 = vadd.f32 %v5675_v21, %v6989_v6  ;;  %v5827_v6 = vrot.slane %v5819_v0, %v6827_v53 }
 0x3fc   :  { %v5716_v5 = vpop.f32.mrf.mxu1  ;;  %v5677_v39 = vpop.f32.mrf.mxu0 }
 0x3fd   :  { %v5769_v29 = vadd.f32 %v5750_v20, %v5715_v24  ;;  %v5717_v30 = vadd.f32 %v5716_v5, %v5676_v25 }
 0x3fe   :  { %v5718_v22 = vpop.f32.mrf.mxu1  ;;  %v5678_v16 = vpop.f32.mrf.mxu0 }
 0x3ff   :  { %v5770_v63 = vadd.f32 %v5754_v27, %v5717_v30  ;;  %v5777_v43 = vmax.f32 %v5769_v29, 0.0 }
 0x400   :  { %v5719_v44 = vpop.f32.mrf.mxu1 }
 0x401   :  { %v5778_v32 = vmax.f32 %v5770_v63, 0.0 }
 0x403   :  { %v5790_v62 = vcombine.low %v5777_v43, %v5778_v32 }
 0x405   :  { %v5818_v35 = vrot.slane %v5790_v62, %v6827_v53 }
 0x407   :  { %v5820_v36 = vcombine.low %v5811_v33, %v5818_v35 }
 0x409   :  { %v5834_v13 = vrot.slane %v5820_v36, %v6827_v53 }
 0x40b   :  { %v5835_v28 = vcombine.low %v5827_v6, %v5834_v13 }
 0x40d   :  { %5837 = vst [vmem:[#allocation11] sm:$0xff] %v5835_v28 }
 0x40e   :  { %6753 = shalt.err (!%p6750_p1)
}
 0x40f   :  { %5847 = dma.vmem_to_hbm [thread:$0]  %s5845_s4, 128, %s7033_s5, [#allocation4]  }
 0x410   :  { %6768 = dma.done.wait [#allocation4], 128  }
 0x411   :  { %6769 = vsyncadd [#allocation4], 4294967168 }
 0x412   :  { %5851 = vsyncpa [#allocation3], 1 }
 0x413   :  { %5852 = vsyncpa [#allocation6], 1 }
 0x414   :  { %5853 = vsyncpa [#allocation9], 1 }
 0x415   :  { %5854 = vsyncpa [#allocation4], 1 }

</bundles_post_ra>
